<compile_context>
chip_gen: v6e
topology: v6e:2x2x1
jax: 0.10.0
libtpu: 0.0.40
codegen_flags: <defaults>
</compile_context>

<pallas_src>
import functools

import jax
import jax.numpy as jnp
from jax.experimental import pallas as pl
from jax.experimental.pallas import tpu as pltpu


def _round_up(a, b):
    return (a + b - 1) // b * b


# ---------------------------------------------------------------------------
# Pallas kernel: fused matmul + (bias | BatchNorm) + LeakyReLU epilogue
# ---------------------------------------------------------------------------
def matmul_fused_kernel(x_ref, w_ref, scale_ref, shift_ref, o_ref, acc_ref,
                        *, bn, act, eps=1e-5):
    """o = act(epilogue(x @ w)); K is reduced across grid axis 2.

    bn=False: epilogue(a) = a * scale + shift  (scale also carries the int8
              weight dequant factor when w is stored int8).
    bn=True : train-mode BatchNorm over the rows of the resident f32
              accumulator (requires a single M block, gm == 1):
              epilogue(a) = (a - mean) * rsqrt(var + eps) * gamma + beta.
    """
    @pl.when(pl.program_id(2) == 0)
    def _():
        acc_ref[...] = jnp.zeros_like(acc_ref)

    w = w_ref[...]
    if w.dtype != jnp.bfloat16:
        # int8 weights: cast through f32 so the MXU only ever sees bf16.
        w = w.astype(jnp.float32).astype(jnp.bfloat16)
    acc_ref[...] += jnp.dot(x_ref[...], w, preferred_element_type=jnp.float32)

    @pl.when(pl.program_id(2) == pl.num_programs(2) - 1)
    def _():
        acc = acc_ref[...]
        if bn:
            # Two-pass mean/var per channel (lane) — no E[x^2]-E[x]^2
            # cancellation, no extra HBM pass over the activation.
            mean = jnp.mean(acc, axis=0, keepdims=True)
            var = jnp.mean(jnp.square(acc - mean), axis=0, keepdims=True)
            inv = jax.lax.rsqrt(var + eps)
            y = (acc - mean) * (scale_ref[...] * inv) + shift_ref[...]
        else:
            y = acc * scale_ref[...] + shift_ref[...]
        if act == "leaky":
            y = jnp.where(y >= 0.0, y, 0.2 * y)
        o_ref[...] = y.astype(o_ref.dtype)


# ---------------------------------------------------------------------------
# Pallas wrapper
# ---------------------------------------------------------------------------
def matmul_fused(x, w, scale, shift, *, act="leaky", bn=False,
                 out_dtype=jnp.bfloat16):
    """x: (M, K), w: (K, N) bf16|int8, scale/shift: (N,) -> (M, N) out_dtype."""
    m, k = x.shape
    kw_, n = w.shape
    assert k == kw_

    x = x.astype(jnp.bfloat16)
    if w.dtype != jnp.int8:
        w = w.astype(jnp.bfloat16)
    w_bytes = 1 if w.dtype == jnp.int8 else 2
    out_bytes = jnp.dtype(out_dtype).itemsize

    # ----- M tiling: full extent (gm == 1). Required for the in-kernel BN
    # statistics and the biggest win for this launch/BW-bound net (M <= 2048).
    if bn or m <= 4096:
        tm, m_pad = m, m
    else:  # generic fallback; never hit at these shapes
        tm = 1024 if m % 1024 == 0 else 512
        m_pad = _round_up(m, tm)

    # ----- N tiling: >= 2 'parallel' tiles when N >= 256 so a 2-TC chip
    # (v7x) uses both cores; one cheap extra grid step on 1-TC chips.
    tn = n // 2 if (n >= 256 and (n // 2) % 128 == 0) else n

    # ----- K tiling: cap the per-step weight block. Full-K buys no HBM
    # traffic on BW-bound layers but inflates VMEM and the prologue.
    TK_CAP = 4608
    if k <= TK_CAP:
        tk, k_pad = k, k
    else:
        tk = None
        for cand in range(TK_CAP, 127, -128):
            if k % cand == 0:
                tk = cand
                break
        if tk is None:
            tk = TK_CAP
        k_pad = _round_up(k, tk)

    xp = x
    if (m_pad, k_pad) != (m, k):       # fallback only; never triggers here
        xp = jnp.pad(x, ((0, m_pad - m), (0, k_pad - k)))
    wp = w if k_pad == k else jnp.pad(w, ((0, k_pad - k), (0, 0)))

    scale2 = scale.reshape(1, n).astype(jnp.float32)
    shift2 = shift.reshape(1, n).astype(jnp.float32)

    gm, gn, gk = m_pad // tm, n // tn, k_pad // tk
    if bn:
        assert gm == 1, "in-kernel BatchNorm needs the full M extent resident"

    # VMEM need: double-buffered x/w/out blocks + f32 accumulator + scale/shift.
    need = (2 * tm * tk * 2 + 2 * tk * tn * w_bytes
            + 2 * tm * tn * out_bytes + tm * tn * 4 + 4 * tn * 4)
    # Clamp to <= 48 MiB: leaves headroom for Mosaic-internal scratch even on
    # the 64 MiB v7x generation; far above the few-MiB need at these shapes.
    vmem_limit = int(max(min(need + (8 << 20), 48 << 20), 32 << 20))

    out = pl.pallas_call(
        functools.partial(matmul_fused_kernel, bn=bn, act=act),
        out_shape=jax.ShapeDtypeStruct((m_pad, n), out_dtype),
        grid_spec=pltpu.PrefetchScalarGridSpec(
            num_scalar_prefetch=0,
            grid=(gm, gn, gk),
            in_specs=[
                pl.BlockSpec((tm, tk), lambda i, j, kk: (i, kk)),
                pl.BlockSpec((tk, tn), lambda i, j, kk: (kk, j)),
                pl.BlockSpec((1, tn), lambda i, j, kk: (0, j)),
                pl.BlockSpec((1, tn), lambda i, j, kk: (0, j)),
            ],
            out_specs=pl.BlockSpec((tm, tn), lambda i, j, kk: (i, j)),
            scratch_shapes=[pltpu.VMEM((tm, tn), jnp.float32)],
        ),
        compiler_params=pltpu.CompilerParams(
            dimension_semantics=("parallel", "parallel", "arbitrary"),
            vmem_limit_bytes=vmem_limit,
        ),
    )(xp, wp, scale2, shift2)

    return out if m_pad == m else out[:m]


# ---------------------------------------------------------------------------
# Glue: im2col, adaptive avg pool
# ---------------------------------------------------------------------------
def im2col(x, stride):
    """x: (N, H, W, C), 3x3 kernel, padding=1 -> (N*Ho*Wo, 9*C) bf16, Ho, Wo."""
    n, h, w, c = x.shape
    x = x.astype(jnp.bfloat16)        # bf16 MXU operand; halves patch traffic
    xp = jnp.pad(x, ((0, 0), (1, 1), (1, 1), (0, 0)))
    ho = (h + 2 - 3) // stride + 1
    wo = (w + 2 - 3) // stride + 1
    cols = []
    for di in range(3):
        for dj in range(3):
            cols.append(xp[:, di:di + stride * (ho - 1) + 1:stride,
                           dj:dj + stride * (wo - 1) + 1:stride, :])
    patches = jnp.concatenate(cols, axis=-1)            # (N, Ho, Wo, 9*C)
    return patches.reshape(n * ho * wo, 9 * c), ho, wo


def adaptive_avg_pool(x, out_h, out_w):
    """PyTorch AdaptiveAvgPool2d semantics; x: (N, H, W, C) f32."""
    _, h, w, _ = x.shape
    rows = []
    for i in range(out_h):
        h0 = (i * h) // out_h
        h1 = -(-((i + 1) * h) // out_h)
        cols = []
        for j in range(out_w):
            w0 = (j * w) // out_w
            w1 = -(-((j + 1) * w) // out_w)
            cols.append(jnp.mean(x[:, h0:h1, w0:w1, :], axis=(1, 2)))
        rows.append(jnp.stack(cols, axis=1))
    return jnp.stack(rows, axis=1)                      # (N, out_h, out_w, C)


# ---------------------------------------------------------------------------
# Model: parameters + forward
# ---------------------------------------------------------------------------
FEATURES = [64, 64, 128, 128, 256, 256, 512, 512]


def init_params(key):
    params = {"blocks": []}
    cin = 3
    for idx, f in enumerate(FEATURES):
        key, kw, kb, kg, kbt = jax.random.split(key, 5)
        # PyTorch conv weight (Cout,Cin,kh,kw) -> (kh,kw,Cin,Cout) ->
        # (9*Cin, Cout), matching im2col's (kh,kw,Cin) column order.
        w = jax.random.normal(kw, (f, cin, 3, 3), jnp.float32) * 0.05
        blk = {
            "w": jnp.transpose(w, (2, 3, 1, 0)).reshape(9 * cin, f).astype(jnp.bfloat16),
            "stride": 1 + idx % 2,
            "use_bn": idx != 0,
        }
        if idx == 0:
            blk["b"] = jax.random.normal(kb, (f,), jnp.float32) * 0.05
        else:
            blk["gamma"] = 1.0 + 0.1 * jax.random.normal(kg, (f,), jnp.float32)
            blk["beta"] = 0.05 * jax.random.normal(kbt, (f,), jnp.float32)
        params["blocks"].append(blk)
        cin = f

    key, k1, k2, k3, k4 = jax.random.split(key, 5)
    # Linear(18432,1024) is purely weight-BW bound at small batch: store int8
    # with a per-output-channel dequant scale folded into the matmul epilogue.
    w1 = jax.random.normal(k1, (512 * 6 * 6, 1024), jnp.float32) * 0.01
    amax = jnp.maximum(jnp.max(jnp.abs(w1), axis=0), 1e-8)
    w1_scale = (amax / 127.0).astype(jnp.float32)
    params["w1_scale"] = w1_scale
    params["w1_q"] = jnp.clip(jnp.round(w1 / w1_scale), -127, 127).astype(jnp.int8)
    params["b1"] = jax.random.normal(k2, (1024,), jnp.float32) * 0.01
    params["w2"] = jax.random.normal(k3, (1024, 1), jnp.float32) * 0.01
    params["b2"] = jax.random.normal(k4, (1,), jnp.float32) * 0.01
    return params


def conv_block(x, blk):
    """x: (N, H, W, Cin) -> (N, Ho, Wo, Cout). Conv3x3 + (bias|BN) + LeakyReLU."""
    n = x.shape[0]
    patches, ho, wo = im2col(x, blk["stride"])
    cout = blk["w"].shape[1]
    if blk["use_bn"]:
        # Conv (bias-free) + train-mode BatchNorm2d + LeakyReLU in ONE kernel.
        y = matmul_fused(patches, blk["w"], blk["gamma"], blk["beta"],
                         act="leaky", bn=True)
    else:
        # Conv + bias + LeakyReLU fused in the matmul epilogue.
        y = matmul_fused(patches, blk["w"], jnp.ones((cout,), jnp.float32),
                         blk["b"], act="leaky", bn=False)
    return y.reshape(n, ho, wo, cout)


def discriminator_forward(x_nchw, params):
    # layout: NCHW (PyTorch) -> NHWC internally (channels on the 128 lanes).
    x = jnp.transpose(x_nchw, (0, 2, 3, 1)).astype(jnp.float32)
    for blk in params["blocks"]:
        x = conv_block(x, blk)

    n = x.shape[0]
    pooled = adaptive_avg_pool(x.astype(jnp.float32), 6, 6)     # (N, 6, 6, 512)
    # Flatten in PyTorch NCHW order so Linear weights line up semantically.
    flat = jnp.transpose(pooled, (0, 3, 1, 2)).reshape(n, 512 * 6 * 6)
    h = matmul_fused(flat, params["w1_q"], params["w1_scale"], params["b1"],
                     act="leaky", bn=False, out_dtype=jnp.float32)
    # Final Linear(1024,1)+Sigmoid stays in plain JAX: a 1-lane Pallas output
    # is all masked stores with launch overhead exceeding the work.
    return jax.nn.sigmoid(h @ params["w2"] + params["b2"])      # (N, 1)


# ---------------------------------------------------------------------------
if __name__ == "__main__":
    key = jax.random.PRNGKey(0)
    kx, kp = jax.random.split(key)

    params = init_params(kp)
    x = jax.random.normal(kx, (2, 3, 32, 32), jnp.float32)      # NCHW, batch=2

    out = jax.block_until_ready(discriminator_forward(x, params))

    assert out.shape == (2, 1), out.shape
    assert bool(jnp.all(jnp.isfinite(out)))
    assert bool(jnp.all((out >= 0.0) & (out <= 1.0)))           # sigmoid range
    print("KERNEL_OK")
</pallas_src>

<mosaic_0001>
module attributes {stable_mosaic.version = 11 : i64} {
  func.func @matmul_fused_kernel(%arg0: i32, %arg1: i32, %arg2: i32, %arg3: memref<2048x27xbf16, #tpu.memory_space<vmem>>, %arg4: memref<27x64xbf16, #tpu.memory_space<vmem>>, %arg5: memref<1x64xf32, #tpu.memory_space<vmem>>, %arg6: memref<1x64xf32, #tpu.memory_space<vmem>>, %arg7: memref<2048x64xbf16, #tpu.memory_space<vmem>>, %arg8: memref<2048x64xf32, #tpu.memory_space<vmem>>) attributes {dimension_semantics = [#tpu.dimension_semantics<parallel>, #tpu.dimension_semantics<parallel>, #tpu.dimension_semantics<arbitrary>], iteration_bounds = array<i64: 1, 1, 1>, scalar_prefetch = 0 : i64, scratch_operands = 1 : i64, tpu.core_type = #tpu.core_type<tc>, window_params = [{transform_indices = @transform_0, window_bounds = array<i64: 2048, 27>}, {transform_indices = @transform_1, window_bounds = array<i64: 27, 64>}, {transform_indices = @transform_2, window_bounds = array<i64: 1, 64>}, {transform_indices = @transform_3, window_bounds = array<i64: 1, 64>}, {transform_indices = @transform_4, window_bounds = array<i64: 2048, 64>}]} {
    %c0_i32 = arith.constant 0 : i32
    %0 = arith.cmpi eq, %arg2, %c0_i32 : i32
    %1 = arith.extui %0 : i1 to i32
    %c0_i32_0 = arith.constant 0 : i32
    %2 = arith.cmpi ne, %1, %c0_i32_0 : i32
    scf.if %2 {
      %cst_10 = arith.constant 0.000000e+00 : f32
      %12 = vector.broadcast %cst_10 : f32 to vector<2048x64xf32>
      %c0_11 = arith.constant 0 : index
      %c0_12 = arith.constant 0 : index
      %13 = vector.load %arg8[%c0_11, %c0_12] : memref<2048x64xf32, #tpu.memory_space<vmem>>, vector<2048x64xf32>
      tpu.vector_store %arg8[%c0_11, %c0_12], %12 {strides = array<i32>} : memref<2048x64xf32, #tpu.memory_space<vmem>>, vector<2048x64xf32>,
    } else {
    }
    %c0 = arith.constant 0 : index
    %c0_1 = arith.constant 0 : index
    %3 = vector.load %arg4[%c0, %c0_1] : memref<27x64xbf16, #tpu.memory_space<vmem>>, vector<27x64xbf16>
    %c0_2 = arith.constant 0 : index
    %c0_3 = arith.constant 0 : index
    %4 = vector.load %arg8[%c0_2, %c0_3] : memref<2048x64xf32, #tpu.memory_space<vmem>>, vector<2048x64xf32>
    %c0_4 = arith.constant 0 : index
    %c0_5 = arith.constant 0 : index
    %5 = vector.load %arg3[%c0_4, %c0_5] : memref<2048x27xbf16, #tpu.memory_space<vmem>>, vector<2048x27xbf16>
    %cst = arith.constant dense<0.000000e+00> : vector<2048x64xf32>
    %6 = tpu.matmul %5, %3, %cst {dimension_numbers = #tpu.dot_dimension_numbers<[1], [0], [0], [1], [0, 0, 1, 1], [], []>} : vector<2048x27xbf16>, vector<27x64xbf16>, vector<2048x64xf32> -> vector<2048x64xf32>
    %7 = arith.addf %4, %6 : vector<2048x64xf32>
    %c0_6 = arith.constant 0 : index
    %c0_7 = arith.constant 0 : index
    %8 = vector.load %arg8[%c0_6, %c0_7] : memref<2048x64xf32, #tpu.memory_space<vmem>>, vector<2048x64xf32>
    tpu.vector_store %arg8[%c0_6, %c0_7], %7 {strides = array<i32>} : memref<2048x64xf32, #tpu.memory_space<vmem>>, vector<2048x64xf32>,
    %c0_i32_8 = arith.constant 0 : i32
    %9 = arith.cmpi eq, %arg2, %c0_i32_8 : i32
    %10 = arith.extui %9 : i1 to i32
    %c0_i32_9 = arith.constant 0 : i32
    %11 = arith.cmpi ne, %10, %c0_i32_9 : i32
    scf.if %11 {
      %c0_10 = arith.constant 0 : index
      %c0_11 = arith.constant 0 : index
      %12 = vector.load %arg8[%c0_10, %c0_11] : memref<2048x64xf32, #tpu.memory_space<vmem>>, vector<2048x64xf32>
      %c0_12 = arith.constant 0 : index
      %c0_13 = arith.constant 0 : index
      %13 = vector.load %arg5[%c0_12, %c0_13] : memref<1x64xf32, #tpu.memory_space<vmem>>, vector<1x64xf32>
      %14 = vector.broadcast %13 : vector<1x64xf32> to vector<2048x64xf32>
      %15 = arith.mulf %12, %14 : vector<2048x64xf32>
      %c0_14 = arith.constant 0 : index
      %c0_15 = arith.constant 0 : index
      %16 = vector.load %arg6[%c0_14, %c0_15] : memref<1x64xf32, #tpu.memory_space<vmem>>, vector<1x64xf32>
      %17 = vector.broadcast %16 : vector<1x64xf32> to vector<2048x64xf32>
      %18 = arith.addf %15, %17 : vector<2048x64xf32>
      %cst_16 = arith.constant 0.000000e+00 : f32
      %19 = vector.broadcast %cst_16 : f32 to vector<2048x64xf32>
      %20 = arith.cmpf oge, %18, %19 : vector<2048x64xf32>
      %cst_17 = arith.constant 2.000000e-01 : f32
      %21 = vector.broadcast %cst_17 : f32 to vector<2048x64xf32>
      %22 = arith.mulf %21, %18 : vector<2048x64xf32>
      %23 = arith.select %20, %18, %22 : vector<2048x64xi1>, vector<2048x64xf32>
      %24 = arith.truncf %23 : vector<2048x64xf32> to vector<2048x64xbf16>
      %c0_18 = arith.constant 0 : index
      %c0_19 = arith.constant 0 : index
      %25 = vector.load %arg7[%c0_18, %c0_19] : memref<2048x64xbf16, #tpu.memory_space<vmem>>, vector<2048x64xbf16>
      tpu.vector_store %arg7[%c0_18, %c0_19], %24 {strides = array<i32>} : memref<2048x64xbf16, #tpu.memory_space<vmem>>, vector<2048x64xbf16>,
    } else {
    }
    return
  }
  func.func @transform_0(%arg0: i32, %arg1: i32, %arg2: i32) -> (i32, i32) {
    %c0_i32 = arith.constant 0 : i32
    return %arg0, %arg2 : i32, i32
  }
  func.func @transform_1(%arg0: i32, %arg1: i32, %arg2: i32) -> (i32, i32) {
    %c0_i32 = arith.constant 0 : i32
    return %arg2, %arg1 : i32, i32
  }
  func.func @transform_2(%arg0: i32, %arg1: i32, %arg2: i32) -> (i32, i32) {
    %c0_i32 = arith.constant 0 : i32
    %c0_i32_0 = arith.constant 0 : i32
    return %c0_i32, %arg1 : i32, i32
  }
  func.func @transform_3(%arg0: i32, %arg1: i32, %arg2: i32) -> (i32, i32) {
    %c0_i32 = arith.constant 0 : i32
    %c0_i32_0 = arith.constant 0 : i32
    return %c0_i32, %arg1 : i32, i32
  }
  func.func @transform_4(%arg0: i32, %arg1: i32, %arg2: i32) -> (i32, i32) {
    %c0_i32 = arith.constant 0 : i32
    return %arg0, %arg1 : i32, i32
  }
}

</mosaic_0001>

<bundles_post_ra>
// kernel: tpu_custom_call.1
= control target key start
LH: loop header
LB: loop body
LE: loop exit
PB: predicated region body
PF: predicated region fallthrough
CT: control target
= control target key end

     0   :  { %vm1831_vm0 = vcmask 1044480   ;;  %vm1832_vm1 = vcmask 1045504   ;;  %v7554_v1 = vmov 65535   ;;  %vm1446_vm2 = vcmask 220160   ;;  %s11235_s1 = inlined_call_operand.vmem [shape: bf16[27,64], index: 1, kind: input, shape index: {}]   ;;  %s11236_s0 = inlined_call_operand.vmem [shape: bf16[2048,27], index: 0, kind: input, shape index: {}]   ;;  %s11237_s2 = inlined_call_operand.vmem [shape: f32[1,64], index: 2, kind: input, shape index: {}]   ;;  %s11238_s3 = inlined_call_operand.vmem [shape: f32[1,64], index: 3, kind: input, shape index: {}]   ;;  %s11239_s4 = inlined_call_operand.vmem [shape: bf16[2048,64], index: 4, kind: output, shape index: {}]  }
   0x1   :  { %v7414_v0 = vld [vmem:[%s11235_s1 + $0x8] sm:$0x3f]   ;;  %v1833_v2 = vsel %vm1831_vm0, 4294967295, %v7554_v1  ;;  %v7416_v4 = vld [vmem:[%s11236_s0] sm:$0xff]   ;;  %v7420_v10 = vld [vmem:[%s11236_s0 + $0x10] sm:$0xff]   ;;  %vm22_vm3 = vcmask 523264  }
   0x2   :  { %v1834_v3 = vsel %vm1832_vm1, %v1833_v2, 0  ;;  %v7415_v6 = vld [vmem:[%s11235_s1] sm:$0xff]   ;;  %7152 = vmatprep.mubr.msk.bf16.mxu0 %vm1446_vm2, %v7416_v4  ;;  %v7418_v8 = vld [vmem:[%s11236_s0 + $0x8] sm:$0xff]   ;;  %v7421_v11 = vld [vmem:[%s11236_s0 + $0x210] sm:$0xff]   ;;  %v7555_v41 = vmov 0.0   ;;  %vm5985_vm4 = vcmask 519168  }
   0x3   :  { %v1836_v5 = vand.u32 %v7414_v0, %v1834_v3  ;;  %v7417_v7 = vld [vmem:[%s11236_s0 + $0x200] sm:$0xff]   ;;  %v7419_v9 = vld [vmem:[%s11236_s0 + $0x208] sm:$0xff]   ;;  %v7422_v12 = vld [vmem:[%s11236_s0 + $0x18] sm:$0xff]   ;;  %25 = vst.msk [vmem:[#allocation2 + $0x10] sm:$0xff] %vm22_vm3, %v7555_v41 }
   0x4   :  { %7280 = vmatprep.mubr.msk.bf16.mxu1 %vm1446_vm2, %v7417_v7  ;;  %v7423_v13 = vld [vmem:[%s11236_s0 + $0x218] sm:$0xff]   ;;  %v7424_v14 = vld [vmem:[%s11236_s0 + $0x20] sm:$0xff]   ;;  %v7426_v16 = vld [vmem:[%s11236_s0 + $0x28] sm:$0xff]   ;;  %23 = vst.msk [vmem:[#allocation2] sm:$0xff] %vm22_vm3, %v7555_v41 }
   0x5   :  { %7148 = vmatprep.subr.bf16.mxu0 %v1836_v5  ;;  %7408 = vmatprep.subr.bf16.mxu1 %v1836_v5  ;;  %v7425_v15 = vld [vmem:[%s11236_s0 + $0x220] sm:$0xff]   ;;  %v7427_v17 = vld [vmem:[%s11236_s0 + $0x228] sm:$0xff]   ;;  %v7428_v18 = vld [vmem:[%s11236_s0 + $0x30] sm:$0xff]   ;;  %24 = vst.msk [vmem:[#allocation2 + $0x8] sm:$0xff] %vm22_vm3, %v7555_v41 }
   0x6   :  { %7149 = vmatpush3.bf16.msra.mxu0 %v1836_v5  ;;  %7410 = vmatpush3.bf16.msra.mxu1 %v1836_v5  ;;  %v7429_v19 = vld [vmem:[%s11236_s0 + $0x230] sm:$0xff]   ;;  %v7430_v20 = vld [vmem:[%s11236_s0 + $0x38] sm:$0xff]   ;;  %v7432_v22 = vld [vmem:[%s11236_s0 + $0x40] sm:$0xff]   ;;  %26 = vst.msk [vmem:[#allocation2 + $0x18] sm:$0xff] %vm22_vm3, %v7555_v41 }
   0x7   :  { %7150 = vmatprep.subr.bf16.mxu0 %v7415_v6  ;;  %7409 = vmatprep.subr.bf16.mxu1 %v7415_v6  ;;  %v7431_v21 = vld [vmem:[%s11236_s0 + $0x238] sm:$0xff]   ;;  %v7433_v23 = vld [vmem:[%s11236_s0 + $0x240] sm:$0xff]   ;;  %v7434_v24 = vld [vmem:[%s11236_s0 + $0x48] sm:$0xff]   ;;  %27 = vst.msk [vmem:[#allocation2 + $0x20] sm:$0xff] %vm22_vm3, %v7555_v41 }
   0x8   :  { %v7435_v25 = vld [vmem:[%s11236_s0 + $0x248] sm:$0xff]   ;;  %v7436_v26 = vld [vmem:[%s11236_s0 + $0x50] sm:$0xff]   ;;  %v7438_v28 = vld [vmem:[%s11236_s0 + $0x58] sm:$0xff]   ;;  %28 = vst.msk [vmem:[#allocation2 + $0x28] sm:$0xff] %vm22_vm3, %v7555_v41 }
   0x9   :  { %v7437_v27 = vld [vmem:[%s11236_s0 + $0x250] sm:$0xff]   ;;  %v7439_v29 = vld [vmem:[%s11236_s0 + $0x258] sm:$0xff]   ;;  %v7440_v30 = vld [vmem:[%s11236_s0 + $0x60] sm:$0xff]   ;;  %29 = vst.msk [vmem:[#allocation2 + $0x30] sm:$0xff] %vm22_vm3, %v7555_v41 }
   0xa   :  { %7151 = vmatpush3.bf16.msra.mxu0 %v7415_v6  ;;  %7411 = vmatpush3.bf16.msra.mxu1 %v7415_v6  ;;  %v7441_v31 = vld [vmem:[%s11236_s0 + $0x260] sm:$0xff]   ;;  %v7442_v32 = vld [vmem:[%s11236_s0 + $0x68] sm:$0xff]   ;;  %v7444_v34 = vld [vmem:[%s11236_s0 + $0x70] sm:$0xff]   ;;  %30 = vst.msk [vmem:[#allocation2 + $0x38] sm:$0xff] %vm22_vm3, %v7555_v41 }
   0xb   :  { %v7443_v33 = vld [vmem:[%s11236_s0 + $0x268] sm:$0xff]   ;;  %v7445_v35 = vld [vmem:[%s11236_s0 + $0x270] sm:$0xff]   ;;  %v7446_v36 = vld [vmem:[%s11236_s0 + $0x78] sm:$0xff]   ;;  %31 = vst.msk [vmem:[#allocation2 + $0x40] sm:$0xff] %vm22_vm3, %v7555_v41 }
   0xc   :  { %v7447_v37 = vld [vmem:[%s11236_s0 + $0x278] sm:$0xff]   ;;  %v7448_v38 = vld [vmem:[%s11236_s0 + $0x80] sm:$0xff]   ;;  %v7726_v40 = vld [vmem:[%s11236_s0 + $0x88] sm:$0xff]   ;;  %32 = vst.msk [vmem:[#allocation2 + $0x48] sm:$0xff] %vm22_vm3, %v7555_v41 }
   0xd   :  { %7153 = vmatmul.mubr.msk.bf16.vlgmr.msra.gmra.mxu0 %vm1446_vm2, %v7418_v8  ;;  %7281 = vmatmul.mubr.msk.bf16.vlgmr.msra.gmra.mxu1 %vm1446_vm2, %v7419_v9  ;;  %v7449_v39 = vld [vmem:[%s11236_s0 + $0x280] sm:$0xff]   ;;  %33 = vst.msk [vmem:[#allocation2 + $0x50] sm:$0xff] %vm22_vm3, %v7555_v41  ;;  %34 = vst.msk [vmem:[#allocation2 + $0x58] sm:$0xff] %vm22_vm3, %v7555_v41  ;;  %v7451_v42 = vld [vmem:[%s11236_s0 + $0x288] sm:$0xff]  }
   0xe   :  { %7156 = vmatprep.mubr.msk.bf16.mxu0 %vm1446_vm2, %v7420_v10  ;;  %7284 = vmatprep.mubr.msk.bf16.mxu1 %vm1446_vm2, %v7421_v11  ;;  %35 = vst.msk [vmem:[#allocation2 + $0x60] sm:$0xff] %vm22_vm3, %v7555_v41  ;;  %36 = vst.msk [vmem:[#allocation2 + $0x68] sm:$0xff] %vm22_vm3, %v7555_v41  ;;  %v7452_v43 = vld [vmem:[%s11236_s0 + $0x90] sm:$0xff]   ;;  %v7454_v45 = vld [vmem:[%s11236_s0 + $0x98] sm:$0xff]  }
   0xf   :  { %37 = vst.msk [vmem:[#allocation2 + $0x70] sm:$0xff] %vm22_vm3, %v7555_v41  ;;  %38 = vst.msk [vmem:[#allocation2 + $0x78] sm:$0xff] %vm22_vm3, %v7555_v41  ;;  %v7453_v44 = vld [vmem:[%s11236_s0 + $0x290] sm:$0xff]   ;;  %v7455_v46 = vld [vmem:[%s11236_s0 + $0x298] sm:$0xff]  }
  0x10   :  { %39 = vst.msk [vmem:[#allocation2 + $0x80] sm:$0xff] %vm22_vm3, %v7555_v41  ;;  %40 = vst.msk [vmem:[#allocation2 + $0x88] sm:$0xff] %vm22_vm3, %v7555_v41  ;;  %v7456_v47 = vld [vmem:[%s11236_s0 + $0xa0] sm:$0xff]   ;;  %v7458_v49 = vld [vmem:[%s11236_s0 + $0xa8] sm:$0xff]  }
  0x11   :  { %41 = vst.msk [vmem:[#allocation2 + $0x90] sm:$0xff] %vm22_vm3, %v7555_v41  ;;  %42 = vst.msk [vmem:[#allocation2 + $0x98] sm:$0xff] %vm22_vm3, %v7555_v41  ;;  %v7457_v48 = vld [vmem:[%s11236_s0 + $0x2a0] sm:$0xff]   ;;  %v7459_v50 = vld [vmem:[%s11236_s0 + $0x2a8] sm:$0xff]  }
  0x12   :  { %43 = vst.msk [vmem:[#allocation2 + $0xa0] sm:$0xff] %vm22_vm3, %v7555_v41  ;;  %44 = vst.msk [vmem:[#allocation2 + $0xa8] sm:$0xff] %vm22_vm3, %v7555_v41  ;;  %v7460_v51 = vld [vmem:[%s11236_s0 + $0xb0] sm:$0xff]   ;;  %v7462_v53 = vld [vmem:[%s11236_s0 + $0xb8] sm:$0xff]  }
  0x13   :  { %45 = vst.msk [vmem:[#allocation2 + $0xb0] sm:$0xff] %vm22_vm3, %v7555_v41  ;;  %46 = vst.msk [vmem:[#allocation2 + $0xb8] sm:$0xff] %vm22_vm3, %v7555_v41  ;;  %v7461_v52 = vld [vmem:[%s11236_s0 + $0x2b0] sm:$0xff]   ;;  %v7463_v54 = vld [vmem:[%s11236_s0 + $0x2b8] sm:$0xff]  }
  0x14   :  { %47 = vst.msk [vmem:[#allocation2 + $0xc0] sm:$0xff] %vm22_vm3, %v7555_v41  ;;  %48 = vst.msk [vmem:[#allocation2 + $0xc8] sm:$0xff] %vm22_vm3, %v7555_v41  ;;  %v7464_v55 = vld [vmem:[%s11236_s0 + $0xc0] sm:$0xff]   ;;  %v7466_v57 = vld [vmem:[%s11236_s0 + $0xc8] sm:$0xff]  }
  0x15   :  { %7157 = vmatmul.mubr.msk.bf16.gmra.mxu0 %vm1446_vm2, %v7422_v12  ;;  %7285 = vmatmul.mubr.msk.bf16.gmra.mxu1 %vm1446_vm2, %v7423_v13  ;;  %49 = vst.msk [vmem:[#allocation2 + $0xd0] sm:$0xff] %vm22_vm3, %v7555_v41  ;;  %50 = vst.msk [vmem:[#allocation2 + $0xd8] sm:$0xff] %vm22_vm3, %v7555_v41  ;;  %v7465_v56 = vld [vmem:[%s11236_s0 + $0x2c0] sm:$0xff]   ;;  %v7467_v58 = vld [vmem:[%s11236_s0 + $0x2c8] sm:$0xff]  }
  0x16   :  { %7160 = vmatprep.mubr.msk.bf16.mxu0 %vm1446_vm2, %v7424_v14  ;;  %7288 = vmatprep.mubr.msk.bf16.mxu1 %vm1446_vm2, %v7425_v15  ;;  %51 = vst.msk [vmem:[#allocation2 + $0xe0] sm:$0xff] %vm22_vm3, %v7555_v41  ;;  %52 = vst.msk [vmem:[#allocation2 + $0xe8] sm:$0xff] %vm22_vm3, %v7555_v41  ;;  %v7468_v59 = vld [vmem:[%s11236_s0 + $0xd0] sm:$0xff]   ;;  %v7470_v61 = vld [vmem:[%s11236_s0 + $0xd8] sm:$0xff]  }
  0x17   :  { %53 = vst.msk [vmem:[#allocation2 + $0xf0] sm:$0xff] %vm22_vm3, %v7555_v41  ;;  %54 = vst.msk [vmem:[#allocation2 + $0xf8] sm:$0xff] %vm22_vm3, %v7555_v41  ;;  %v7469_v60 = vld [vmem:[%s11236_s0 + $0x2d0] sm:$0xff]   ;;  %v7471_v62 = vld [vmem:[%s11236_s0 + $0x2d8] sm:$0xff]  }
  0x18   :  { %55 = vst.msk [vmem:[#allocation2 + $0x100] sm:$0xff] %vm22_vm3, %v7555_v41  ;;  %56 = vst.msk [vmem:[#allocation2 + $0x108] sm:$0xff] %vm22_vm3, %v7555_v41  ;;  %v7472_v63 = vld [vmem:[%s11236_s0 + $0xe0] sm:$0xff]   ;;  %v7474_v1 = vld [vmem:[%s11236_s0 + $0xe8] sm:$0xff]  }
  0x19   :  { %57 = vst.msk [vmem:[#allocation2 + $0x110] sm:$0xff] %vm22_vm3, %v7555_v41  ;;  %58 = vst.msk [vmem:[#allocation2 + $0x118] sm:$0xff] %vm22_vm3, %v7555_v41  ;;  %v7473_v0 = vld [vmem:[%s11236_s0 + $0x2e0] sm:$0xff]   ;;  %v7475_v2 = vld [vmem:[%s11236_s0 + $0x2e8] sm:$0xff]  }
  0x1a   :  { %59 = vst.msk [vmem:[#allocation2 + $0x120] sm:$0xff] %vm22_vm3, %v7555_v41  ;;  %60 = vst.msk [vmem:[#allocation2 + $0x128] sm:$0xff] %vm22_vm3, %v7555_v41  ;;  %v7476_v3 = vld [vmem:[%s11236_s0 + $0xf0] sm:$0xff]   ;;  %v7478_v5 = vld [vmem:[%s11236_s0 + $0xf8] sm:$0xff]  }
  0x1b   :  { %61 = vst.msk [vmem:[#allocation2 + $0x130] sm:$0xff] %vm22_vm3, %v7555_v41  ;;  %62 = vst.msk [vmem:[#allocation2 + $0x138] sm:$0xff] %vm22_vm3, %v7555_v41  ;;  %v7477_v4 = vld [vmem:[%s11236_s0 + $0x2f0] sm:$0xff]   ;;  %v7479_v6 = vld [vmem:[%s11236_s0 + $0x2f8] sm:$0xff]  }
  0x1c   :  { %63 = vst.msk [vmem:[#allocation2 + $0x140] sm:$0xff] %vm22_vm3, %v7555_v41  ;;  %64 = vst.msk [vmem:[#allocation2 + $0x148] sm:$0xff] %vm22_vm3, %v7555_v41  ;;  %v7480_v7 = vld [vmem:[%s11236_s0 + $0x100] sm:$0xff]   ;;  %v7482_v9 = vld [vmem:[%s11236_s0 + $0x108] sm:$0xff]  }
  0x1d   :  { %7161 = vmatmul.mubr.msk.bf16.gmra.mxu0 %vm1446_vm2, %v7426_v16  ;;  %7289 = vmatmul.mubr.msk.bf16.gmra.mxu1 %vm1446_vm2, %v7427_v17  ;;  %65 = vst.msk [vmem:[#allocation2 + $0x150] sm:$0xff] %vm22_vm3, %v7555_v41  ;;  %66 = vst.msk [vmem:[#allocation2 + $0x158] sm:$0xff] %vm22_vm3, %v7555_v41  ;;  %v7481_v8 = vld [vmem:[%s11236_s0 + $0x300] sm:$0xff]   ;;  %v7483_v10 = vld [vmem:[%s11236_s0 + $0x308] sm:$0xff]  }
  0x1e   :  { %7164 = vmatprep.mubr.msk.bf16.mxu0 %vm1446_vm2, %v7428_v18  ;;  %7292 = vmatprep.mubr.msk.bf16.mxu1 %vm1446_vm2, %v7429_v19  ;;  %67 = vst.msk [vmem:[#allocation2 + $0x160] sm:$0xff] %vm22_vm3, %v7555_v41  ;;  %68 = vst.msk [vmem:[#allocation2 + $0x168] sm:$0xff] %vm22_vm3, %v7555_v41  ;;  %v7484_v11 = vld [vmem:[%s11236_s0 + $0x110] sm:$0xff]   ;;  %v7486_v13 = vld [vmem:[%s11236_s0 + $0x118] sm:$0xff]  }
  0x1f   :  { %69 = vst.msk [vmem:[#allocation2 + $0x170] sm:$0xff] %vm22_vm3, %v7555_v41  ;;  %70 = vst.msk [vmem:[#allocation2 + $0x178] sm:$0xff] %vm22_vm3, %v7555_v41  ;;  %v7485_v12 = vld [vmem:[%s11236_s0 + $0x310] sm:$0xff]   ;;  %v7487_v14 = vld [vmem:[%s11236_s0 + $0x318] sm:$0xff]  }
  0x20   :  { %71 = vst.msk [vmem:[#allocation2 + $0x180] sm:$0xff] %vm22_vm3, %v7555_v41  ;;  %72 = vst.msk [vmem:[#allocation2 + $0x188] sm:$0xff] %vm22_vm3, %v7555_v41  ;;  %v7488_v15 = vld [vmem:[%s11236_s0 + $0x120] sm:$0xff]   ;;  %v7490_v17 = vld [vmem:[%s11236_s0 + $0x128] sm:$0xff]  }
  0x21   :  { %73 = vst.msk [vmem:[#allocation2 + $0x190] sm:$0xff] %vm22_vm3, %v7555_v41  ;;  %74 = vst.msk [vmem:[#allocation2 + $0x198] sm:$0xff] %vm22_vm3, %v7555_v41  ;;  %v7489_v16 = vld [vmem:[%s11236_s0 + $0x320] sm:$0xff]   ;;  %v7491_v18 = vld [vmem:[%s11236_s0 + $0x328] sm:$0xff]  }
  0x22   :  { %75 = vst.msk [vmem:[#allocation2 + $0x1a0] sm:$0xff] %vm22_vm3, %v7555_v41  ;;  %76 = vst.msk [vmem:[#allocation2 + $0x1a8] sm:$0xff] %vm22_vm3, %v7555_v41  ;;  %v7492_v19 = vld [vmem:[%s11236_s0 + $0x130] sm:$0xff]  }
  0x23   :  { %77 = vst.msk [vmem:[#allocation2 + $0x1b0] sm:$0xff] %vm22_vm3, %v7555_v41  ;;  %78 = vst.msk [vmem:[#allocation2 + $0x1b8] sm:$0xff] %vm22_vm3, %v7555_v41 }
  0x24   :  { %79 = vst.msk [vmem:[#allocation2 + $0x1c0] sm:$0xff] %vm22_vm3, %v7555_v41  ;;  %80 = vst.msk [vmem:[#allocation2 + $0x1c8] sm:$0xff] %vm22_vm3, %v7555_v41 }
  0x25   :  { %7165 = vmatmul.mubr.msk.bf16.gmra.mxu0 %vm1446_vm2, %v7430_v20  ;;  %7293 = vmatmul.mubr.msk.bf16.gmra.mxu1 %vm1446_vm2, %v7431_v21  ;;  %81 = vst.msk [vmem:[#allocation2 + $0x1d0] sm:$0xff] %vm22_vm3, %v7555_v41  ;;  %82 = vst.msk [vmem:[#allocation2 + $0x1d8] sm:$0xff] %vm22_vm3, %v7555_v41  ;;  %v7493_v20 = vld [vmem:[%s11236_s0 + $0x330] sm:$0xff]   ;;  %v7494_v21 = vld [vmem:[%s11236_s0 + $0x138] sm:$0xff]  }
  0x26   :  { %7168 = vmatprep.mubr.msk.bf16.mxu0 %vm1446_vm2, %v7432_v22  ;;  %7296 = vmatprep.mubr.msk.bf16.mxu1 %vm1446_vm2, %v7433_v23  ;;  %83 = vst.msk [vmem:[#allocation2 + $0x1e0] sm:$0xff] %vm22_vm3, %v7555_v41  ;;  %84 = vst.msk [vmem:[#allocation2 + $0x1e8] sm:$0xff] %vm22_vm3, %v7555_v41  ;;  %v7495_v22 = vld [vmem:[%s11236_s0 + $0x338] sm:$0xff]   ;;  %v7496_v23 = vld [vmem:[%s11236_s0 + $0x140] sm:$0xff]  }
  0x27   :  { %85 = vst.msk [vmem:[#allocation2 + $0x1f0] sm:$0xff] %vm22_vm3, %v7555_v41  ;;  %86 = vst.msk [vmem:[#allocation2 + $0x1f8] sm:$0xff] %vm22_vm3, %v7555_v41 }
  0x28   :  { %87 = vst.msk [vmem:[#allocation2 + $0x200] sm:$0xff] %vm22_vm3, %v7555_v41  ;;  %88 = vst.msk [vmem:[#allocation2 + $0x208] sm:$0xff] %vm22_vm3, %v7555_v41 }
  0x29   :  { %89 = vst.msk [vmem:[#allocation2 + $0x210] sm:$0xff] %vm22_vm3, %v7555_v41  ;;  %90 = vst.msk [vmem:[#allocation2 + $0x218] sm:$0xff] %vm22_vm3, %v7555_v41 }
  0x2a   :  { %91 = vst.msk [vmem:[#allocation2 + $0x220] sm:$0xff] %vm22_vm3, %v7555_v41  ;;  %92 = vst.msk [vmem:[#allocation2 + $0x228] sm:$0xff] %vm22_vm3, %v7555_v41 }
  0x2b   :  { %93 = vst.msk [vmem:[#allocation2 + $0x230] sm:$0xff] %vm22_vm3, %v7555_v41  ;;  %94 = vst.msk [vmem:[#allocation2 + $0x238] sm:$0xff] %vm22_vm3, %v7555_v41 }
  0x2c   :  { %95 = vst.msk [vmem:[#allocation2 + $0x240] sm:$0xff] %vm22_vm3, %v7555_v41  ;;  %96 = vst.msk [vmem:[#allocation2 + $0x248] sm:$0xff] %vm22_vm3, %v7555_v41 }
  0x2d   :  { %7169 = vmatmul.mubr.msk.bf16.gmra.mxu0 %vm1446_vm2, %v7434_v24  ;;  %7297 = vmatmul.mubr.msk.bf16.gmra.mxu1 %vm1446_vm2, %v7435_v25  ;;  %97 = vst.msk [vmem:[#allocation2 + $0x250] sm:$0xff] %vm22_vm3, %v7555_v41  ;;  %98 = vst.msk [vmem:[#allocation2 + $0x258] sm:$0xff] %vm22_vm3, %v7555_v41  ;;  %v7497_v24 = vld [vmem:[%s11236_s0 + $0x340] sm:$0xff]   ;;  %v7498_v25 = vld [vmem:[%s11236_s0 + $0x148] sm:$0xff]  }
  0x2e   :  { %7172 = vmatprep.mubr.msk.bf16.mxu0 %vm1446_vm2, %v7436_v26  ;;  %7300 = vmatprep.mubr.msk.bf16.mxu1 %vm1446_vm2, %v7437_v27  ;;  %99 = vst.msk [vmem:[#allocation2 + $0x260] sm:$0xff] %vm22_vm3, %v7555_v41  ;;  %100 = vst.msk [vmem:[#allocation2 + $0x268] sm:$0xff] %vm22_vm3, %v7555_v41  ;;  %v7499_v26 = vld [vmem:[%s11236_s0 + $0x348] sm:$0xff]   ;;  %v7500_v27 = vld [vmem:[%s11236_s0 + $0x150] sm:$0xff]  }
  0x2f   :  { %101 = vst.msk [vmem:[#allocation2 + $0x270] sm:$0xff] %vm22_vm3, %v7555_v41  ;;  %102 = vst.msk [vmem:[#allocation2 + $0x278] sm:$0xff] %vm22_vm3, %v7555_v41 }
  0x30   :  { %103 = vst.msk [vmem:[#allocation2 + $0x280] sm:$0xff] %vm22_vm3, %v7555_v41  ;;  %104 = vst.msk [vmem:[#allocation2 + $0x288] sm:$0xff] %vm22_vm3, %v7555_v41 }
  0x31   :  { %105 = vst.msk [vmem:[#allocation2 + $0x290] sm:$0xff] %vm22_vm3, %v7555_v41  ;;  %106 = vst.msk [vmem:[#allocation2 + $0x298] sm:$0xff] %vm22_vm3, %v7555_v41 }
  0x32   :  { %107 = vst.msk [vmem:[#allocation2 + $0x2a0] sm:$0xff] %vm22_vm3, %v7555_v41  ;;  %108 = vst.msk [vmem:[#allocation2 + $0x2a8] sm:$0xff] %vm22_vm3, %v7555_v41 }
  0x33   :  { %109 = vst.msk [vmem:[#allocation2 + $0x2b0] sm:$0xff] %vm22_vm3, %v7555_v41  ;;  %110 = vst.msk [vmem:[#allocation2 + $0x2b8] sm:$0xff] %vm22_vm3, %v7555_v41 }
  0x34   :  { %111 = vst.msk [vmem:[#allocation2 + $0x2c0] sm:$0xff] %vm22_vm3, %v7555_v41  ;;  %112 = vst.msk [vmem:[#allocation2 + $0x2c8] sm:$0xff] %vm22_vm3, %v7555_v41 }
  0x35   :  { %7173 = vmatmul.mubr.msk.bf16.gmra.mxu0 %vm1446_vm2, %v7438_v28  ;;  %7301 = vmatmul.mubr.msk.bf16.gmra.mxu1 %vm1446_vm2, %v7439_v29  ;;  %113 = vst.msk [vmem:[#allocation2 + $0x2d0] sm:$0xff] %vm22_vm3, %v7555_v41  ;;  %114 = vst.msk [vmem:[#allocation2 + $0x2d8] sm:$0xff] %vm22_vm3, %v7555_v41  ;;  %v7501_v28 = vld [vmem:[%s11236_s0 + $0x350] sm:$0xff]   ;;  %v7502_v29 = vld [vmem:[%s11236_s0 + $0x158] sm:$0xff]  }
  0x36   :  { %7176 = vmatprep.mubr.msk.bf16.mxu0 %vm1446_vm2, %v7440_v30  ;;  %7304 = vmatprep.mubr.msk.bf16.mxu1 %vm1446_vm2, %v7441_v31  ;;  %115 = vst.msk [vmem:[#allocation2 + $0x2e0] sm:$0xff] %vm22_vm3, %v7555_v41  ;;  %116 = vst.msk [vmem:[#allocation2 + $0x2e8] sm:$0xff] %vm22_vm3, %v7555_v41  ;;  %v7503_v30 = vld [vmem:[%s11236_s0 + $0x358] sm:$0xff]   ;;  %v7504_v31 = vld [vmem:[%s11236_s0 + $0x160] sm:$0xff]  }
  0x37   :  { %117 = vst.msk [vmem:[#allocation2 + $0x2f0] sm:$0xff] %vm22_vm3, %v7555_v41  ;;  %118 = vst.msk [vmem:[#allocation2 + $0x2f8] sm:$0xff] %vm22_vm3, %v7555_v41 }
  0x38   :  { %119 = vst.msk [vmem:[#allocation2 + $0x300] sm:$0xff] %vm22_vm3, %v7555_v41  ;;  %120 = vst.msk [vmem:[#allocation2 + $0x308] sm:$0xff] %vm22_vm3, %v7555_v41 }
  0x39   :  { %121 = vst.msk [vmem:[#allocation2 + $0x310] sm:$0xff] %vm22_vm3, %v7555_v41  ;;  %122 = vst.msk [vmem:[#allocation2 + $0x318] sm:$0xff] %vm22_vm3, %v7555_v41 }
  0x3a   :  { %123 = vst.msk [vmem:[#allocation2 + $0x320] sm:$0xff] %vm22_vm3, %v7555_v41  ;;  %124 = vst.msk [vmem:[#allocation2 + $0x328] sm:$0xff] %vm22_vm3, %v7555_v41 }
  0x3b   :  { %125 = vst.msk [vmem:[#allocation2 + $0x330] sm:$0xff] %vm22_vm3, %v7555_v41  ;;  %126 = vst.msk [vmem:[#allocation2 + $0x338] sm:$0xff] %vm22_vm3, %v7555_v41 }
  0x3c   :  { %127 = vst.msk [vmem:[#allocation2 + $0x340] sm:$0xff] %vm22_vm3, %v7555_v41  ;;  %128 = vst.msk [vmem:[#allocation2 + $0x348] sm:$0xff] %vm22_vm3, %v7555_v41 }
  0x3d   :  { %7177 = vmatmul.mubr.msk.bf16.gmra.mxu0 %vm1446_vm2, %v7442_v32  ;;  %7305 = vmatmul.mubr.msk.bf16.gmra.mxu1 %vm1446_vm2, %v7443_v33  ;;  %129 = vst.msk [vmem:[#allocation2 + $0x350] sm:$0xff] %vm22_vm3, %v7555_v41  ;;  %130 = vst.msk [vmem:[#allocation2 + $0x358] sm:$0xff] %vm22_vm3, %v7555_v41  ;;  %v7505_v32 = vld [vmem:[%s11236_s0 + $0x360] sm:$0xff]   ;;  %v7506_v33 = vld [vmem:[%s11236_s0 + $0x168] sm:$0xff]  }
  0x3e   :  { %7180 = vmatprep.mubr.msk.bf16.mxu0 %vm1446_vm2, %v7444_v34  ;;  %7308 = vmatprep.mubr.msk.bf16.mxu1 %vm1446_vm2, %v7445_v35  ;;  %131 = vst.msk [vmem:[#allocation2 + $0x360] sm:$0xff] %vm22_vm3, %v7555_v41  ;;  %132 = vst.msk [vmem:[#allocation2 + $0x368] sm:$0xff] %vm22_vm3, %v7555_v41  ;;  %v7507_v34 = vld [vmem:[%s11236_s0 + $0x368] sm:$0xff]   ;;  %v7508_v35 = vld [vmem:[%s11236_s0 + $0x170] sm:$0xff]  }
  0x3f   :  { %133 = vst.msk [vmem:[#allocation2 + $0x370] sm:$0xff] %vm22_vm3, %v7555_v41  ;;  %134 = vst.msk [vmem:[#allocation2 + $0x378] sm:$0xff] %vm22_vm3, %v7555_v41 }
  0x40   :  { %135 = vst.msk [vmem:[#allocation2 + $0x380] sm:$0xff] %vm22_vm3, %v7555_v41  ;;  %136 = vst.msk [vmem:[#allocation2 + $0x388] sm:$0xff] %vm22_vm3, %v7555_v41 }
  0x41   :  { %137 = vst.msk [vmem:[#allocation2 + $0x390] sm:$0xff] %vm22_vm3, %v7555_v41  ;;  %138 = vst.msk [vmem:[#allocation2 + $0x398] sm:$0xff] %vm22_vm3, %v7555_v41 }
  0x42   :  { %139 = vst.msk [vmem:[#allocation2 + $0x3a0] sm:$0xff] %vm22_vm3, %v7555_v41  ;;  %140 = vst.msk [vmem:[#allocation2 + $0x3a8] sm:$0xff] %vm22_vm3, %v7555_v41 }
  0x43   :  { %141 = vst.msk [vmem:[#allocation2 + $0x3b0] sm:$0xff] %vm22_vm3, %v7555_v41  ;;  %142 = vst.msk [vmem:[#allocation2 + $0x3b8] sm:$0xff] %vm22_vm3, %v7555_v41 }
  0x44   :  { %143 = vst.msk [vmem:[#allocation2 + $0x3c0] sm:$0xff] %vm22_vm3, %v7555_v41  ;;  %144 = vst.msk [vmem:[#allocation2 + $0x3c8] sm:$0xff] %vm22_vm3, %v7555_v41 }
  0x45   :  { %7181 = vmatmul.mubr.msk.bf16.gmra.mxu0 %vm1446_vm2, %v7446_v36  ;;  %7309 = vmatmul.mubr.msk.bf16.gmra.mxu1 %vm1446_vm2, %v7447_v37  ;;  %145 = vst.msk [vmem:[#allocation2 + $0x3d0] sm:$0xff] %vm22_vm3, %v7555_v41  ;;  %146 = vst.msk [vmem:[#allocation2 + $0x3d8] sm:$0xff] %vm22_vm3, %v7555_v41  ;;  %v7509_v36 = vld [vmem:[%s11236_s0 + $0x370] sm:$0xff]   ;;  %v7510_v37 = vld [vmem:[%s11236_s0 + $0x178] sm:$0xff]  }
  0x46   :  { %7184 = vmatprep.mubr.msk.bf16.mxu0 %vm1446_vm2, %v7448_v38  ;;  %7312 = vmatprep.mubr.msk.bf16.mxu1 %vm1446_vm2, %v7449_v39  ;;  %147 = vst.msk [vmem:[#allocation2 + $0x3e0] sm:$0xff] %vm22_vm3, %v7555_v41  ;;  %148 = vst.msk [vmem:[#allocation2 + $0x3e8] sm:$0xff] %vm22_vm3, %v7555_v41  ;;  %v7511_v38 = vld [vmem:[%s11236_s0 + $0x378] sm:$0xff]   ;;  %v7512_v39 = vld [vmem:[%s11236_s0 + $0x180] sm:$0xff]  }
  0x47   :  { %149 = vst.msk [vmem:[#allocation2 + $0x3f0] sm:$0xff] %vm22_vm3, %v7555_v41  ;;  %150 = vst.msk [vmem:[#allocation2 + $0x3f8] sm:$0xff] %vm22_vm3, %v7555_v41 }
  0x48   :  { %151 = vst.msk [vmem:[#allocation2 + $0x400] sm:$0xff] %vm22_vm3, %v7555_v41  ;;  %152 = vst.msk [vmem:[#allocation2 + $0x408] sm:$0xff] %vm22_vm3, %v7555_v41 }
  0x49   :  { %153 = vst.msk [vmem:[#allocation2 + $0x410] sm:$0xff] %vm22_vm3, %v7555_v41  ;;  %154 = vst.msk [vmem:[#allocation2 + $0x418] sm:$0xff] %vm22_vm3, %v7555_v41 }
  0x4a   :  { %155 = vst.msk [vmem:[#allocation2 + $0x420] sm:$0xff] %vm22_vm3, %v7555_v41  ;;  %156 = vst.msk [vmem:[#allocation2 + $0x428] sm:$0xff] %vm22_vm3, %v7555_v41 }
  0x4b   :  { %157 = vst.msk [vmem:[#allocation2 + $0x430] sm:$0xff] %vm22_vm3, %v7555_v41  ;;  %158 = vst.msk [vmem:[#allocation2 + $0x438] sm:$0xff] %vm22_vm3, %v7555_v41 }
  0x4c   :  { %159 = vst.msk [vmem:[#allocation2 + $0x440] sm:$0xff] %vm22_vm3, %v7555_v41  ;;  %160 = vst.msk [vmem:[#allocation2 + $0x448] sm:$0xff] %vm22_vm3, %v7555_v41 }
  0x4d   :  { %161 = vst.msk [vmem:[#allocation2 + $0x450] sm:$0xff] %vm22_vm3, %v7555_v41  ;;  %162 = vst.msk [vmem:[#allocation2 + $0x458] sm:$0xff] %vm22_vm3, %v7555_v41  ;;  %7185 = vmatmul.mubr.msk.bf16.gmra.mxu0 %vm1446_vm2, %v7726_v40  ;;  %7313 = vmatmul.mubr.msk.bf16.gmra.mxu1 %vm1446_vm2, %v7451_v42  ;;  %v7513_v40 = vld [vmem:[%s11236_s0 + $0x380] sm:$0xff]   ;;  %v7515_v42 = vld [vmem:[%s11236_s0 + $0x388] sm:$0xff]  }
  0x4e   :  { %163 = vst.msk [vmem:[#allocation2 + $0x460] sm:$0xff] %vm22_vm3, %v7555_v41  ;;  %164 = vst.msk [vmem:[#allocation2 + $0x468] sm:$0xff] %vm22_vm3, %v7555_v41  ;;  %7188 = vmatprep.mubr.msk.bf16.mxu0 %vm1446_vm2, %v7452_v43  ;;  %7316 = vmatprep.mubr.msk.bf16.mxu1 %vm1446_vm2, %v7453_v44  ;;  %v7516_v43 = vld [vmem:[%s11236_s0 + $0x190] sm:$0xff]  }
  0x4f   :  { %165 = vst.msk [vmem:[#allocation2 + $0x470] sm:$0xff] %vm22_vm3, %v7555_v41  ;;  %166 = vst.msk [vmem:[#allocation2 + $0x478] sm:$0xff] %vm22_vm3, %v7555_v41  ;;  %v7517_v44 = vld [vmem:[%s11236_s0 + $0x390] sm:$0xff]  }
  0x50   :  { %167 = vst.msk [vmem:[#allocation2 + $0x480] sm:$0xff] %vm22_vm3, %v7555_v41  ;;  %168 = vst.msk [vmem:[#allocation2 + $0x488] sm:$0xff] %vm22_vm3, %v7555_v41 }
  0x51   :  { %169 = vst.msk [vmem:[#allocation2 + $0x490] sm:$0xff] %vm22_vm3, %v7555_v41  ;;  %170 = vst.msk [vmem:[#allocation2 + $0x498] sm:$0xff] %vm22_vm3, %v7555_v41 }
  0x52   :  { %171 = vst.msk [vmem:[#allocation2 + $0x4a0] sm:$0xff] %vm22_vm3, %v7555_v41  ;;  %172 = vst.msk [vmem:[#allocation2 + $0x4a8] sm:$0xff] %vm22_vm3, %v7555_v41 }
  0x53   :  { %173 = vst.msk [vmem:[#allocation2 + $0x4b0] sm:$0xff] %vm22_vm3, %v7555_v41  ;;  %174 = vst.msk [vmem:[#allocation2 + $0x4b8] sm:$0xff] %vm22_vm3, %v7555_v41 }
  0x54   :  { %175 = vst.msk [vmem:[#allocation2 + $0x4c0] sm:$0xff] %vm22_vm3, %v7555_v41  ;;  %176 = vst.msk [vmem:[#allocation2 + $0x4c8] sm:$0xff] %vm22_vm3, %v7555_v41 }
  0x55   :  { %177 = vst.msk [vmem:[#allocation2 + $0x4d0] sm:$0xff] %vm22_vm3, %v7555_v41  ;;  %178 = vst.msk [vmem:[#allocation2 + $0x4d8] sm:$0xff] %vm22_vm3, %v7555_v41  ;;  %7189 = vmatmul.mubr.msk.bf16.gmra.mxu0 %vm1446_vm2, %v7454_v45  ;;  %7317 = vmatmul.mubr.msk.bf16.gmra.mxu1 %vm1446_vm2, %v7455_v46  ;;  %v285_v45 = vld [vmem:[#allocation2 + $0x10] sm:$0xff] }
  0x56   :  { %179 = vst.msk [vmem:[#allocation2 + $0x4e0] sm:$0xff] %vm22_vm3, %v7555_v41  ;;  %180 = vst.msk [vmem:[#allocation2 + $0x4e8] sm:$0xff] %vm22_vm3, %v7555_v41  ;;  %7192 = vmatprep.mubr.msk.bf16.mxu0 %vm1446_vm2, %v7456_v47  ;;  %7320 = vmatprep.mubr.msk.bf16.mxu1 %vm1446_vm2, %v7457_v48  ;;  %v413_v46 = vld [vmem:[#allocation2 + $0x410] sm:$0xff] }
  0x57   :  { %181 = vst.msk [vmem:[#allocation2 + $0x4f0] sm:$0xff] %vm22_vm3, %v7555_v41  ;;  %182 = vst.msk [vmem:[#allocation2 + $0x4f8] sm:$0xff] %vm22_vm3, %v7555_v41 }
  0x58   :  { %183 = vst.msk [vmem:[#allocation2 + $0x500] sm:$0xff] %vm22_vm3, %v7555_v41  ;;  %184 = vst.msk [vmem:[#allocation2 + $0x508] sm:$0xff] %vm22_vm3, %v7555_v41 }
  0x59   :  { %185 = vst.msk [vmem:[#allocation2 + $0x510] sm:$0xff] %vm22_vm3, %v7555_v41  ;;  %186 = vst.msk [vmem:[#allocation2 + $0x518] sm:$0xff] %vm22_vm3, %v7555_v41 }
  0x5a   :  { %187 = vst.msk [vmem:[#allocation2 + $0x520] sm:$0xff] %vm22_vm3, %v7555_v41  ;;  %188 = vst.msk [vmem:[#allocation2 + $0x528] sm:$0xff] %vm22_vm3, %v7555_v41 }
  0x5b   :  { %189 = vst.msk [vmem:[#allocation2 + $0x530] sm:$0xff] %vm22_vm3, %v7555_v41  ;;  %190 = vst.msk [vmem:[#allocation2 + $0x538] sm:$0xff] %vm22_vm3, %v7555_v41 }
  0x5c   :  { %191 = vst.msk [vmem:[#allocation2 + $0x540] sm:$0xff] %vm22_vm3, %v7555_v41  ;;  %192 = vst.msk [vmem:[#allocation2 + $0x548] sm:$0xff] %vm22_vm3, %v7555_v41 }
  0x5d   :  { %193 = vst.msk [vmem:[#allocation2 + $0x550] sm:$0xff] %vm22_vm3, %v7555_v41  ;;  %194 = vst.msk [vmem:[#allocation2 + $0x558] sm:$0xff] %vm22_vm3, %v7555_v41  ;;  %7193 = vmatmul.mubr.msk.bf16.gmra.mxu0 %vm1446_vm2, %v7458_v49  ;;  %7321 = vmatmul.mubr.msk.bf16.gmra.mxu1 %vm1446_vm2, %v7459_v50  ;;  %v283_v49 = vld [vmem:[#allocation2] sm:$0xff] }
  0x5e   :  { %195 = vst.msk [vmem:[#allocation2 + $0x560] sm:$0xff] %vm22_vm3, %v7555_v41  ;;  %196 = vst.msk [vmem:[#allocation2 + $0x568] sm:$0xff] %vm22_vm3, %v7555_v41  ;;  %7196 = vmatprep.mubr.msk.bf16.mxu0 %vm1446_vm2, %v7460_v51  ;;  %7324 = vmatprep.mubr.msk.bf16.mxu1 %vm1446_vm2, %v7461_v52  ;;  %v411_v50 = vld [vmem:[#allocation2 + $0x400] sm:$0xff] }
  0x5f   :  { %197 = vst.msk [vmem:[#allocation2 + $0x570] sm:$0xff] %vm22_vm3, %v7555_v41  ;;  %198 = vst.msk [vmem:[#allocation2 + $0x578] sm:$0xff] %vm22_vm3, %v7555_v41 }
  0x60   :  { %199 = vst.msk [vmem:[#allocation2 + $0x580] sm:$0xff] %vm22_vm3, %v7555_v41  ;;  %200 = vst.msk [vmem:[#allocation2 + $0x588] sm:$0xff] %vm22_vm3, %v7555_v41 }
  0x61   :  { %201 = vst.msk [vmem:[#allocation2 + $0x590] sm:$0xff] %vm22_vm3, %v7555_v41  ;;  %202 = vst.msk [vmem:[#allocation2 + $0x598] sm:$0xff] %vm22_vm3, %v7555_v41 }
  0x62   :  { %203 = vst.msk [vmem:[#allocation2 + $0x5a0] sm:$0xff] %vm22_vm3, %v7555_v41  ;;  %204 = vst.msk [vmem:[#allocation2 + $0x5a8] sm:$0xff] %vm22_vm3, %v7555_v41 }
  0x63   :  { %205 = vst.msk [vmem:[#allocation2 + $0x5b0] sm:$0xff] %vm22_vm3, %v7555_v41  ;;  %206 = vst.msk [vmem:[#allocation2 + $0x5b8] sm:$0xff] %vm22_vm3, %v7555_v41 }
  0x64   :  { %207 = vst.msk [vmem:[#allocation2 + $0x5c0] sm:$0xff] %vm22_vm3, %v7555_v41  ;;  %208 = vst.msk [vmem:[#allocation2 + $0x5c8] sm:$0xff] %vm22_vm3, %v7555_v41 }
  0x65   :  { %209 = vst.msk [vmem:[#allocation2 + $0x5d0] sm:$0xff] %vm22_vm3, %v7555_v41  ;;  %210 = vst.msk [vmem:[#allocation2 + $0x5d8] sm:$0xff] %vm22_vm3, %v7555_v41  ;;  %7197 = vmatmul.mubr.msk.bf16.gmra.mxu0 %vm1446_vm2, %v7462_v53  ;;  %7325 = vmatmul.mubr.msk.bf16.gmra.mxu1 %vm1446_vm2, %v7463_v54 }
  0x66   :  { %211 = vst.msk [vmem:[#allocation2 + $0x5e0] sm:$0xff] %vm22_vm3, %v7555_v41  ;;  %212 = vst.msk [vmem:[#allocation2 + $0x5e8] sm:$0xff] %vm22_vm3, %v7555_v41  ;;  %7200 = vmatprep.mubr.msk.bf16.mxu0 %vm1446_vm2, %v7464_v55  ;;  %7328 = vmatprep.mubr.msk.bf16.mxu1 %vm1446_vm2, %v7465_v56  ;;  %v286_v55 = vld [vmem:[#allocation2 + $0x18] sm:$0xff] }
  0x67   :  { %213 = vst.msk [vmem:[#allocation2 + $0x5f0] sm:$0xff] %vm22_vm3, %v7555_v41  ;;  %214 = vst.msk [vmem:[#allocation2 + $0x5f8] sm:$0xff] %vm22_vm3, %v7555_v41  ;;  %v414_v56 = vld [vmem:[#allocation2 + $0x418] sm:$0xff] }
  0x68   :  { %215 = vst.msk [vmem:[#allocation2 + $0x600] sm:$0xff] %vm22_vm3, %v7555_v41  ;;  %216 = vst.msk [vmem:[#allocation2 + $0x608] sm:$0xff] %vm22_vm3, %v7555_v41 }
  0x69   :  { %217 = vst.msk [vmem:[#allocation2 + $0x610] sm:$0xff] %vm22_vm3, %v7555_v41  ;;  %218 = vst.msk [vmem:[#allocation2 + $0x618] sm:$0xff] %vm22_vm3, %v7555_v41 }
  0x6a   :  { %219 = vst.msk [vmem:[#allocation2 + $0x620] sm:$0xff] %vm22_vm3, %v7555_v41  ;;  %220 = vst.msk [vmem:[#allocation2 + $0x628] sm:$0xff] %vm22_vm3, %v7555_v41 }
  0x6b   :  { %221 = vst.msk [vmem:[#allocation2 + $0x630] sm:$0xff] %vm22_vm3, %v7555_v41  ;;  %222 = vst.msk [vmem:[#allocation2 + $0x638] sm:$0xff] %vm22_vm3, %v7555_v41 }
  0x6c   :  { %223 = vst.msk [vmem:[#allocation2 + $0x640] sm:$0xff] %vm22_vm3, %v7555_v41  ;;  %224 = vst.msk [vmem:[#allocation2 + $0x648] sm:$0xff] %vm22_vm3, %v7555_v41 }
  0x6d   :  { %225 = vst.msk [vmem:[#allocation2 + $0x650] sm:$0xff] %vm22_vm3, %v7555_v41  ;;  %226 = vst.msk [vmem:[#allocation2 + $0x658] sm:$0xff] %vm22_vm3, %v7555_v41  ;;  %7201 = vmatmul.mubr.msk.bf16.gmra.mxu0 %vm1446_vm2, %v7466_v57  ;;  %7329 = vmatmul.mubr.msk.bf16.gmra.mxu1 %vm1446_vm2, %v7467_v58 }
  0x6e   :  { %227 = vst.msk [vmem:[#allocation2 + $0x660] sm:$0xff] %vm22_vm3, %v7555_v41  ;;  %228 = vst.msk [vmem:[#allocation2 + $0x668] sm:$0xff] %vm22_vm3, %v7555_v41  ;;  %7204 = vmatprep.mubr.msk.bf16.mxu0 %vm1446_vm2, %v7468_v59  ;;  %7332 = vmatprep.mubr.msk.bf16.mxu1 %vm1446_vm2, %v7469_v60  ;;  %v284_v59 = vld [vmem:[#allocation2 + $0x8] sm:$0xff] }
  0x6f   :  { %229 = vst.msk [vmem:[#allocation2 + $0x670] sm:$0xff] %vm22_vm3, %v7555_v41  ;;  %230 = vst.msk [vmem:[#allocation2 + $0x678] sm:$0xff] %vm22_vm3, %v7555_v41 }
  0x70   :  { %231 = vst.msk [vmem:[#allocation2 + $0x680] sm:$0xff] %vm22_vm3, %v7555_v41  ;;  %232 = vst.msk [vmem:[#allocation2 + $0x688] sm:$0xff] %vm22_vm3, %v7555_v41 }
  0x71   :  { %233 = vst.msk [vmem:[#allocation2 + $0x690] sm:$0xff] %vm22_vm3, %v7555_v41  ;;  %234 = vst.msk [vmem:[#allocation2 + $0x698] sm:$0xff] %vm22_vm3, %v7555_v41 }
  0x72   :  { %235 = vst.msk [vmem:[#allocation2 + $0x6a0] sm:$0xff] %vm22_vm3, %v7555_v41  ;;  %236 = vst.msk [vmem:[#allocation2 + $0x6a8] sm:$0xff] %vm22_vm3, %v7555_v41 }
  0x73   :  { %237 = vst.msk [vmem:[#allocation2 + $0x6b0] sm:$0xff] %vm22_vm3, %v7555_v41  ;;  %238 = vst.msk [vmem:[#allocation2 + $0x6b8] sm:$0xff] %vm22_vm3, %v7555_v41 }
  0x74   :  { %239 = vst.msk [vmem:[#allocation2 + $0x6c0] sm:$0xff] %vm22_vm3, %v7555_v41  ;;  %240 = vst.msk [vmem:[#allocation2 + $0x6c8] sm:$0xff] %vm22_vm3, %v7555_v41 }
  0x75   :  { %241 = vst.msk [vmem:[#allocation2 + $0x6d0] sm:$0xff] %vm22_vm3, %v7555_v41  ;;  %242 = vst.msk [vmem:[#allocation2 + $0x6d8] sm:$0xff] %vm22_vm3, %v7555_v41  ;;  %7205 = vmatmul.mubr.msk.bf16.gmra.mxu0 %vm1446_vm2, %v7470_v61  ;;  %7333 = vmatmul.mubr.msk.bf16.gmra.mxu1 %vm1446_vm2, %v7471_v62  ;;  %v412_v62 = vld [vmem:[#allocation2 + $0x408] sm:$0xff] }
  0x76   :  { %243 = vst.msk [vmem:[#allocation2 + $0x6e0] sm:$0xff] %vm22_vm3, %v7555_v41  ;;  %244 = vst.msk [vmem:[#allocation2 + $0x6e8] sm:$0xff] %vm22_vm3, %v7555_v41  ;;  %7208 = vmatprep.mubr.msk.bf16.mxu0 %vm1446_vm2, %v7472_v63  ;;  %7336 = vmatprep.mubr.msk.bf16.mxu1 %vm1446_vm2, %v7473_v0  ;;  %v7518_v63 = vld [vmem:[%s11236_s0 + $0x198] sm:$0xff]  }
  0x77   :  { %245 = vst.msk [vmem:[#allocation2 + $0x6f0] sm:$0xff] %vm22_vm3, %v7555_v41  ;;  %246 = vst.msk [vmem:[#allocation2 + $0x6f8] sm:$0xff] %vm22_vm3, %v7555_v41  ;;  %v7519_v0 = vld [vmem:[%s11236_s0 + $0x398] sm:$0xff]  }
  0x78   :  { %247 = vst.msk [vmem:[#allocation2 + $0x700] sm:$0xff] %vm22_vm3, %v7555_v41  ;;  %248 = vst.msk [vmem:[#allocation2 + $0x708] sm:$0xff] %vm22_vm3, %v7555_v41 }
  0x79   :  { %249 = vst.msk [vmem:[#allocation2 + $0x710] sm:$0xff] %vm22_vm3, %v7555_v41  ;;  %250 = vst.msk [vmem:[#allocation2 + $0x718] sm:$0xff] %vm22_vm3, %v7555_v41 }
  0x7a   :  { %251 = vst.msk [vmem:[#allocation2 + $0x720] sm:$0xff] %vm22_vm3, %v7555_v41  ;;  %252 = vst.msk [vmem:[#allocation2 + $0x728] sm:$0xff] %vm22_vm3, %v7555_v41 }
  0x7b   :  { %253 = vst.msk [vmem:[#allocation2 + $0x730] sm:$0xff] %vm22_vm3, %v7555_v41  ;;  %254 = vst.msk [vmem:[#allocation2 + $0x738] sm:$0xff] %vm22_vm3, %v7555_v41 }
  0x7c   :  { %255 = vst.msk [vmem:[#allocation2 + $0x740] sm:$0xff] %vm22_vm3, %v7555_v41  ;;  %256 = vst.msk [vmem:[#allocation2 + $0x748] sm:$0xff] %vm22_vm3, %v7555_v41 }
  0x7d   :  { %257 = vst.msk [vmem:[#allocation2 + $0x750] sm:$0xff] %vm22_vm3, %v7555_v41  ;;  %258 = vst.msk [vmem:[#allocation2 + $0x758] sm:$0xff] %vm22_vm3, %v7555_v41  ;;  %7209 = vmatmul.mubr.msk.bf16.gmra.mxu0 %vm1446_vm2, %v7474_v1  ;;  %7337 = vmatmul.mubr.msk.bf16.gmra.mxu1 %vm1446_vm2, %v7475_v2 }
  0x7e   :  { %259 = vst.msk [vmem:[#allocation2 + $0x760] sm:$0xff] %vm22_vm3, %v7555_v41  ;;  %260 = vst.msk [vmem:[#allocation2 + $0x768] sm:$0xff] %vm22_vm3, %v7555_v41  ;;  %7212 = vmatprep.mubr.msk.bf16.mxu0 %vm1446_vm2, %v7476_v3  ;;  %7340 = vmatprep.mubr.msk.bf16.mxu1 %vm1446_vm2, %v7477_v4  ;;  %v7520_v3 = vld [vmem:[%s11236_s0 + $0x1a0] sm:$0xff]  }
  0x7f   :  { %261 = vst.msk [vmem:[#allocation2 + $0x770] sm:$0xff] %vm22_vm3, %v7555_v41  ;;  %262 = vst.msk [vmem:[#allocation2 + $0x778] sm:$0xff] %vm22_vm3, %v7555_v41  ;;  %v7521_v4 = vld [vmem:[%s11236_s0 + $0x3a0] sm:$0xff]  }
  0x80   :  { %263 = vst.msk [vmem:[#allocation2 + $0x780] sm:$0xff] %vm22_vm3, %v7555_v41  ;;  %264 = vst.msk [vmem:[#allocation2 + $0x788] sm:$0xff] %vm22_vm3, %v7555_v41 }
  0x81   :  { %265 = vst.msk [vmem:[#allocation2 + $0x790] sm:$0xff] %vm22_vm3, %v7555_v41  ;;  %266 = vst.msk [vmem:[#allocation2 + $0x798] sm:$0xff] %vm22_vm3, %v7555_v41 }
  0x82   :  { %267 = vst.msk [vmem:[#allocation2 + $0x7a0] sm:$0xff] %vm22_vm3, %v7555_v41  ;;  %268 = vst.msk [vmem:[#allocation2 + $0x7a8] sm:$0xff] %vm22_vm3, %v7555_v41 }
  0x83   :  { %269 = vst.msk [vmem:[#allocation2 + $0x7b0] sm:$0xff] %vm22_vm3, %v7555_v41  ;;  %270 = vst.msk [vmem:[#allocation2 + $0x7b8] sm:$0xff] %vm22_vm3, %v7555_v41 }
  0x84   :  { %271 = vst.msk [vmem:[#allocation2 + $0x7c0] sm:$0xff] %vm22_vm3, %v7555_v41  ;;  %272 = vst.msk [vmem:[#allocation2 + $0x7c8] sm:$0xff] %vm22_vm3, %v7555_v41 }
  0x85   :  { %273 = vst.msk [vmem:[#allocation2 + $0x7d0] sm:$0xff] %vm22_vm3, %v7555_v41  ;;  %274 = vst.msk [vmem:[#allocation2 + $0x7d8] sm:$0xff] %vm22_vm3, %v7555_v41  ;;  %7213 = vmatmul.mubr.msk.bf16.gmra.mxu0 %vm1446_vm2, %v7478_v5  ;;  %7341 = vmatmul.mubr.msk.bf16.gmra.mxu1 %vm1446_vm2, %v7479_v6 }
  0x86   :  { %275 = vst.msk [vmem:[#allocation2 + $0x7e0] sm:$0xff] %vm22_vm3, %v7555_v41  ;;  %276 = vst.msk [vmem:[#allocation2 + $0x7e8] sm:$0xff] %vm22_vm3, %v7555_v41  ;;  %7216 = vmatprep.mubr.msk.bf16.mxu0 %vm1446_vm2, %v7480_v7  ;;  %7344 = vmatprep.mubr.msk.bf16.mxu1 %vm1446_vm2, %v7481_v8  ;;  %v289_v7 = vld [vmem:[#allocation2 + $0x30] sm:$0xff] }
  0x87   :  { %277 = vst.msk [vmem:[#allocation2 + $0x7f0] sm:$0xff] %vm22_vm3, %v7555_v41  ;;  %278 = vst.msk [vmem:[#allocation2 + $0x7f8] sm:$0xff] %vm22_vm3, %v7555_v41  ;;  %v7514_v41 = vld [vmem:[%s11236_s0 + $0x188] sm:$0xff]   ;;  %v417_v8 = vld [vmem:[#allocation2 + $0x430] sm:$0xff] }
  0x8d   :  { %7217 = vmatmul.mubr.msk.bf16.gmra.mxu0 %vm1446_vm2, %v7482_v9  ;;  %7345 = vmatmul.mubr.msk.bf16.gmra.mxu1 %vm1446_vm2, %v7483_v10 }
  0x8e   :  { %7220 = vmatprep.mubr.msk.bf16.mxu0 %vm1446_vm2, %v7484_v11  ;;  %7348 = vmatprep.mubr.msk.bf16.mxu1 %vm1446_vm2, %v7485_v12  ;;  %v8531_v11 = vld [vmem:[%s11237_s2] ss:$0 sm:$0xff] }
  0x95   :  { %7221 = vmatmul.mubr.msk.bf16.gmra.mxu0 %vm1446_vm2, %v7486_v13  ;;  %7349 = vmatmul.mubr.msk.bf16.gmra.mxu1 %vm1446_vm2, %v7487_v14  ;;  %v287_v14 = vld [vmem:[#allocation2 + $0x20] sm:$0xff] }
  0x96   :  { %7224 = vmatprep.mubr.msk.bf16.mxu0 %vm1446_vm2, %v7488_v15  ;;  %7352 = vmatprep.mubr.msk.bf16.mxu1 %vm1446_vm2, %v7489_v16  ;;  %v415_v15 = vld [vmem:[#allocation2 + $0x420] sm:$0xff] }
  0x9d   :  { %7225 = vmatmul.mubr.msk.bf16.gmra.mxu0 %vm1446_vm2, %v7490_v17  ;;  %7353 = vmatmul.mubr.msk.bf16.gmra.mxu1 %vm1446_vm2, %v7491_v18 }
  0x9e   :  { %7228 = vmatprep.mubr.msk.bf16.mxu0 %vm1446_vm2, %v7492_v19  ;;  %7356 = vmatprep.mubr.msk.bf16.mxu1 %vm1446_vm2, %v7493_v20  ;;  %v8542_v19 = vld [vmem:[%s11238_s3] ss:$0 sm:$0xff] }
  0xa5   :  { %7229 = vmatmul.mubr.msk.bf16.gmra.mxu0 %vm1446_vm2, %v7494_v21  ;;  %7357 = vmatmul.mubr.msk.bf16.gmra.mxu1 %vm1446_vm2, %v7495_v22 }
  0xa6   :  { %7232 = vmatprep.mubr.msk.bf16.mxu0 %vm1446_vm2, %v7496_v23  ;;  %7360 = vmatprep.mubr.msk.bf16.mxu1 %vm1446_vm2, %v7497_v24 }
  0xad   :  { %7233 = vmatmul.mubr.msk.bf16.gmra.mxu0 %vm1446_vm2, %v7498_v25  ;;  %7361 = vmatmul.mubr.msk.bf16.gmra.mxu1 %vm1446_vm2, %v7499_v26 }
  0xae   :  { %7236 = vmatprep.mubr.msk.bf16.mxu0 %vm1446_vm2, %v7500_v27  ;;  %7364 = vmatprep.mubr.msk.bf16.mxu1 %vm1446_vm2, %v7501_v28  ;;  %v290_v27 = vld [vmem:[#allocation2 + $0x38] sm:$0xff] }
  0xaf   :  { %v418_v28 = vld [vmem:[#allocation2 + $0x438] sm:$0xff] }
  0xb5   :  { %7237 = vmatmul.mubr.msk.bf16.gmra.mxu0 %vm1446_vm2, %v7502_v29  ;;  %7365 = vmatmul.mubr.msk.bf16.gmra.mxu1 %vm1446_vm2, %v7503_v30 }
  0xb6   :  { %7240 = vmatprep.mubr.msk.bf16.mxu0 %vm1446_vm2, %v7504_v31  ;;  %7368 = vmatprep.mubr.msk.bf16.mxu1 %vm1446_vm2, %v7505_v32 }
  0xbd   :  { %7241 = vmatmul.mubr.msk.bf16.gmra.mxu0 %vm1446_vm2, %v7506_v33  ;;  %7369 = vmatmul.mubr.msk.bf16.gmra.mxu1 %vm1446_vm2, %v7507_v34  ;;  %v7522_v33 = vld [vmem:[%s11236_s0 + $0x1a8] sm:$0xff]  }
  0xbe   :  { %7244 = vmatprep.mubr.msk.bf16.mxu0 %vm1446_vm2, %v7508_v35  ;;  %7372 = vmatprep.mubr.msk.bf16.mxu1 %vm1446_vm2, %v7509_v36 }
  0xc5   :  { %7245 = vmatmul.mubr.msk.bf16.gmra.mxu0 %vm1446_vm2, %v7510_v37  ;;  %7373 = vmatmul.mubr.msk.bf16.gmra.mxu1 %vm1446_vm2, %v7511_v38  ;;  %v7523_v38 = vld [vmem:[%s11236_s0 + $0x3a8] sm:$0xff]  }
  0xc6   :  { %7248 = vmatprep.mubr.msk.bf16.mxu0 %vm1446_vm2, %v7512_v39  ;;  %7376 = vmatprep.mubr.msk.bf16.mxu1 %vm1446_vm2, %v7513_v40  ;;  %v7524_v39 = vld [vmem:[%s11236_s0 + $0x1b0] sm:$0xff]  }
  0xcd   :  { %v7154_v47 = vpop.f32.mrf.mxu0  ;;  %7249 = vmatmul.mubr.msk.bf16.gmra.mxu0 %vm1446_vm2, %v7514_v41  ;;  %v7282_v48 = vpop.f32.mrf.mxu1  ;;  %7377 = vmatmul.mubr.msk.bf16.gmra.mxu1 %vm1446_vm2, %v7515_v42 }
  0xce   :  { %v2897_v51 = vadd.f32 %v7154_v47, %v285_v45  ;;  %v3025_v52 = vadd.f32 %v7282_v48, %v413_v46  ;;  %7252 = vmatprep.mubr.msk.bf16.mxu0 %vm1446_vm2, %v7516_v43  ;;  %7380 = vmatprep.mubr.msk.bf16.mxu1 %vm1446_vm2, %v7517_v44  ;;  %v7525_v46 = vld [vmem:[%s11236_s0 + $0x3b0] sm:$0xff]  }
  0xcf   :  { %v1872_v53 = vpop.f32.mrf.mxu0  ;;  %v2384_v54 = vpop.f32.mrf.mxu1 }
  0xd0   :  { %3154 = vst.msk [vmem:[#allocation2 + $0x10] sm:$0xff] %vm22_vm3, %v2897_v51  ;;  %3282 = vst.msk [vmem:[#allocation2 + $0x410] sm:$0xff] %vm22_vm3, %v3025_v52  ;;  %v2895_v57 = vadd.f32 %v1872_v53, %v283_v49  ;;  %v3023_v58 = vadd.f32 %v2384_v54, %v411_v50 }
  0xd1   :  { %v7155_v60 = vpop.f32.mrf.mxu0  ;;  %v7283_v61 = vpop.f32.mrf.mxu1 }
  0xd2   :  { %3152 = vst.msk [vmem:[#allocation2] sm:$0xff] %vm22_vm3, %v2895_v57  ;;  %3280 = vst.msk [vmem:[#allocation2 + $0x400] sm:$0xff] %vm22_vm3, %v3023_v58  ;;  %v2898_v1 = vadd.f32 %v7155_v60, %v286_v55  ;;  %v3026_v2 = vadd.f32 %v7283_v61, %v414_v56 }
  0xd3   :  { %v1875_v5 = vpop.f32.mrf.mxu0  ;;  %v2387_v6 = vpop.f32.mrf.mxu1 }
  0xd4   :  { %3155 = vst.msk [vmem:[#allocation2 + $0x18] sm:$0xff] %vm22_vm3, %v2898_v1  ;;  %3283 = vst.msk [vmem:[#allocation2 + $0x418] sm:$0xff] %vm22_vm3, %v3026_v2  ;;  %v2896_v9 = vadd.f32 %v1875_v5, %v284_v59  ;;  %v3024_v10 = vadd.f32 %v2387_v6, %v412_v62 }
  0xd5   :  { %v7158_v12 = vpop.f32.mrf.mxu0  ;;  %7253 = vmatmul.mubr.msk.bf16.gmra.mxu0 %vm1446_vm2, %v7518_v63  ;;  %v7286_v13 = vpop.f32.mrf.mxu1  ;;  %7381 = vmatmul.mubr.msk.bf16.gmra.mxu1 %vm1446_vm2, %v7519_v0 }
  0xd6   :  { %3153 = vst.msk [vmem:[#allocation2 + $0x8] sm:$0xff] %vm22_vm3, %v2896_v9  ;;  %3281 = vst.msk [vmem:[#allocation2 + $0x408] sm:$0xff] %vm22_vm3, %v3024_v10  ;;  %v2901_v16 = vadd.f32 %v7158_v12, %v289_v7  ;;  %v3029_v17 = vadd.f32 %v7286_v13, %v417_v8  ;;  %7256 = vmatprep.mubr.msk.bf16.mxu0 %vm1446_vm2, %v7520_v3  ;;  %7384 = vmatprep.mubr.msk.bf16.mxu1 %vm1446_vm2, %v7521_v4  ;;  %v7526_v13 = vld [vmem:[%s11236_s0 + $0x1b8] sm:$0xff]  }
  0xd7   :  { %v3413_v18 = vld [vmem:[#allocation2 + $0x10] sm:$0xff]  ;;  %v1888_v21 = vpop.f32.mrf.mxu0  ;;  %v2400_v22 = vpop.f32.mrf.mxu1 }
  0xd8   :  { %v3541_v20 = vld [vmem:[#allocation2 + $0x410] sm:$0xff]  ;;  %v3676_v23 = vmul.f32 %v8531_v11, %v3413_v18  ;;  %3158 = vst.msk [vmem:[#allocation2 + $0x30] sm:$0xff] %vm22_vm3, %v2901_v16  ;;  %3286 = vst.msk [vmem:[#allocation2 + $0x430] sm:$0xff] %vm22_vm3, %v3029_v17  ;;  %v2899_v25 = vadd.f32 %v1888_v21, %v287_v14  ;;  %v3027_v26 = vadd.f32 %v2400_v22, %v415_v15  ;;  %v7527_v18 = vld [vmem:[%s11236_s0 + $0x3b8] sm:$0xff]  }
  0xd9   :  { %v3804_v24 = vmul.f32 %v8531_v11, %v3541_v20  ;;  %v3411_v29 = vld [vmem:[#allocation2] sm:$0xff]  ;;  %v7159_v31 = vpop.f32.mrf.mxu0  ;;  %v7287_v32 = vpop.f32.mrf.mxu1 }
  0xda   :  { %v3539_v30 = vld [vmem:[#allocation2 + $0x400] sm:$0xff]  ;;  %v3939_v34 = vadd.f32 %v8542_v19, %v3676_v23  ;;  %v3674_v36 = vmul.f32 %v8531_v11, %v3411_v29  ;;  %3156 = vst.msk [vmem:[#allocation2 + $0x20] sm:$0xff] %vm22_vm3, %v2899_v25  ;;  %3284 = vst.msk [vmem:[#allocation2 + $0x420] sm:$0xff] %vm22_vm3, %v3027_v26  ;;  %v2902_v42 = vadd.f32 %v7159_v31, %v290_v27 }
  0xdb   :  { %v4067_v35 = vadd.f32 %v8542_v19, %v3804_v24  ;;  %v3802_v37 = vmul.f32 %v8531_v11, %v3539_v30  ;;  %v3414_v40 = vld [vmem:[#allocation2 + $0x18] sm:$0xff]  ;;  %v3030_v43 = vadd.f32 %v7287_v32, %v418_v28  ;;  %v8563_v44 = vpop.f32.mrf.mxu0  ;;  %v8565_v45 = vpop.f32.mrf.mxu1  ;;  %v7528_v20 = vld [vmem:[%s11236_s0 + $0x1c0] sm:$0xff]  }
  0xdc   :  { %v3542_v41 = vld [vmem:[#allocation2 + $0x418] sm:$0xff]  ;;  %vm4195_vm5 = vcmp.ge.f32.partialorder %v3939_v34, 0.0  ;;  %v4451_v47 = vmul.f32 0.2, %v3939_v34  ;;  %v3937_v49 = vadd.f32 %v8542_v19, %v3674_v36  ;;  %v3677_v51 = vmul.f32 %v8531_v11, %v3414_v40  ;;  %3159 = vst.msk [vmem:[#allocation2 + $0x38] sm:$0xff] %vm22_vm3, %v2902_v42  ;;  %v7529_v26 = vld [vmem:[%s11236_s0 + $0x3c0] sm:$0xff]  }
  0xdd   :  { %vm4323_vm6 = vcmp.ge.f32.partialorder %v4067_v35, 0.0  ;;  %v4579_v48 = vmul.f32 0.2, %v4067_v35  ;;  %v4065_v50 = vadd.f32 %v8542_v19, %v3802_v37  ;;  %v3805_v52 = vmul.f32 %v8531_v11, %v3542_v41  ;;  %v3412_v53 = vld [vmem:[#allocation2 + $0x8] sm:$0xff]  ;;  %3287 = vst.msk [vmem:[#allocation2 + $0x438] sm:$0xff] %vm22_vm3, %v3030_v43  ;;  %v8576_v55 = vpop.f32.mrf.mxu0  ;;  %7257 = vmatmul.mubr.msk.bf16.gmra.mxu0 %vm1446_vm2, %v7522_v33  ;;  %v8579_v56 = vpop.f32.mrf.mxu1  ;;  %7385 = vmatmul.mubr.msk.bf16.gmra.mxu1 %vm1446_vm2, %v7523_v38 }
  0xde   :  { %v3540_v54 = vld [vmem:[#allocation2 + $0x408] sm:$0xff]  ;;  %v4707_v57 = vsel %vm4195_vm5, %v3939_v34, %v4451_v47  ;;  %v3675_v59 = vmul.f32 %v8531_v11, %v3412_v53  ;;  %vm4193_vm7 = vcmp.ge.f32.partialorder %v3937_v49, 0.0  ;;  %v4449_v63 = vmul.f32 0.2, %v3937_v49  ;;  %7260 = vmatprep.mubr.msk.bf16.mxu0 %vm1446_vm2, %v7524_v39  ;;  %7388 = vmatprep.mubr.msk.bf16.mxu1 %vm1446_vm2, %v7525_v46 }
  0xdf   :  { %v4835_v58 = vsel %vm4323_vm6, %v4067_v35, %v4579_v48  ;;  %v3803_v60 = vmul.f32 %v8531_v11, %v3540_v54  ;;  %v6764_v61 = vpack.c.bf16 %v4707_v57, %v4707_v57  ;;  %v3417_v0 = vld [vmem:[#allocation2 + $0x30] sm:$0xff]  ;;  %v8585_v1 = vpop.f32.mrf.mxu0  ;;  %v8587_v2 = vpop.f32.mrf.mxu1  ;;  %vm4321_vm8 = vcmp.ge.f32.partialorder %v4065_v50, 0.0  ;;  %v288_v43 = vld [vmem:[#allocation2 + $0x28] sm:$0xff] }
  0xe0   :  { %v6892_v62 = vpack.c.bf16 %v4835_v58, %v4835_v58  ;;  %v4577_v3 = vmul.f32 0.2, %v4065_v50  ;;  %v3940_v4 = vadd.f32 %v8542_v19, %v3677_v51  ;;  %v4068_v5 = vadd.f32 %v8542_v19, %v3805_v52  ;;  %v3545_v17 = vld [vmem:[#allocation2 + $0x430] sm:$0xff]  ;;  %v416_v46 = vld [vmem:[#allocation2 + $0x428] sm:$0xff] }
  0xe1   :  { %5988 = vst.msk [vmem:[%s11239_s4 + $0x8] sm:$0xf] %vm5985_vm4, %v6764_v61  ;;  %v4705_v6 = vsel %vm4193_vm7, %v3937_v49, %v4449_v63  ;;  %v3938_v7 = vadd.f32 %v8542_v19, %v3675_v59  ;;  %v4066_v8 = vadd.f32 %v8542_v19, %v3803_v60  ;;  %v3680_v9 = vmul.f32 %v8531_v11, %v3417_v0  ;;  %v8604_v10 = vpop.f32.mrf.mxu0  ;;  %v8606_v12 = vpop.f32.mrf.mxu1  ;;  %v3415_v23 = vld [vmem:[#allocation2 + $0x20] sm:$0xff]  ;;  %v293_v58 = vld [vmem:[#allocation2 + $0x50] sm:$0xff] }
  0xe2   :  { %6116 = vst.msk [vmem:[%s11239_s4 + $0x208] sm:$0xf] %vm5985_vm4, %v6892_v62  ;;  %v6762_v14 = vpack.c.bf16 %v4705_v6, %v4705_v6  ;;  %v4833_v15 = vsel %vm4321_vm8, %v4065_v50, %v4577_v3  ;;  %vm4196_vm9 = vcmp.ge.f32.partialorder %v3940_v4, 0.0  ;;  %v4452_v16 = vmul.f32 0.2, %v3940_v4  ;;  %v3543_v34 = vld [vmem:[#allocation2 + $0x420] sm:$0xff] }
  0xe3   :  { %v6890_v21 = vpack.c.bf16 %v4833_v15, %v4833_v15  ;;  %vm4324_vm10 = vcmp.ge.f32.partialorder %v4068_v5, 0.0  ;;  %v4580_v22 = vmul.f32 0.2, %v4068_v5  ;;  %vm4194_vm11 = vcmp.ge.f32.partialorder %v3938_v7, 0.0  ;;  %v8617_v24 = vpop.f32.mrf.mxu0  ;;  %v8619_v25 = vpop.f32.mrf.mxu1  ;;  %v3418_v35 = vld [vmem:[#allocation2 + $0x38] sm:$0xff]  ;;  %v421_v63 = vld [vmem:[#allocation2 + $0x450] sm:$0xff] }
  0xe4   :  { %5986 = vst.msk [vmem:[%s11239_s4] sm:$0xf] %vm5985_vm4, %v6762_v14  ;;  %v4708_v27 = vsel %vm4196_vm9, %v3940_v4, %v4452_v16  ;;  %v4450_v28 = vmul.f32 0.2, %v3938_v7  ;;  %vm4322_vm12 = vcmp.ge.f32.partialorder %v4066_v8, 0.0  ;;  %v3943_v32 = vadd.f32 %v8542_v19, %v3680_v9  ;;  %v3546_v42 = vld [vmem:[#allocation2 + $0x438] sm:$0xff] }
  0xe5   :  { %v4578_v29 = vmul.f32 0.2, %v4066_v8  ;;  %6114 = vst.msk [vmem:[%s11239_s4 + $0x200] sm:$0xf] %vm5985_vm4, %v6890_v21  ;;  %v6765_v30 = vpack.c.bf16 %v4708_v27, %v4708_v27  ;;  %v4836_v31 = vsel %vm4324_vm10, %v4068_v5, %v4580_v22  ;;  %v3808_v33 = vmul.f32 %v8531_v11, %v3545_v17  ;;  %v8634_v36 = vpop.f32.mrf.mxu0  ;;  %7261 = vmatmul.mubr.msk.bf16.gmra.mxu0 %vm1446_vm2, %v7526_v13  ;;  %v8637_v37 = vpop.f32.mrf.mxu1  ;;  %v291_v0 = vld [vmem:[#allocation2 + $0x40] sm:$0xff]  ;;  %v7530_v5 = vld [vmem:[%s11236_s0 + $0x1c8] sm:$0xff]  }
  0xe6   :  { %v6893_v38 = vpack.c.bf16 %v4836_v31, %v4836_v31  ;;  %v4706_v39 = vsel %vm4194_vm11, %v3938_v7, %v4450_v28  ;;  %v3678_v41 = vmul.f32 %v8531_v11, %v3415_v23  ;;  %7389 = vmatmul.mubr.msk.bf16.gmra.mxu1 %vm1446_vm2, %v7527_v18  ;;  %vm4199_vm13 = vcmp.ge.f32.partialorder %v3943_v32, 0.0  ;;  %7264 = vmatprep.mubr.msk.bf16.mxu0 %vm1446_vm2, %v7528_v20  ;;  %v419_v15 = vld [vmem:[#allocation2 + $0x440] sm:$0xff]  ;;  %v7533_v18 = vld [vmem:[%s11236_s0 + $0x3d0] sm:$0xff]   ;;  %v422_v27 = vld [vmem:[#allocation2 + $0x458] sm:$0xff] }
  0xe7   :  { %v4834_v40 = vsel %vm4322_vm12, %v4066_v8, %v4578_v29  ;;  %5989 = vst.msk [vmem:[%s11239_s4 + $0xc] sm:$0xf] %vm5985_vm4, %v6765_v30  ;;  %v6763_v47 = vpack.c.bf16 %v4706_v39, %v4706_v39  ;;  %v4455_v49 = vmul.f32 0.2, %v3943_v32  ;;  %v8646_v50 = vpop.f32.mrf.mxu0  ;;  %v8648_v51 = vpop.f32.mrf.mxu1  ;;  %7392 = vmatprep.mubr.msk.bf16.mxu1 %vm1446_vm2, %v7529_v26  ;;  %v4071_v52 = vadd.f32 %v8542_v19, %v3808_v33  ;;  %v294_v26 = vld [vmem:[#allocation2 + $0x58] sm:$0xff]  ;;  %v292_v28 = vld [vmem:[#allocation2 + $0x48] sm:$0xff] }
  0xe8   :  { %v6891_v48 = vpack.c.bf16 %v4834_v40, %v4834_v40  ;;  %6117 = vst.msk [vmem:[%s11239_s4 + $0x20c] sm:$0xf] %vm5985_vm4, %v6893_v38  ;;  %v3941_v53 = vadd.f32 %v8542_v19, %v3678_v41  ;;  %v3806_v54 = vmul.f32 %v8531_v11, %v3543_v34  ;;  %v3681_v57 = vmul.f32 %v8531_v11, %v3418_v35  ;;  %v297_v33 = vld [vmem:[#allocation2 + $0x70] sm:$0xff]  ;;  %v295_v38 = vld [vmem:[#allocation2 + $0x60] sm:$0xff] }
  0xe9   :  { %5987 = vst.msk [vmem:[%s11239_s4 + $0x4] sm:$0xf] %vm5985_vm4, %v6763_v47  ;;  %v4711_v59 = vsel %vm4199_vm13, %v3943_v32, %v4455_v49  ;;  %v3809_v60 = vmul.f32 %v8531_v11, %v3546_v42  ;;  %v2900_v61 = vadd.f32 %v8563_v44, %v288_v43  ;;  %v3028_v62 = vadd.f32 %v8565_v45, %v416_v46  ;;  %v8671_v3 = vpop.f32.mrf.mxu0  ;;  %v8673_v4 = vpop.f32.mrf.mxu1  ;;  %v7531_v44 = vld [vmem:[%s11236_s0 + $0x3c8] sm:$0xff]   ;;  %v7532_v45 = vld [vmem:[%s11236_s0 + $0x1d0] sm:$0xff]   ;;  %v423_v39 = vld [vmem:[#allocation2 + $0x460] sm:$0xff] }
  0xea   :  { %6115 = vst.msk [vmem:[%s11239_s4 + $0x204] sm:$0xf] %vm5985_vm4, %v6891_v48  ;;  %v6768_v6 = vpack.c.bf16 %v4711_v59, %v4711_v59  ;;  %vm4327_vm14 = vcmp.ge.f32.partialorder %v4071_v52, 0.0  ;;  %v4583_v7 = vmul.f32 0.2, %v4071_v52  ;;  %vm4197_vm15 = vcmp.ge.f32.partialorder %v3941_v53, 0.0 }
  0xeb   :  { %v4453_v8 = vmul.f32 0.2, %v3941_v53  ;;  %v4069_v9 = vadd.f32 %v8542_v19, %v3806_v54  ;;  %v3944_v13 = vadd.f32 %v8542_v19, %v3681_v57  ;;  %v4072_v14 = vadd.f32 %v8542_v19, %v3809_v60  ;;  %3157 = vst.msk [vmem:[#allocation2 + $0x28] sm:$0xff] %vm22_vm3, %v2900_v61  ;;  %3285 = vst.msk [vmem:[#allocation2 + $0x428] sm:$0xff] %vm22_vm3, %v3028_v62  ;;  %v8689_v16 = vpop.f32.mrf.mxu0  ;;  %v8691_v17 = vpop.f32.mrf.mxu1  ;;  %v420_v32 = vld [vmem:[#allocation2 + $0x448] sm:$0xff]  ;;  %v425_v34 = vld [vmem:[#allocation2 + $0x470] sm:$0xff] }
  0xec   :  { %5992 = vst.msk [vmem:[%s11239_s4 + $0x18] sm:$0xf] %vm5985_vm4, %v6768_v6  ;;  %v4839_v20 = vsel %vm4327_vm14, %v4071_v52, %v4583_v7  ;;  %v2905_v21 = vadd.f32 %v8576_v55, %v293_v58  ;;  %v3033_v22 = vadd.f32 %v8579_v56, %v421_v63  ;;  %v2903_v23 = vadd.f32 %v8585_v1, %v291_v0  ;;  %v298_v46 = vld [vmem:[#allocation2 + $0x78] sm:$0xff]  ;;  %v296_v48 = vld [vmem:[#allocation2 + $0x68] sm:$0xff]  ;;  %v301_v58 = vld [vmem:[#allocation2 + $0x90] sm:$0xff] }
  0xed   :  { %v6896_v29 = vpack.c.bf16 %v4839_v20, %v4839_v20  ;;  %v4709_v30 = vsel %vm4197_vm15, %v3941_v53, %v4453_v8  ;;  %vm4325_vm0 = vcmp.ge.f32.partialorder %v4069_v9, 0.0  ;;  %v4581_v31 = vmul.f32 0.2, %v4069_v9  ;;  %v8705_v35 = vpop.f32.mrf.mxu0  ;;  %7265 = vmatmul.mubr.msk.bf16.gmra.mxu0 %vm1446_vm2, %v7530_v5  ;;  %v8708_v55 = vpop.f32.mrf.mxu1  ;;  %v426_v47 = vld [vmem:[#allocation2 + $0x478] sm:$0xff]  ;;  %v429_v59 = vld [vmem:[#allocation2 + $0x490] sm:$0xff]  ;;  %v299_v0 = vld [vmem:[#allocation2 + $0x80] sm:$0xff] }
  0xee   :  { %v6766_v56 = vpack.c.bf16 %v4709_v30, %v4709_v30  ;;  %vm4200_vm1 = vcmp.ge.f32.partialorder %v3944_v13, 0.0  ;;  %v4456_v1 = vmul.f32 0.2, %v3944_v13  ;;  %vm4328_vm5 = vcmp.ge.f32.partialorder %v4072_v14, 0.0  ;;  %3162 = vst.msk [vmem:[#allocation2 + $0x50] sm:$0xff] %vm22_vm3, %v2905_v21  ;;  %3290 = vst.msk [vmem:[#allocation2 + $0x450] sm:$0xff] %vm22_vm3, %v3033_v22  ;;  %7393 = vmatmul.mubr.msk.bf16.gmra.mxu1 %vm1446_vm2, %v7531_v44  ;;  %7268 = vmatprep.mubr.msk.bf16.mxu0 %vm1446_vm2, %v7532_v45 }
  0xef   :  { %3160 = vst.msk [vmem:[#allocation2 + $0x40] sm:$0xff] %vm22_vm3, %v2903_v23  ;;  %v4837_v40 = vsel %vm4325_vm0, %v4069_v9, %v4581_v31  ;;  %v4584_v41 = vmul.f32 0.2, %v4072_v14  ;;  %v3031_v42 = vadd.f32 %v8587_v2, %v419_v15  ;;  %v2906_v43 = vadd.f32 %v8604_v10, %v294_v26  ;;  %v1936_v49 = vpop.f32.mrf.mxu0  ;;  %v2448_v52 = vpop.f32.mrf.mxu1  ;;  %7396 = vmatprep.mubr.msk.bf16.mxu1 %vm1446_vm2, %v7533_v18  ;;  %v424_v10 = vld [vmem:[#allocation2 + $0x468] sm:$0xff]  ;;  %v427_v5 = vld [vmem:[#allocation2 + $0x480] sm:$0xff]  ;;  %v7535_v9 = vld [vmem:[%s11236_s0 + $0x3d8] sm:$0xff]  }
  0xf0   :  { %6120 = vst.msk [vmem:[%s11239_s4 + $0x218] sm:$0xf] %vm5985_vm4, %v6896_v29  ;;  %5990 = vst.msk [vmem:[%s11239_s4 + $0x10] sm:$0xf] %vm5985_vm4, %v6766_v56  ;;  %v6894_v53 = vpack.c.bf16 %v4837_v40, %v4837_v40  ;;  %v4712_v54 = vsel %vm4200_vm1, %v3944_v13, %v4456_v1  ;;  %v3034_v57 = vadd.f32 %v8606_v12, %v422_v27  ;;  %v7536_v20 = vld [vmem:[%s11236_s0 + $0x1e0] sm:$0xff]   ;;  %v430_v26 = vld [vmem:[#allocation2 + $0x498] sm:$0xff] }
  0xf1   :  { %v2904_v2 = vadd.f32 %v8617_v24, %v292_v28  ;;  %v6769_v60 = vpack.c.bf16 %v4712_v54, %v4712_v54  ;;  %v4840_v61 = vsel %vm4328_vm5, %v4072_v14, %v4584_v41  ;;  %3288 = vst.msk [vmem:[#allocation2 + $0x440] sm:$0xff] %vm22_vm3, %v3031_v42  ;;  %3163 = vst.msk [vmem:[#allocation2 + $0x58] sm:$0xff] %vm22_vm3, %v2906_v43  ;;  %v7171_v6 = vpop.f32.mrf.mxu0  ;;  %v8735_v12 = vpop.f32.mrf.mxu1  ;;  %v7534_v24 = vld [vmem:[%s11236_s0 + $0x1d8] sm:$0xff]   ;;  %v7537_v21 = vld [vmem:[%s11236_s0 + $0x3e0] sm:$0xff]  }
  0xf2   :  { %v3032_v62 = vadd.f32 %v8619_v25, %v420_v32  ;;  %v2909_v63 = vadd.f32 %v8634_v36, %v297_v33  ;;  %6118 = vst.msk [vmem:[%s11239_s4 + $0x210] sm:$0xf] %vm5985_vm4, %v6894_v53  ;;  %v6897_v7 = vpack.c.bf16 %v4840_v61, %v4840_v61  ;;  %v3416_v44 = vld [vmem:[#allocation2 + $0x28] sm:$0xff]  ;;  %v3037_v25 = vadd.f32 %v8637_v37, %v425_v34 }
  0xf3   :  { %v3544_v45 = vld [vmem:[#allocation2 + $0x428] sm:$0xff]  ;;  %3291 = vst.msk [vmem:[#allocation2 + $0x458] sm:$0xff] %vm22_vm3, %v3034_v57  ;;  %3161 = vst.msk [vmem:[#allocation2 + $0x48] sm:$0xff] %vm22_vm3, %v2904_v2  ;;  %v2907_v36 = vadd.f32 %v8646_v50, %v295_v38  ;;  %v3035_v8 = vadd.f32 %v8648_v51, %v423_v39  ;;  %v3679_v13 = vmul.f32 %v8531_v11, %v3416_v44  ;;  %v302_v51 = vld [vmem:[#allocation2 + $0x98] sm:$0xff]  ;;  %v8762_v15 = vpop.f32.mrf.mxu0  ;;  %v8764_v18 = vpop.f32.mrf.mxu1 }
  0xf4   :  { %5993 = vst.msk [vmem:[%s11239_s4 + $0x1c] sm:$0xf] %vm5985_vm4, %v6769_v60  ;;  %v3807_v14 = vmul.f32 %v8531_v11, %v3544_v45  ;;  %v2910_v37 = vadd.f32 %v8671_v3, %v298_v46  ;;  %v3038_v50 = vadd.f32 %v8673_v4, %v426_v47  ;;  %6121 = vst.msk [vmem:[%s11239_s4 + $0x21c] sm:$0xf] %vm5985_vm4, %v6897_v7 }
  0xf5   :  { %3289 = vst.msk [vmem:[#allocation2 + $0x448] sm:$0xff] %vm22_vm3, %v3032_v62  ;;  %3166 = vst.msk [vmem:[#allocation2 + $0x70] sm:$0xff] %vm22_vm3, %v2909_v63  ;;  %v2908_v3 = vadd.f32 %v8689_v16, %v296_v48  ;;  %v3036_v4 = vadd.f32 %v8691_v17, %v424_v10  ;;  %v2913_v22 = vadd.f32 %v8705_v35, %v301_v58  ;;  %v3421_v29 = vld [vmem:[#allocation2 + $0x50] sm:$0xff]  ;;  %v8787_v33 = vpop.f32.mrf.mxu0  ;;  %7269 = vmatmul.mubr.msk.bf16.gmra.mxu0 %vm1446_vm2, %v7534_v24  ;;  %v8790_v17 = vpop.f32.mrf.mxu1  ;;  %v7538_v58 = vld [vmem:[%s11236_s0 + $0x1e8] sm:$0xff]  }
  0xf6   :  { %3294 = vst.msk [vmem:[#allocation2 + $0x470] sm:$0xff] %vm22_vm3, %v3037_v25  ;;  %3164 = vst.msk [vmem:[#allocation2 + $0x60] sm:$0xff] %vm22_vm3, %v2907_v36  ;;  %v3041_v23 = vadd.f32 %v8708_v55, %v429_v59  ;;  %v3942_v27 = vadd.f32 %v8542_v19, %v3679_v13  ;;  %v4070_v28 = vadd.f32 %v8542_v19, %v3807_v14  ;;  %v3549_v30 = vld [vmem:[#allocation2 + $0x450] sm:$0xff]  ;;  %v3419_v31 = vld [vmem:[#allocation2 + $0x40] sm:$0xff]  ;;  %7397 = vmatmul.mubr.msk.bf16.gmra.mxu1 %vm1446_vm2, %v7535_v9 }
  0xf7   :  { %3292 = vst.msk [vmem:[#allocation2 + $0x460] sm:$0xff] %vm22_vm3, %v3035_v8  ;;  %3167 = vst.msk [vmem:[#allocation2 + $0x78] sm:$0xff] %vm22_vm3, %v2910_v37  ;;  %v2911_v32 = vadd.f32 %v1936_v49, %v299_v0  ;;  %v3039_v16 = vadd.f32 %v2448_v52, %v427_v5  ;;  %v3684_v34 = vmul.f32 %v8531_v11, %v3421_v29  ;;  %v8802_v39 = vpop.f32.mrf.mxu0  ;;  %v8804_v40 = vpop.f32.mrf.mxu1  ;;  %7272 = vmatprep.mubr.msk.bf16.mxu0 %vm1446_vm2, %v7536_v20  ;;  %v7539_v59 = vld [vmem:[%s11236_s0 + $0x3e8] sm:$0xff]   ;;  %v7540_v0 = vld [vmem:[%s11236_s0 + $0x1f0] sm:$0xff]  }
  0xf8   :  { %3295 = vst.msk [vmem:[#allocation2 + $0x478] sm:$0xff] %vm22_vm3, %v3038_v50  ;;  %v3812_v35 = vmul.f32 %v8531_v11, %v3549_v30  ;;  %v3682_v55 = vmul.f32 %v8531_v11, %v3419_v31  ;;  %3165 = vst.msk [vmem:[#allocation2 + $0x68] sm:$0xff] %vm22_vm3, %v2908_v3  ;;  %v2914_v56 = vadd.f32 %v7171_v6, %v302_v51  ;;  %vm4198_vm6 = vcmp.ge.f32.partialorder %v3942_v27, 0.0  ;;  %v3547_v46 = vld [vmem:[#allocation2 + $0x440] sm:$0xff]  ;;  %v3422_v47 = vld [vmem:[#allocation2 + $0x58] sm:$0xff] }
  0xf9   :  { %3293 = vst.msk [vmem:[#allocation2 + $0x468] sm:$0xff] %vm22_vm3, %v3036_v4  ;;  %3170 = vst.msk [vmem:[#allocation2 + $0x90] sm:$0xff] %vm22_vm3, %v2913_v22  ;;  %v4454_v1 = vmul.f32 0.2, %v3942_v27  ;;  %vm4326_vm7 = vcmp.ge.f32.partialorder %v4070_v28, 0.0  ;;  %7400 = vmatprep.mubr.msk.bf16.mxu1 %vm1446_vm2, %v7537_v21  ;;  %v3947_v41 = vadd.f32 %v8542_v19, %v3684_v34  ;;  %v3042_v48 = vadd.f32 %v8735_v12, %v430_v26  ;;  %v8817_v2 = vpop.f32.mrf.mxu0  ;;  %v8819_v10 = vpop.f32.mrf.mxu1  ;;  %v7541_v5 = vld [vmem:[%s11236_s0 + $0x3f0] sm:$0xff]  }
  0xfa   :  { %3298 = vst.msk [vmem:[#allocation2 + $0x490] sm:$0xff] %vm22_vm3, %v3041_v23  ;;  %v4582_v38 = vmul.f32 0.2, %v4070_v28  ;;  %3168 = vst.msk [vmem:[#allocation2 + $0x80] sm:$0xff] %vm22_vm3, %v2911_v32  ;;  %v4075_v42 = vadd.f32 %v8542_v19, %v3812_v35  ;;  %v3945_v43 = vadd.f32 %v8542_v19, %v3682_v55  ;;  %v3810_v53 = vmul.f32 %v8531_v11, %v3547_v46  ;;  %v3550_v57 = vld [vmem:[#allocation2 + $0x458] sm:$0xff]  ;;  %v3420_v63 = vld [vmem:[#allocation2 + $0x48] sm:$0xff] }
  0xfb   :  { %3296 = vst.msk [vmem:[#allocation2 + $0x480] sm:$0xff] %vm22_vm3, %v3039_v16  ;;  %3171 = vst.msk [vmem:[#allocation2 + $0x98] sm:$0xff] %vm22_vm3, %v2914_v56  ;;  %v4710_v49 = vsel %vm4198_vm6, %v3942_v27, %v4454_v1  ;;  %v3685_v54 = vmul.f32 %v8531_v11, %v3422_v47  ;;  %vm4203_vm8 = vcmp.ge.f32.partialorder %v3947_v41, 0.0  ;;  %v4459_v62 = vmul.f32 0.2, %v3947_v41  ;;  %v8834_v24 = vpop.f32.mrf.mxu0  ;;  %v8836_v7 = vpop.f32.mrf.mxu1  ;;  %v7543_v47 = vld [vmem:[%s11236_s0 + $0x3f8] sm:$0xff]  }
  0xfc   :  { %v4838_v52 = vsel %vm4326_vm7, %v4070_v28, %v4582_v38  ;;  %v6767_v60 = vpack.c.bf16 %v4710_v49, %v4710_v49  ;;  %3299 = vst.msk [vmem:[#allocation2 + $0x498] sm:$0xff] %vm22_vm3, %v3042_v48  ;;  %vm4331_vm9 = vcmp.ge.f32.partialorder %v4075_v42, 0.0  ;;  %v4587_v6 = vmul.f32 0.2, %v4075_v42  ;;  %v3548_v37 = vld [vmem:[#allocation2 + $0x448] sm:$0xff]  ;;  %v3425_v50 = vld [vmem:[#allocation2 + $0x70] sm:$0xff] }
  0xfd   :  { %v6895_v61 = vpack.c.bf16 %v4838_v52, %v4838_v52  ;;  %vm4201_vm10 = vcmp.ge.f32.partialorder %v3945_v43, 0.0  ;;  %v4457_v12 = vmul.f32 0.2, %v3945_v43  ;;  %v4715_v44 = vsel %vm4203_vm8, %v3947_v41, %v4459_v62  ;;  %v3553_v51 = vld [vmem:[#allocation2 + $0x470] sm:$0xff]  ;;  %v8850_v20 = vpop.f32.mrf.mxu0  ;;  %7273 = vmatmul.mubr.msk.bf16.gmra.mxu0 %vm1446_vm2, %v7538_v58  ;;  %v8853_v21 = vpop.f32.mrf.mxu1  ;;  %v3423_v34 = vld [vmem:[#allocation2 + $0x60] sm:$0xff]  ;;  %v7542_v41 = vld [vmem:[%s11236_s0 + $0x1f8] sm:$0xff]  }
  0xfe   :  { %5991 = vst.msk [vmem:[%s11239_s4 + $0x14] sm:$0xf] %vm5985_vm4, %v6767_v60  ;;  %v4073_v45 = vadd.f32 %v8542_v19, %v3810_v53  ;;  %v3948_v25 = vadd.f32 %v8542_v19, %v3685_v54  ;;  %v3813_v36 = vmul.f32 %v8531_v11, %v3550_v57  ;;  %v6772_v8 = vpack.c.bf16 %v4715_v44, %v4715_v44  ;;  %v3551_v54 = vld [vmem:[#allocation2 + $0x460] sm:$0xff]  ;;  %v3426_v62 = vld [vmem:[#allocation2 + $0x78] sm:$0xff] }
  0xff   :  { %6119 = vst.msk [vmem:[%s11239_s4 + $0x214] sm:$0xf] %vm5985_vm4, %v6895_v61  ;;  %v4843_v9 = vsel %vm4331_vm9, %v4075_v42, %v4587_v6  ;;  %v4713_v13 = vsel %vm4201_vm10, %v3945_v43, %v4457_v12  ;;  %v3683_v14 = vmul.f32 %v8531_v11, %v3420_v63  ;;  %7401 = vmatmul.mubr.msk.bf16.gmra.mxu1 %vm1446_vm2, %v7539_v59  ;;  %v8863_v28 = vpop.f32.mrf.mxu0  ;;  %v8865_v29 = vpop.f32.mrf.mxu1  ;;  %v3554_v63 = vld [vmem:[#allocation2 + $0x478] sm:$0xff] }
 0x100   :  { %v6900_v3 = vpack.c.bf16 %v4843_v9, %v4843_v9  ;;  %v6770_v4 = vpack.c.bf16 %v4713_v13, %v4713_v13  ;;  %vm4329_vm11 = vcmp.ge.f32.partialorder %v4073_v45, 0.0  ;;  %v4585_v22 = vmul.f32 0.2, %v4073_v45  ;;  %7276 = vmatprep.mubr.msk.bf16.mxu0 %vm1446_vm2, %v7540_v0  ;;  %5996 = vst.msk [vmem:[%s11239_s4 + $0x28] sm:$0xf] %vm5985_vm4, %v6772_v8  ;;  %7404 = vmatprep.mubr.msk.bf16.mxu1 %vm1446_vm2, %v7541_v5 }
 0x101   :  { %vm4204_vm12 = vcmp.ge.f32.partialorder %v3948_v25, 0.0  ;;  %v4460_v23 = vmul.f32 0.2, %v3948_v25  ;;  %v4076_v26 = vadd.f32 %v8542_v19, %v3813_v36  ;;  %v3946_v27 = vadd.f32 %v8542_v19, %v3683_v14  ;;  %v8879_v1 = vpop.f32.mrf.mxu0  ;;  %v8881_v38 = vpop.f32.mrf.mxu1 }
 0x102   :  { %6124 = vst.msk [vmem:[%s11239_s4 + $0x228] sm:$0xf] %vm5985_vm4, %v6900_v3  ;;  %5994 = vst.msk [vmem:[%s11239_s4 + $0x20] sm:$0xf] %vm5985_vm4, %v6770_v4  ;;  %v4841_v30 = vsel %vm4329_vm11, %v4073_v45, %v4585_v22  ;;  %v3811_v31 = vmul.f32 %v8531_v11, %v3548_v37  ;;  %v3688_v32 = vmul.f32 %v8531_v11, %v3425_v50  ;;  %v3424_v37 = vld [vmem:[#allocation2 + $0x68] sm:$0xff] }
 0x103   :  { %v3816_v16 = vmul.f32 %v8531_v11, %v3553_v51  ;;  %v6898_v35 = vpack.c.bf16 %v4841_v30, %v4841_v30  ;;  %v4716_v55 = vsel %vm4204_vm12, %v3948_v25, %v4460_v23  ;;  %vm4332_vm13 = vcmp.ge.f32.partialorder %v4076_v26, 0.0  ;;  %v8897_v57 = vpop.f32.mrf.mxu0  ;;  %v8899_v58 = vpop.f32.mrf.mxu1  ;;  %v3552_v50 = vld [vmem:[#allocation2 + $0x468] sm:$0xff]  ;;  %v3429_v51 = vld [vmem:[#allocation2 + $0x90] sm:$0xff] }
 0x104   :  { %v4588_v56 = vmul.f32 0.2, %v4076_v26  ;;  %v6773_v42 = vpack.c.bf16 %v4716_v55, %v4716_v55  ;;  %vm4202_vm14 = vcmp.ge.f32.partialorder %v3946_v27, 0.0  ;;  %v4458_v43 = vmul.f32 0.2, %v3946_v27 }
 0x105   :  { %v4074_v46 = vadd.f32 %v8542_v19, %v3811_v31  ;;  %6122 = vst.msk [vmem:[%s11239_s4 + $0x220] sm:$0xf] %vm5985_vm4, %v6898_v35  ;;  %v3951_v49 = vadd.f32 %v8542_v19, %v3688_v32  ;;  %v4079_v52 = vadd.f32 %v8542_v19, %v3816_v16  ;;  %v3686_v53 = vmul.f32 %v8531_v11, %v3423_v34  ;;  %v8905_v6 = vpop.f32.mrf.mxu0  ;;  %v8908_v12 = vpop.f32.mrf.mxu1 }
 0x106   :  { %v4844_v48 = vsel %vm4332_vm13, %v4076_v26, %v4588_v56  ;;  %5997 = vst.msk [vmem:[%s11239_s4 + $0x2c] sm:$0xf] %vm5985_vm4, %v6773_v42  ;;  %v4714_v60 = vsel %vm4202_vm14, %v3946_v27, %v4458_v43  ;;  %7277 = vmatmul.mubr.msk.bf16.gmra.mxu0 %vm1446_vm2, %v7542_v41  ;;  %v3814_v36 = vmul.f32 %v8531_v11, %v3551_v54  ;;  %v3557_v42 = vld [vmem:[#allocation2 + $0x490] sm:$0xff] }
 0x107   :  { %v6901_v59 = vpack.c.bf16 %v4844_v48, %v4844_v48  ;;  %vm4330_vm15 = vcmp.ge.f32.partialorder %v4074_v46, 0.0  ;;  %v4586_v61 = vmul.f32 0.2, %v4074_v46  ;;  %v6771_v0 = vpack.c.bf16 %v4714_v60, %v4714_v60  ;;  %7405 = vmatmul.mubr.msk.bf16.gmra.mxu1 %vm1446_vm2, %v7543_v47  ;;  %v8923_v3 = vpop.f32.mrf.mxu0  ;;  %v8925_v4 = vpop.f32.mrf.mxu1 }
 0x108   :  { %vm4207_vm0 = vcmp.ge.f32.partialorder %v3951_v49, 0.0  ;;  %v4463_v5 = vmul.f32 0.2, %v3951_v49  ;;  %vm4335_vm1 = vcmp.ge.f32.partialorder %v4079_v52, 0.0  ;;  %v4591_v45 = vmul.f32 0.2, %v4079_v52 }
 0x109   :  { %6125 = vst.msk [vmem:[%s11239_s4 + $0x22c] sm:$0xf] %vm5985_vm4, %v6901_v59  ;;  %v4842_v44 = vsel %vm4330_vm15, %v4074_v46, %v4586_v61  ;;  %v3949_v25 = vadd.f32 %v8542_v19, %v3686_v53  ;;  %5995 = vst.msk [vmem:[%s11239_s4 + $0x24] sm:$0xf] %vm5985_vm4, %v6771_v0  ;;  %v3689_v13 = vmul.f32 %v8531_v11, %v3426_v62  ;;  %v8935_v16 = vpop.f32.mrf.mxu0  ;;  %v8937_v34 = vpop.f32.mrf.mxu1 }
 0x10a   :  { %v6899_v8 = vpack.c.bf16 %v4842_v44, %v4842_v44  ;;  %v4719_v9 = vsel %vm4207_vm0, %v3951_v49, %v4463_v5  ;;  %v3817_v14 = vmul.f32 %v8531_v11, %v3554_v63  ;;  %v4847_v23 = vsel %vm4335_vm1, %v4079_v52, %v4591_v45  ;;  %v3427_v45 = vld [vmem:[#allocation2 + $0x80] sm:$0xff] }
 0x10b   :  { %v6776_v22 = vpack.c.bf16 %v4719_v9, %v4719_v9  ;;  %vm4205_vm2 = vcmp.ge.f32.partialorder %v3949_v25, 0.0  ;;  %v4461_v26 = vmul.f32 0.2, %v3949_v25  ;;  %v6904_v27 = vpack.c.bf16 %v4847_v23, %v4847_v23  ;;  %v8950_v47 = vpop.f32.mrf.mxu0  ;;  %v8952_v48 = vpop.f32.mrf.mxu1 }
 0x10c   :  { %6123 = vst.msk [vmem:[%s11239_s4 + $0x224] sm:$0xf] %vm5985_vm4, %v6899_v8  ;;  %v4077_v30 = vadd.f32 %v8542_v19, %v3814_v36  ;;  %v3952_v31 = vadd.f32 %v8542_v19, %v3689_v13  ;;  %v4080_v32 = vadd.f32 %v8542_v19, %v3817_v14  ;;  %v3687_v55 = vmul.f32 %v8531_v11, %v3424_v37  ;;  %v3430_v36 = vld [vmem:[#allocation2 + $0x98] sm:$0xff] }
 0x10d   :  { %6000 = vst.msk [vmem:[%s11239_s4 + $0x38] sm:$0xf] %vm5985_vm4, %v6776_v22  ;;  %v4717_v35 = vsel %vm4205_vm2, %v3949_v25, %v4461_v26  ;;  %v3815_v56 = vmul.f32 %v8531_v11, %v3552_v50  ;;  %v3692_v41 = vmul.f32 %v8531_v11, %v3429_v51  ;;  %6128 = vst.msk [vmem:[%s11239_s4 + $0x238] sm:$0xf] %vm5985_vm4, %v6904_v27  ;;  %v8962_v62 = vpop.f32.mrf.mxu0  ;;  %v8964_v63 = vpop.f32.mrf.mxu1  ;;  %v3555_v25 = vld [vmem:[#allocation2 + $0x480] sm:$0xff] }
 0x10e   :  { %v6774_v43 = vpack.c.bf16 %v4717_v35, %v4717_v35  ;;  %vm4333_vm5 = vcmp.ge.f32.partialorder %v4077_v30, 0.0  ;;  %v4589_v46 = vmul.f32 0.2, %v4077_v30  ;;  %vm4208_vm6 = vcmp.ge.f32.partialorder %v3952_v31, 0.0 }
 0x10f   :  { %v4464_v49 = vmul.f32 0.2, %v3952_v31  ;;  %vm4336_vm7 = vcmp.ge.f32.partialorder %v4080_v32, 0.0  ;;  %v4592_v52 = vmul.f32 0.2, %v4080_v32  ;;  %v3950_v53 = vadd.f32 %v8542_v19, %v3687_v55  ;;  %v8966_v14 = vpop.f32.mrf.mxu0  ;;  %v8968_v37 = vpop.f32.mrf.mxu1 }
 0x110   :  { %5998 = vst.msk [vmem:[%s11239_s4 + $0x30] sm:$0xf] %vm5985_vm4, %v6774_v43  ;;  %v4845_v54 = vsel %vm4333_vm5, %v4077_v30, %v4589_v46  ;;  %v4078_v59 = vadd.f32 %v8542_v19, %v3815_v56  ;;  %v3955_v60 = vadd.f32 %v8542_v19, %v3692_v41  ;;  %v3820_v61 = vmul.f32 %v8531_v11, %v3557_v42  ;;  %v428_v43 = vld [vmem:[#allocation2 + $0x488] sm:$0xff] }
 0x111   :  { %v6902_v0 = vpack.c.bf16 %v4845_v54, %v4845_v54  ;;  %v4720_v5 = vsel %vm4208_vm6, %v3952_v31, %v4464_v49  ;;  %v4848_v44 = vsel %vm4336_vm7, %v4080_v32, %v4592_v52  ;;  %vm4206_vm8 = vcmp.ge.f32.partialorder %v3950_v53, 0.0  ;;  %v3558_v31 = vld [vmem:[#allocation2 + $0x498] sm:$0xff]  ;;  %v300_v32 = vld [vmem:[#allocation2 + $0x88] sm:$0xff]  ;;  %v8987_v35 = vpop.f32.mrf.mxu0  ;;  %v8989_v55 = vpop.f32.mrf.mxu1 }
 0x112   :  { %v6777_v8 = vpack.c.bf16 %v4720_v5, %v4720_v5  ;;  %v6905_v9 = vpack.c.bf16 %v4848_v44, %v4848_v44  ;;  %v4462_v13 = vmul.f32 0.2, %v3950_v53  ;;  %vm4334_vm9 = vcmp.ge.f32.partialorder %v4078_v59, 0.0  ;;  %v305_v44 = vld [vmem:[#allocation2 + $0xb0] sm:$0xff] }
 0x113   :  { %6126 = vst.msk [vmem:[%s11239_s4 + $0x230] sm:$0xf] %vm5985_vm4, %v6902_v0  ;;  %v4590_v50 = vmul.f32 0.2, %v4078_v59  ;;  %vm4211_vm10 = vcmp.ge.f32.partialorder %v3955_v60, 0.0  ;;  %v4083_v22 = vadd.f32 %v8542_v19, %v3820_v61  ;;  %v3690_v26 = vmul.f32 %v8531_v11, %v3427_v45  ;;  %v8993_v54 = vpop.f32.mrf.mxu0  ;;  %v8995_v61 = vpop.f32.mrf.mxu1 }
 0x114   :  { %v4467_v51 = vmul.f32 0.2, %v3955_v60  ;;  %6001 = vst.msk [vmem:[%s11239_s4 + $0x3c] sm:$0xf] %vm5985_vm4, %v6777_v8  ;;  %6129 = vst.msk [vmem:[%s11239_s4 + $0x23c] sm:$0xf] %vm5985_vm4, %v6905_v9  ;;  %v4718_v23 = vsel %vm4206_vm8, %v3950_v53, %v4462_v13  ;;  %v3818_v27 = vmul.f32 %v8531_v11, %v3555_v25  ;;  %v3693_v30 = vmul.f32 %v8531_v11, %v3430_v36 }
 0x115   :  { %v6775_v56 = vpack.c.bf16 %v4718_v23, %v4718_v23  ;;  %v4846_v41 = vsel %vm4334_vm9, %v4078_v59, %v4590_v50  ;;  %vm4339_vm11 = vcmp.ge.f32.partialorder %v4083_v22, 0.0  ;;  %v4595_v52 = vmul.f32 0.2, %v4083_v22  ;;  %v303_v8 = vld [vmem:[#allocation2 + $0xa0] sm:$0xff]  ;;  %v9017_v9 = vpop.f32.mrf.mxu1  ;;  %v306_v23 = vld [vmem:[#allocation2 + $0xb8] sm:$0xff] }
 0x116   :  { %v4723_v42 = vsel %vm4211_vm10, %v3955_v60, %v4467_v51  ;;  %v6903_v46 = vpack.c.bf16 %v4846_v41, %v4846_v41  ;;  %v3953_v53 = vadd.f32 %v8542_v19, %v3690_v26  ;;  %v4081_v0 = vadd.f32 %v8542_v19, %v3818_v27  ;;  %v431_v51 = vld [vmem:[#allocation2 + $0x4a0] sm:$0xff] }
 0x117   :  { %v6780_v49 = vpack.c.bf16 %v4723_v42, %v4723_v42  ;;  %5999 = vst.msk [vmem:[%s11239_s4 + $0x34] sm:$0xf] %vm5985_vm4, %v6775_v56  ;;  %v3956_v59 = vadd.f32 %v8542_v19, %v3693_v30  ;;  %v3821_v60 = vmul.f32 %v8531_v11, %v3558_v31  ;;  %v2912_v5 = vadd.f32 %v8762_v15, %v300_v32  ;;  %v433_v11 = vld [vmem:[#allocation2 + $0x4b0] sm:$0xff]  ;;  %v9015_v15 = vpop.f32.mrf.mxu0  ;;  %v434_v30 = vld [vmem:[#allocation2 + $0x4b8] sm:$0xff]  ;;  %v304_v31 = vld [vmem:[#allocation2 + $0xa8] sm:$0xff]  ;;  %v9025_v41 = vpop.f32.mrf.mxu1 }
 0x118   :  { %6127 = vst.msk [vmem:[%s11239_s4 + $0x234] sm:$0xf] %vm5985_vm4, %v6903_v46  ;;  %v4851_v45 = vsel %vm4339_vm11, %v4083_v22, %v4595_v52  ;;  %vm4209_vm12 = vcmp.ge.f32.partialorder %v3953_v53, 0.0  ;;  %v4465_v25 = vmul.f32 0.2, %v3953_v53  ;;  %v3040_v36 = vadd.f32 %v8764_v18, %v428_v43  ;;  %v432_v32 = vld [vmem:[#allocation2 + $0x4a8] sm:$0xff] }
 0x119   :  { %6004 = vst.msk [vmem:[%s11239_s4 + $0x48] sm:$0xf] %vm5985_vm4, %v6780_v49  ;;  %v6908_v13 = vpack.c.bf16 %v4851_v45, %v4851_v45  ;;  %vm4337_vm13 = vcmp.ge.f32.partialorder %v4081_v0, 0.0  ;;  %v4593_v50 = vmul.f32 0.2, %v4081_v0  ;;  %vm4212_vm14 = vcmp.ge.f32.partialorder %v3956_v59, 0.0  ;;  %v9023_v56 = vpop.f32.mrf.mxu0 }
 0x11a   :  { %3169 = vst.msk [vmem:[#allocation2 + $0x88] sm:$0xff] %vm22_vm3, %v2912_v5  ;;  %v4721_v26 = vsel %vm4209_vm12, %v3953_v53, %v4465_v25  ;;  %v4468_v22 = vmul.f32 0.2, %v3956_v59  ;;  %v4084_v27 = vadd.f32 %v8542_v19, %v3821_v60  ;;  %3297 = vst.msk [vmem:[#allocation2 + $0x488] sm:$0xff] %vm22_vm3, %v3040_v36  ;;  %v2917_v18 = vadd.f32 %v8787_v33, %v305_v44  ;;  %v309_v33 = vld [vmem:[#allocation2 + $0xd0] sm:$0xff]  ;;  %v307_v52 = vld [vmem:[#allocation2 + $0xc0] sm:$0xff] }
 0x11b   :  { %6132 = vst.msk [vmem:[%s11239_s4 + $0x248] sm:$0xf] %vm5985_vm4, %v6908_v13  ;;  %v6778_v42 = vpack.c.bf16 %v4721_v26, %v4721_v26  ;;  %v4849_v43 = vsel %vm4337_vm13, %v4081_v0, %v4593_v50  ;;  %v3045_v19 = vadd.f32 %v8790_v17, %v433_v11  ;;  %v2915_v46 = vadd.f32 %v8802_v39, %v303_v8  ;;  %v437_v49 = vld [vmem:[#allocation2 + $0x4d0] sm:$0xff]  ;;  %v435_v44 = vld [vmem:[#allocation2 + $0x4c0] sm:$0xff]  ;;  %v310_v45 = vld [vmem:[#allocation2 + $0xd8] sm:$0xff]  ;;  %v9036_v36 = vpop.f32.mrf.mxu0  ;;  %v9038_v0 = vpop.f32.mrf.mxu1 }
 0x11c   :  { %v6906_v53 = vpack.c.bf16 %v4849_v43, %v4849_v43  ;;  %v4724_v60 = vsel %vm4212_vm14, %v3956_v59, %v4468_v22  ;;  %vm4340_vm15 = vcmp.ge.f32.partialorder %v4084_v27, 0.0  ;;  %v4596_v5 = vmul.f32 0.2, %v4084_v27  ;;  %3174 = vst.msk [vmem:[#allocation2 + $0xb0] sm:$0xff] %vm22_vm3, %v2917_v18  ;;  %v438_v25 = vld [vmem:[#allocation2 + $0x4d8] sm:$0xff]  ;;  %v308_v8 = vld [vmem:[#allocation2 + $0xc8] sm:$0xff] }
 0x11d   :  { %6002 = vst.msk [vmem:[%s11239_s4 + $0x40] sm:$0xf] %vm5985_vm4, %v6778_v42  ;;  %v6781_v17 = vpack.c.bf16 %v4724_v60, %v4724_v60  ;;  %v3043_v39 = vadd.f32 %v8804_v40, %v431_v51  ;;  %v2918_v59 = vadd.f32 %v8817_v2, %v306_v23  ;;  %v3046_v11 = vadd.f32 %v8819_v10, %v434_v30  ;;  %v436_v13 = vld [vmem:[#allocation2 + $0x4c8] sm:$0xff]  ;;  %v313_v50 = vld [vmem:[#allocation2 + $0xf0] sm:$0xff]  ;;  %v311_v2 = vld [vmem:[#allocation2 + $0xe0] sm:$0xff]  ;;  %v9057_v10 = vpop.f32.mrf.mxu0  ;;  %v9059_v30 = vpop.f32.mrf.mxu1 }
 0x11e   :  { %3302 = vst.msk [vmem:[#allocation2 + $0x4b0] sm:$0xff] %vm22_vm3, %v3045_v19  ;;  %3172 = vst.msk [vmem:[#allocation2 + $0xa0] sm:$0xff] %vm22_vm3, %v2915_v46  ;;  %v4852_v26 = vsel %vm4340_vm15, %v4084_v27, %v4596_v5  ;;  %v2916_v22 = vadd.f32 %v8834_v24, %v304_v31  ;;  %v3044_v18 = vadd.f32 %v8836_v7, %v432_v32  ;;  %v441_v51 = vld [vmem:[#allocation2 + $0x4f0] sm:$0xff]  ;;  %v439_v23 = vld [vmem:[#allocation2 + $0x4e0] sm:$0xff] }
 0x11f   :  { %6130 = vst.msk [vmem:[%s11239_s4 + $0x240] sm:$0xf] %vm5985_vm4, %v6906_v53  ;;  %v2921_v40 = vadd.f32 %v8850_v20, %v309_v33  ;;  %6005 = vst.msk [vmem:[%s11239_s4 + $0x4c] sm:$0xf] %vm5985_vm4, %v6781_v17  ;;  %v6909_v42 = vpack.c.bf16 %v4852_v26, %v4852_v26  ;;  %v3049_v24 = vadd.f32 %v8853_v21, %v437_v49  ;;  %v314_v27 = vld [vmem:[#allocation2 + $0xf8] sm:$0xff]  ;;  %v312_v32 = vld [vmem:[#allocation2 + $0xe8] sm:$0xff]  ;;  %v9078_v49 = vpop.f32.mrf.mxu0 }
 0x120   :  { %3300 = vst.msk [vmem:[#allocation2 + $0x4a0] sm:$0xff] %vm22_vm3, %v3043_v39  ;;  %3175 = vst.msk [vmem:[#allocation2 + $0xb8] sm:$0xff] %vm22_vm3, %v2918_v59  ;;  %v2919_v7 = vadd.f32 %v8863_v28, %v307_v52  ;;  %v3047_v20 = vadd.f32 %v8865_v29, %v435_v44  ;;  %v442_v31 = vld [vmem:[#allocation2 + $0x4f8] sm:$0xff]  ;;  %v2922_v19 = vadd.f32 %v8879_v1, %v310_v45  ;;  %v440_v33 = vld [vmem:[#allocation2 + $0x4e8] sm:$0xff]  ;;  %v9080_v52 = vpop.f32.mrf.mxu1 }
 0x121   :  { %3303 = vst.msk [vmem:[#allocation2 + $0x4b8] sm:$0xff] %vm22_vm3, %v3046_v11  ;;  %v3428_v43 = vld [vmem:[#allocation2 + $0x88] sm:$0xff]  ;;  %3173 = vst.msk [vmem:[#allocation2 + $0xa8] sm:$0xff] %vm22_vm3, %v2916_v22  ;;  %v3050_v46 = vadd.f32 %v8881_v38, %v438_v25  ;;  %v2920_v21 = vadd.f32 %v8897_v57, %v308_v8  ;;  %v3048_v28 = vadd.f32 %v8899_v58, %v436_v13  ;;  %v317_v29 = vld [vmem:[#allocation2 + $0x110] sm:$0xff]  ;;  %v9106_v17 = vpop.f32.mrf.mxu0 }
 0x122   :  { %3301 = vst.msk [vmem:[#allocation2 + $0x4a8] sm:$0xff] %vm22_vm3, %v3044_v18  ;;  %3178 = vst.msk [vmem:[#allocation2 + $0xd0] sm:$0xff] %vm22_vm3, %v2921_v40  ;;  %v9089_v1 = vld [vmem:[%s11237_s2] ss:$0 sm:$0xff]  ;;  %v3556_v57 = vld [vmem:[#allocation2 + $0x488] sm:$0xff]  ;;  %v2925_v58 = vadd.f32 %v8905_v6, %v313_v50  ;;  %v3053_v53 = vadd.f32 %v8908_v12, %v441_v51  ;;  %v2923_v60 = vadd.f32 %v8923_v3, %v311_v2  ;;  %v9108_v3 = vpop.f32.mrf.mxu1 }
 0x123   :  { %6133 = vst.msk [vmem:[%s11239_s4 + $0x24c] sm:$0xf] %vm5985_vm4, %v6909_v42  ;;  %v3691_v38 = vmul.f32 %v9089_v1, %v3428_v43  ;;  %v445_v5 = vld [vmem:[#allocation2 + $0x510] sm:$0xff]  ;;  %v315_v44 = vld [vmem:[#allocation2 + $0x100] sm:$0xff]  ;;  %v3819_v45 = vmul.f32 %v9089_v1, %v3556_v57  ;;  %v3051_v25 = vadd.f32 %v8925_v4, %v439_v23  ;;  %v2926_v6 = vadd.f32 %v8935_v16, %v314_v27 }
 0x124   :  { %3306 = vst.msk [vmem:[#allocation2 + $0x4d0] sm:$0xff] %vm22_vm3, %v3049_v24  ;;  %3176 = vst.msk [vmem:[#allocation2 + $0xc0] sm:$0xff] %vm22_vm3, %v2919_v7  ;;  %v3054_v12 = vadd.f32 %v8937_v34, %v442_v31  ;;  %v9113_v39 = vld [vmem:[%s11238_s3] ss:$0 sm:$0xff]  ;;  %v3433_v11 = vld [vmem:[#allocation2 + $0xb0] sm:$0xff]  ;;  %v2924_v4 = vadd.f32 %v8950_v47, %v312_v32  ;;  %v3052_v16 = vadd.f32 %v8952_v48, %v440_v33  ;;  %v9129_v48 = vpop.f32.mrf.mxu0 }
 0x125   :  { %3304 = vst.msk [vmem:[#allocation2 + $0x4c0] sm:$0xff] %vm22_vm3, %v3047_v20  ;;  %3179 = vst.msk [vmem:[#allocation2 + $0xd8] sm:$0xff] %vm22_vm3, %v2922_v19  ;;  %v3954_v59 = vadd.f32 %v9113_v39, %v3691_v38  ;;  %v2929_v34 = vadd.f32 %v8962_v62, %v317_v29  ;;  %v443_v8 = vld [vmem:[#allocation2 + $0x500] sm:$0xff]  ;;  %v4082_v13 = vadd.f32 %v9113_v39, %v3819_v45  ;;  %v3561_v26 = vld [vmem:[#allocation2 + $0x4b0] sm:$0xff]  ;;  %v9131_v62 = vpop.f32.mrf.mxu1 }
 0x126   :  { %3307 = vst.msk [vmem:[#allocation2 + $0x4d8] sm:$0xff] %vm22_vm3, %v3050_v46  ;;  %3177 = vst.msk [vmem:[#allocation2 + $0xc8] sm:$0xff] %vm22_vm3, %v2920_v21  ;;  %v3696_v50 = vmul.f32 %v9089_v1, %v3433_v11  ;;  %v3431_v22 = vld [vmem:[#allocation2 + $0xa0] sm:$0xff]  ;;  %v3057_v18 = vadd.f32 %v8964_v63, %v445_v5  ;;  %v2927_v47 = vadd.f32 %v8966_v14, %v315_v44  ;;  %v9142_v24 = vpop.f32.mrf.mxu0 }
 0x127   :  { %3305 = vst.msk [vmem:[#allocation2 + $0x4c8] sm:$0xff] %vm22_vm3, %v3048_v28  ;;  %3182 = vst.msk [vmem:[#allocation2 + $0xf0] sm:$0xff] %vm22_vm3, %v2925_v58  ;;  %vm4210_vm0 = vcmp.ge.f32.partialorder %v3954_v59, 0.0  ;;  %v4466_v40 = vmul.f32 0.2, %v3954_v59  ;;  %v3824_v51 = vmul.f32 %v9089_v1, %v3561_v26  ;;  %v3694_v2 = vmul.f32 %v9089_v1, %v3431_v22  ;;  %v3559_v23 = vld [vmem:[#allocation2 + $0x4a0] sm:$0xff]  ;;  %v9144_v7 = vpop.f32.mrf.mxu1 }
 0x128   :  { %3310 = vst.msk [vmem:[#allocation2 + $0x4f0] sm:$0xff] %vm22_vm3, %v3053_v53  ;;  %3180 = vst.msk [vmem:[#allocation2 + $0xe0] sm:$0xff] %vm22_vm3, %v2923_v60  ;;  %vm4338_vm1 = vcmp.ge.f32.partialorder %v4082_v13, 0.0  ;;  %v4594_v63 = vmul.f32 0.2, %v4082_v13  ;;  %v3959_v14 = vadd.f32 %v9113_v39, %v3696_v50  ;;  %v3055_v42 = vadd.f32 %v8968_v37, %v443_v8  ;;  %v3434_v43 = vld [vmem:[#allocation2 + $0xb8] sm:$0xff]  ;;  %v9151_v37 = vpop.f32.mrf.mxu0 }
 0x129   :  { %3308 = vst.msk [vmem:[#allocation2 + $0x4e0] sm:$0xff] %vm22_vm3, %v3051_v25  ;;  %3183 = vst.msk [vmem:[#allocation2 + $0xf8] sm:$0xff] %vm22_vm3, %v2926_v6  ;;  %v4722_v20 = vsel %vm4210_vm0, %v3954_v59, %v4466_v40  ;;  %v4087_v27 = vadd.f32 %v9113_v39, %v3824_v51  ;;  %v3957_v31 = vadd.f32 %v9113_v39, %v3694_v2  ;;  %v3562_v28 = vld [vmem:[#allocation2 + $0x4b8] sm:$0xff]  ;;  %v3432_v33 = vld [vmem:[#allocation2 + $0xa8] sm:$0xff]  ;;  %v9153_v29 = vpop.f32.mrf.mxu1 }
 0x12a   :  { %3311 = vst.msk [vmem:[#allocation2 + $0x4f8] sm:$0xff] %vm22_vm3, %v3054_v12  ;;  %3181 = vst.msk [vmem:[#allocation2 + $0xe8] sm:$0xff] %vm22_vm3, %v2924_v4  ;;  %v3822_v32 = vmul.f32 %v9089_v1, %v3559_v23  ;;  %v6779_v19 = vpack.c.bf16 %v4722_v20, %v4722_v20  ;;  %v4850_v46 = vsel %vm4338_vm1, %v4082_v13, %v4594_v63  ;;  %vm4215_vm2 = vcmp.ge.f32.partialorder %v3959_v14, 0.0  ;;  %v9161_v44 = vpop.f32.mrf.mxu0  ;;  %v3560_v11 = vld [vmem:[#allocation2 + $0x4a8] sm:$0xff]  ;;  %v3437_v4 = vld [vmem:[#allocation2 + $0xd0] sm:$0xff] }
 0x12b   :  { %3309 = vst.msk [vmem:[#allocation2 + $0x4e8] sm:$0xff] %vm22_vm3, %v3052_v16  ;;  %3186 = vst.msk [vmem:[#allocation2 + $0x110] sm:$0xff] %vm22_vm3, %v2929_v34  ;;  %v4471_v21 = vmul.f32 0.2, %v3959_v14  ;;  %v6907_v38 = vpack.c.bf16 %v4850_v46, %v4850_v46  ;;  %vm4343_vm5 = vcmp.ge.f32.partialorder %v4087_v27, 0.0  ;;  %vm4213_vm6 = vcmp.ge.f32.partialorder %v3957_v31, 0.0  ;;  %v9163_v45 = vpop.f32.mrf.mxu1 }
 0x12c   :  { %3314 = vst.msk [vmem:[#allocation2 + $0x510] sm:$0xff] %vm22_vm3, %v3057_v18  ;;  %3184 = vst.msk [vmem:[#allocation2 + $0x100] sm:$0xff] %vm22_vm3, %v2927_v47  ;;  %v4599_v57 = vmul.f32 0.2, %v4087_v27  ;;  %v4469_v53 = vmul.f32 0.2, %v3957_v31  ;;  %v4085_v60 = vadd.f32 %v9113_v39, %v3822_v32  ;;  %v3697_v5 = vmul.f32 %v9089_v1, %v3434_v43  ;;  %v9172_v50 = vpop.f32.mrf.mxu0 }
 0x12d   :  { %3312 = vst.msk [vmem:[#allocation2 + $0x500] sm:$0xff] %vm22_vm3, %v3055_v42  ;;  %v4727_v58 = vsel %vm4215_vm2, %v3959_v14, %v4471_v21  ;;  %v3825_v12 = vmul.f32 %v9089_v1, %v3562_v28  ;;  %v3695_v59 = vmul.f32 %v9089_v1, %v3432_v33  ;;  %v3565_v16 = vld [vmem:[#allocation2 + $0x4d0] sm:$0xff]  ;;  %v9174_v26 = vpop.f32.mrf.mxu1  ;;  %v3823_v2 = vmul.f32 %v9089_v1, %v3560_v11  ;;  %v3435_v23 = vld [vmem:[#allocation2 + $0xc0] sm:$0xff] }
 0x12e   :  { %6003 = vst.msk [vmem:[%s11239_s4 + $0x44] sm:$0xf] %vm5985_vm4, %v6779_v19  ;;  %6131 = vst.msk [vmem:[%s11239_s4 + $0x244] sm:$0xf] %vm5985_vm4, %v6907_v38  ;;  %v6784_v25 = vpack.c.bf16 %v4727_v58, %v4727_v58  ;;  %v4855_v6 = vsel %vm4343_vm5, %v4087_v27, %v4599_v57  ;;  %v4725_v8 = vsel %vm4213_vm6, %v3957_v31, %v4469_v53  ;;  %vm4341_vm7 = vcmp.ge.f32.partialorder %v4085_v60, 0.0  ;;  %v9190_v42 = vpop.f32.mrf.mxu0 }
 0x12f   :  { %v6912_v34 = vpack.c.bf16 %v4855_v6, %v4855_v6  ;;  %v4597_v13 = vmul.f32 0.2, %v4085_v60  ;;  %v6782_v22 = vpack.c.bf16 %v4725_v8, %v4725_v8  ;;  %v3960_v18 = vadd.f32 %v9113_v39, %v3697_v5  ;;  %v9192_v20 = vpop.f32.mrf.mxu1  ;;  %v3563_v5 = vld [vmem:[#allocation2 + $0x4c0] sm:$0xff]  ;;  %v3566_v6 = vld [vmem:[#allocation2 + $0x4d8] sm:$0xff] }
 0x130   :  { %6008 = vst.msk [vmem:[%s11239_s4 + $0x58] sm:$0xf] %vm5985_vm4, %v6784_v25  ;;  %v4088_v47 = vadd.f32 %v9113_v39, %v3825_v12  ;;  %v3958_v40 = vadd.f32 %v9113_v39, %v3695_v59  ;;  %v3700_v63 = vmul.f32 %v9089_v1, %v3437_v4  ;;  %v3828_v14 = vmul.f32 %v9089_v1, %v3565_v16  ;;  %v9199_v46 = vpop.f32.mrf.mxu0  ;;  %v3438_v25 = vld [vmem:[#allocation2 + $0xd8] sm:$0xff] }
 0x131   :  { %6136 = vst.msk [vmem:[%s11239_s4 + $0x258] sm:$0xf] %vm5985_vm4, %v6912_v34  ;;  %v4853_v51 = vsel %vm4341_vm7, %v4085_v60, %v4597_v13  ;;  %6006 = vst.msk [vmem:[%s11239_s4 + $0x50] sm:$0xf] %vm5985_vm4, %v6782_v22  ;;  %vm4216_vm8 = vcmp.ge.f32.partialorder %v3960_v18, 0.0  ;;  %v4086_v19 = vadd.f32 %v9113_v39, %v3823_v2  ;;  %v9201_v21 = vpop.f32.mrf.mxu1  ;;  %v3698_v57 = vmul.f32 %v9089_v1, %v3435_v23 }
 0x132   :  { %v6910_v27 = vpack.c.bf16 %v4853_v51, %v4853_v51  ;;  %v4472_v31 = vmul.f32 0.2, %v3960_v18  ;;  %vm4344_vm9 = vcmp.ge.f32.partialorder %v4088_v47, 0.0  ;;  %v4600_v32 = vmul.f32 0.2, %v4088_v47  ;;  %v9210_v12 = vpop.f32.mrf.mxu0 }
 0x133   :  { %vm4214_vm10 = vcmp.ge.f32.partialorder %v3958_v40, 0.0  ;;  %v4470_v43 = vmul.f32 0.2, %v3958_v40  ;;  %v3963_v33 = vadd.f32 %v9113_v39, %v3700_v63  ;;  %v4091_v38 = vadd.f32 %v9113_v39, %v3828_v14  ;;  %v9212_v59 = vpop.f32.mrf.mxu1  ;;  %v3436_v63 = vld [vmem:[#allocation2 + $0xc8] sm:$0xff] }
 0x134   :  { %6134 = vst.msk [vmem:[%s11239_s4 + $0x250] sm:$0xf] %vm5985_vm4, %v6910_v27  ;;  %v4728_v28 = vsel %vm4216_vm8, %v3960_v18, %v4472_v31  ;;  %v4856_v53 = vsel %vm4344_vm9, %v4088_v47, %v4600_v32  ;;  %vm4342_vm11 = vcmp.ge.f32.partialorder %v4086_v19, 0.0  ;;  %v4598_v16 = vmul.f32 0.2, %v4086_v19  ;;  %v9219_v22 = vpop.f32.mrf.mxu0  ;;  %v3564_v14 = vld [vmem:[#allocation2 + $0x4c8] sm:$0xff] }
 0x135   :  { %v6785_v58 = vpack.c.bf16 %v4728_v28, %v4728_v28  ;;  %v4726_v60 = vsel %vm4214_vm10, %v3958_v40, %v4470_v43  ;;  %v6913_v11 = vpack.c.bf16 %v4856_v53, %v4856_v53  ;;  %vm4219_vm12 = vcmp.ge.f32.partialorder %v3963_v33, 0.0  ;;  %v9221_v18 = vpop.f32.mrf.mxu1  ;;  %v3441_v32 = vld [vmem:[#allocation2 + $0xf0] sm:$0xff] }
 0x136   :  { %v6783_v4 = vpack.c.bf16 %v4726_v60, %v4726_v60  ;;  %v4475_v34 = vmul.f32 0.2, %v3963_v33  ;;  %vm4347_vm13 = vcmp.ge.f32.partialorder %v4091_v38, 0.0  ;;  %v4603_v8 = vmul.f32 0.2, %v4091_v38 }
 0x137   :  { %6009 = vst.msk [vmem:[%s11239_s4 + $0x5c] sm:$0xf] %vm5985_vm4, %v6785_v58  ;;  %v3961_v13 = vadd.f32 %v9113_v39, %v3698_v57  ;;  %6137 = vst.msk [vmem:[%s11239_s4 + $0x25c] sm:$0xf] %vm5985_vm4, %v6913_v11  ;;  %v4854_v47 = vsel %vm4342_vm11, %v4086_v19, %v4598_v16  ;;  %v3826_v40 = vmul.f32 %v9089_v1, %v3563_v5  ;;  %v9247_v5 = vpop.f32.mrf.mxu1 }
 0x138   :  { %6007 = vst.msk [vmem:[%s11239_s4 + $0x54] sm:$0xf] %vm5985_vm4, %v6783_v4  ;;  %v3701_v51 = vmul.f32 %v9089_v1, %v3438_v25  ;;  %v3829_v2 = vmul.f32 %v9089_v1, %v3566_v6  ;;  %v6911_v23 = vpack.c.bf16 %v4854_v47, %v4854_v47  ;;  %v4731_v27 = vsel %vm4219_vm12, %v3963_v33, %v4475_v34  ;;  %v3569_v4 = vld [vmem:[#allocation2 + $0x4f0] sm:$0xff] }
 0x139   :  { %v4859_v31 = vsel %vm4347_vm13, %v4091_v38, %v4603_v8  ;;  %vm4217_vm14 = vcmp.ge.f32.partialorder %v3961_v13, 0.0  ;;  %v6788_v43 = vpack.c.bf16 %v4731_v27, %v4731_v27  ;;  %v4473_v57 = vmul.f32 0.2, %v3961_v13  ;;  %v9245_v38 = vpop.f32.mrf.mxu0 }
 0x13a   :  { %v6916_v28 = vpack.c.bf16 %v4859_v31, %v4859_v31  ;;  %v4089_v58 = vadd.f32 %v9113_v39, %v3826_v40  ;;  %6135 = vst.msk [vmem:[%s11239_s4 + $0x254] sm:$0xf] %vm5985_vm4, %v6911_v23  ;;  %v3964_v19 = vadd.f32 %v9113_v39, %v3701_v51  ;;  %v4092_v53 = vadd.f32 %v9113_v39, %v3829_v2  ;;  %v3439_v23 = vld [vmem:[#allocation2 + $0xe0] sm:$0xff]  ;;  %v9268_v31 = vpop.f32.mrf.mxu1 }
 0x13b   :  { %v3699_v60 = vmul.f32 %v9089_v1, %v3436_v63  ;;  %v3827_v33 = vmul.f32 %v9089_v1, %v3564_v14  ;;  %6012 = vst.msk [vmem:[%s11239_s4 + $0x68] sm:$0xf] %vm5985_vm4, %v6788_v43  ;;  %v4729_v25 = vsel %vm4217_vm14, %v3961_v13, %v4473_v57  ;;  %v3704_v11 = vmul.f32 %v9089_v1, %v3441_v32  ;;  %v9266_v27 = vpop.f32.mrf.mxu0  ;;  %v3567_v57 = vld [vmem:[#allocation2 + $0x4e0] sm:$0xff] }
 0x13c   :  { %6140 = vst.msk [vmem:[%s11239_s4 + $0x268] sm:$0xf] %vm5985_vm4, %v6916_v28  ;;  %vm4345_vm15 = vcmp.ge.f32.partialorder %v4089_v58, 0.0  ;;  %v4601_v6 = vmul.f32 0.2, %v4089_v58  ;;  %v6786_v16 = vpack.c.bf16 %v4729_v25, %v4729_v25  ;;  %vm4220_vm0 = vcmp.ge.f32.partialorder %v3964_v19, 0.0 }
 0x13d   :  { %v4476_v34 = vmul.f32 0.2, %v3964_v19  ;;  %vm4348_vm1 = vcmp.ge.f32.partialorder %v4092_v53, 0.0  ;;  %v4604_v47 = vmul.f32 0.2, %v4092_v53  ;;  %v3962_v40 = vadd.f32 %v9113_v39, %v3699_v60  ;;  %11240 = vst [vmem:[#allocation3_spill] sm:$0xff] %v9268_v31 }
 0x13e   :  { %v4857_v8 = vsel %vm4345_vm15, %v4089_v58, %v4601_v6  ;;  %v4090_v51 = vadd.f32 %v9113_v39, %v3827_v33  ;;  %6010 = vst.msk [vmem:[%s11239_s4 + $0x60] sm:$0xf] %vm5985_vm4, %v6786_v16  ;;  %v3967_v63 = vadd.f32 %v9113_v39, %v3704_v11  ;;  %v3832_v14 = vmul.f32 %v9089_v1, %v3569_v4  ;;  %v3442_v58 = vld [vmem:[#allocation2 + $0xf8] sm:$0xff] }
 0x13f   :  { %v6914_v13 = vpack.c.bf16 %v4857_v8, %v4857_v8  ;;  %v4732_v2 = vsel %vm4220_vm0, %v3964_v19, %v4476_v34  ;;  %v4860_v43 = vsel %vm4348_vm1, %v4092_v53, %v4604_v47  ;;  %vm4218_vm2 = vcmp.ge.f32.partialorder %v3962_v40, 0.0  ;;  %v3570_v8 = vld [vmem:[#allocation2 + $0x4f8] sm:$0xff]  ;;  %v3440_v47 = vld [vmem:[#allocation2 + $0xe8] sm:$0xff] }
 0x140   :  { %v6789_v32 = vpack.c.bf16 %v4732_v2, %v4732_v2  ;;  %v4474_v28 = vmul.f32 0.2, %v3962_v40  ;;  %v6917_v19 = vpack.c.bf16 %v4860_v43, %v4860_v43  ;;  %vm4346_vm5 = vcmp.ge.f32.partialorder %v4090_v51, 0.0  ;;  %v9288_v2 = vpop.f32.mrf.mxu1 }
 0x141   :  { %6138 = vst.msk [vmem:[%s11239_s4 + $0x260] sm:$0xf] %vm5985_vm4, %v6914_v13  ;;  %v4602_v60 = vmul.f32 0.2, %v4090_v51  ;;  %vm4223_vm6 = vcmp.ge.f32.partialorder %v3967_v63, 0.0  ;;  %v4095_v25 = vadd.f32 %v9113_v39, %v3832_v14  ;;  %v3702_v6 = vmul.f32 %v9089_v1, %v3439_v23  ;;  %v3568_v13 = vld [vmem:[#allocation2 + $0x4e8] sm:$0xff] }
 0x142   :  { %6013 = vst.msk [vmem:[%s11239_s4 + $0x6c] sm:$0xf] %vm5985_vm4, %v6789_v32  ;;  %v4730_v33 = vsel %vm4218_vm2, %v3962_v40, %v4474_v28  ;;  %v4479_v53 = vmul.f32 0.2, %v3967_v63  ;;  %6141 = vst.msk [vmem:[%s11239_s4 + $0x26c] sm:$0xf] %vm5985_vm4, %v6917_v19  ;;  %v3830_v16 = vmul.f32 %v9089_v1, %v3567_v57  ;;  %v3705_v34 = vmul.f32 %v9089_v1, %v3442_v58  ;;  %v9286_v40 = vpop.f32.mrf.mxu0 }
 0x143   :  { %v6787_v11 = vpack.c.bf16 %v4730_v33, %v4730_v33  ;;  %v4858_v4 = vsel %vm4346_vm5, %v4090_v51, %v4602_v60  ;;  %11241 = vst [vmem:[#allocation4_spill] sm:$0xff] %v9286_v40  ;;  %11242 = vst [vmem:[#allocation5_spill] sm:$0xff] %v9288_v2  ;;  %vm4351_vm7 = vcmp.ge.f32.partialorder %v4095_v25, 0.0  ;;  %v4607_v32 = vmul.f32 0.2, %v4095_v25  ;;  %v3445_v33 = vld [vmem:[#allocation2 + $0x110] sm:$0xff] }
 0x144   :  { %v6915_v14 = vpack.c.bf16 %v4858_v4, %v4858_v4  ;;  %v4735_v23 = vsel %vm4223_vm6, %v3967_v63, %v4479_v53  ;;  %v3965_v43 = vadd.f32 %v9113_v39, %v3702_v6  ;;  %v4093_v28 = vadd.f32 %v9113_v39, %v3830_v16  ;;  %v9311_v4 = vpop.f32.mrf.mxu1 }
 0x145   :  { %6011 = vst.msk [vmem:[%s11239_s4 + $0x64] sm:$0xf] %vm5985_vm4, %v6787_v11  ;;  %v6792_v51 = vpack.c.bf16 %v4735_v23, %v4735_v23  ;;  %v3968_v57 = vadd.f32 %v9113_v39, %v3705_v34  ;;  %v4863_v63 = vsel %vm4351_vm7, %v4095_v25, %v4607_v32  ;;  %v3833_v58 = vmul.f32 %v9089_v1, %v3570_v8  ;;  %v9309_v11 = vpop.f32.mrf.mxu0 }
 0x146   :  { %6139 = vst.msk [vmem:[%s11239_s4 + $0x264] sm:$0xf] %vm5985_vm4, %v6915_v14  ;;  %v3703_v19 = vmul.f32 %v9089_v1, %v3440_v47  ;;  %v3831_v60 = vmul.f32 %v9089_v1, %v3568_v13  ;;  %v6920_v53 = vpack.c.bf16 %v4863_v63, %v4863_v63  ;;  %vm4221_vm8 = vcmp.ge.f32.partialorder %v3965_v43, 0.0  ;;  %11243 = vst [vmem:[#allocation6_spill] sm:$0xff] %v9309_v11  ;;  %v3573_v63 = vld [vmem:[#allocation2 + $0x510] sm:$0xff]  ;;  %v3571_v11 = vld [vmem:[#allocation2 + $0x500] sm:$0xff] }
 0x147   :  { %6016 = vst.msk [vmem:[%s11239_s4 + $0x78] sm:$0xf] %vm5985_vm4, %v6792_v51  ;;  %v4477_v6 = vmul.f32 0.2, %v3965_v43  ;;  %vm4349_vm9 = vcmp.ge.f32.partialorder %v4093_v28, 0.0  ;;  %11244 = vst [vmem:[#allocation7_spill] sm:$0xff] %v9311_v4  ;;  %v4096_v34 = vadd.f32 %v9113_v39, %v3833_v58  ;;  %v3708_v14 = vmul.f32 %v9089_v1, %v3445_v33  ;;  %v9321_v31 = vpop.f32.mrf.mxu0 }
 0x148   :  { %v4605_v25 = vmul.f32 0.2, %v4093_v28  ;;  %vm4224_vm10 = vcmp.ge.f32.partialorder %v3968_v57, 0.0  ;;  %v4480_v16 = vmul.f32 0.2, %v3968_v57  ;;  %v3966_v47 = vadd.f32 %v9113_v39, %v3703_v19  ;;  %v3443_v4 = vld [vmem:[#allocation2 + $0x100] sm:$0xff] }
 0x149   :  { %6144 = vst.msk [vmem:[%s11239_s4 + $0x278] sm:$0xf] %vm5985_vm4, %v6920_v53  ;;  %v4733_v8 = vsel %vm4221_vm8, %v3965_v43, %v4477_v6  ;;  %v4094_v13 = vadd.f32 %v9113_v39, %v3831_v60  ;;  %vm4352_vm11 = vcmp.ge.f32.partialorder %v4096_v34, 0.0  ;;  %v4608_v40 = vmul.f32 0.2, %v4096_v34  ;;  %v9323_v43 = vpop.f32.mrf.mxu1 }
 0x14a   :  { %v6790_v23 = vpack.c.bf16 %v4733_v8, %v4733_v8  ;;  %v4861_v32 = vsel %vm4349_vm9, %v4093_v28, %v4605_v25  ;;  %v4736_v51 = vsel %vm4224_vm10, %v3968_v57, %v4480_v16  ;;  %vm4222_vm12 = vcmp.ge.f32.partialorder %v3966_v47, 0.0  ;;  %11245 = vst [vmem:[#allocation8_spill] sm:$0xff] %v9323_v43  ;;  %v318_v25 = vld [vmem:[#allocation2 + $0x118] sm:$0xff] }
 0x14b   :  { %v6918_v58 = vpack.c.bf16 %v4861_v32, %v4861_v32  ;;  %v6793_v2 = vpack.c.bf16 %v4736_v51, %v4736_v51  ;;  %v4478_v19 = vmul.f32 0.2, %v3966_v47  ;;  %vm4350_vm13 = vcmp.ge.f32.partialorder %v4094_v13, 0.0  ;;  %v446_v16 = vld [vmem:[#allocation2 + $0x518] sm:$0xff]  ;;  %v316_v32 = vld [vmem:[#allocation2 + $0x108] sm:$0xff] }
 0x14c   :  { %6014 = vst.msk [vmem:[%s11239_s4 + $0x70] sm:$0xf] %vm5985_vm4, %v6790_v23  ;;  %v4606_v28 = vmul.f32 0.2, %v4094_v13  ;;  %v3971_v57 = vadd.f32 %v9113_v39, %v3708_v14  ;;  %v4864_v60 = vsel %vm4352_vm11, %v4096_v34, %v4608_v40  ;;  %v3836_v33 = vmul.f32 %v9089_v1, %v3573_v63  ;;  %v444_v40 = vld [vmem:[#allocation2 + $0x508] sm:$0xff]  ;;  %v9344_v34 = vpop.f32.mrf.mxu0  ;;  %v9346_v63 = vpop.f32.mrf.mxu1 }
 0x14d   :  { %6142 = vst.msk [vmem:[%s11239_s4 + $0x270] sm:$0xf] %vm5985_vm4, %v6918_v58  ;;  %6017 = vst.msk [vmem:[%s11239_s4 + $0x7c] sm:$0xf] %vm5985_vm4, %v6793_v2  ;;  %v3706_v53 = vmul.f32 %v9089_v1, %v3443_v4  ;;  %v3834_v6 = vmul.f32 %v9089_v1, %v3571_v11  ;;  %v6921_v8 = vpack.c.bf16 %v4864_v60, %v4864_v60  ;;  %v319_v60 = vld [vmem:[#allocation2 + $0x120] sm:$0xff] }
 0x14e   :  { %v4734_v14 = vsel %vm4222_vm12, %v3966_v47, %v4478_v19  ;;  %v4862_v23 = vsel %vm4350_vm13, %v4094_v13, %v4606_v28  ;;  %vm4227_vm14 = vcmp.ge.f32.partialorder %v3971_v57, 0.0  ;;  %v4483_v43 = vmul.f32 0.2, %v3971_v57  ;;  %11246 = vst [vmem:[#allocation9_spill] sm:$0xff] %v9344_v34  ;;  %11247 = vst [vmem:[#allocation10_spill] sm:$0xff] %v9346_v63  ;;  %v321_v19 = vld [vmem:[#allocation2 + $0x130] sm:$0xff]  ;;  %v9371_v63 = vpop.f32.mrf.mxu0  ;;  %v9373_v34 = vpop.f32.mrf.mxu1 }
 0x14f   :  { %v6791_v51 = vpack.c.bf16 %v4734_v14, %v4734_v14  ;;  %v6919_v58 = vpack.c.bf16 %v4862_v23, %v4862_v23  ;;  %v4099_v2 = vadd.f32 %v9113_v39, %v3836_v33  ;;  %6145 = vst.msk [vmem:[%s11239_s4 + $0x27c] sm:$0xf] %vm5985_vm4, %v6921_v8  ;;  %v3969_v11 = vadd.f32 %v9113_v39, %v3706_v53  ;;  %v449_v28 = vld [vmem:[#allocation2 + $0x530] sm:$0xff]  ;;  %v320_v14 = vld [vmem:[#allocation2 + $0x128] sm:$0xff] }
 0x150   :  { %v4097_v4 = vadd.f32 %v9113_v39, %v3834_v6  ;;  %v2930_v47 = vadd.f32 %v8987_v35, %v318_v25  ;;  %v3058_v13 = vadd.f32 %v8989_v55, %v446_v16  ;;  %v4739_v33 = vsel %vm4227_vm14, %v3971_v57, %v4483_v43  ;;  %v447_v55 = vld [vmem:[#allocation2 + $0x520] sm:$0xff]  ;;  %v322_v6 = vld [vmem:[#allocation2 + $0x138] sm:$0xff]  ;;  %v448_v23 = vld [vmem:[#allocation2 + $0x528] sm:$0xff]  ;;  %11248 = vst [vmem:[#allocation11_spill] sm:$0xff] %v9373_v34 }
 0x151   :  { %6015 = vst.msk [vmem:[%s11239_s4 + $0x74] sm:$0xf] %vm5985_vm4, %v6791_v51  ;;  %6143 = vst.msk [vmem:[%s11239_s4 + $0x274] sm:$0xf] %vm5985_vm4, %v6919_v58  ;;  %vm4355_vm15 = vcmp.ge.f32.partialorder %v4099_v2, 0.0  ;;  %v2928_v35 = vadd.f32 %v8993_v54, %v316_v32  ;;  %v450_v25 = vld [vmem:[#allocation2 + $0x538] sm:$0xff]  ;;  %v6796_v16 = vpack.c.bf16 %v4739_v33, %v4739_v33  ;;  %v3056_v43 = vadd.f32 %v8995_v61, %v444_v40 }
 0x152   :  { %v4611_v53 = vmul.f32 0.2, %v4099_v2  ;;  %vm4225_vm0 = vcmp.ge.f32.partialorder %v3969_v11, 0.0  ;;  %v4481_v8 = vmul.f32 0.2, %v3969_v11  ;;  %vm4353_vm1 = vcmp.ge.f32.partialorder %v4097_v4, 0.0 }
 0x153   :  { %3187 = vst.msk [vmem:[#allocation2 + $0x118] sm:$0xff] %vm22_vm3, %v2930_v47  ;;  %3315 = vst.msk [vmem:[#allocation2 + $0x518] sm:$0xff] %vm22_vm3, %v3058_v13  ;;  %v4609_v58 = vmul.f32 0.2, %v4097_v4  ;;  %v2933_v54 = vadd.f32 %v9015_v15, %v321_v19  ;;  %v325_v57 = vld [vmem:[#allocation2 + $0x150] sm:$0xff]  ;;  %v323_v33 = vld [vmem:[#allocation2 + $0x140] sm:$0xff]  ;;  %v3061_v13 = vadd.f32 %v9017_v9, %v449_v28  ;;  %v2931_v61 = vadd.f32 %v9023_v56, %v319_v60 }
 0x154   :  { %v4867_v51 = vsel %vm4355_vm15, %v4099_v2, %v4611_v53  ;;  %3185 = vst.msk [vmem:[#allocation2 + $0x108] sm:$0xff] %vm22_vm3, %v2928_v35  ;;  %v453_v32 = vld [vmem:[#allocation2 + $0x550] sm:$0xff]  ;;  %v4737_v47 = vsel %vm4225_vm0, %v3969_v11, %v4481_v8  ;;  %v451_v15 = vld [vmem:[#allocation2 + $0x540] sm:$0xff]  ;;  %v326_v40 = vld [vmem:[#allocation2 + $0x158] sm:$0xff]  ;;  %v3059_v34 = vadd.f32 %v9025_v41, %v447_v55  ;;  %v3062_v56 = vadd.f32 %v9038_v0, %v450_v25 }
 0x155   :  { %6020 = vst.msk [vmem:[%s11239_s4 + $0x88] sm:$0xf] %vm5985_vm4, %v6796_v16  ;;  %v6924_v2 = vpack.c.bf16 %v4867_v51, %v4867_v51  ;;  %v454_v19 = vld [vmem:[#allocation2 + $0x558] sm:$0xff]  ;;  %v6794_v53 = vpack.c.bf16 %v4737_v47, %v4737_v47  ;;  %v4865_v35 = vsel %vm4353_vm1, %v4097_v4, %v4609_v58  ;;  %v2934_v16 = vadd.f32 %v9036_v36, %v322_v6  ;;  %v324_v51 = vld [vmem:[#allocation2 + $0x148] sm:$0xff]  ;;  %v329_v8 = vld [vmem:[#allocation2 + $0x170] sm:$0xff]  ;;  %v9408_v58 = vpop.f32.mrf.mxu1 }
 0x156   :  { %3313 = vst.msk [vmem:[#allocation2 + $0x508] sm:$0xff] %vm22_vm3, %v3056_v43  ;;  %3190 = vst.msk [vmem:[#allocation2 + $0x130] sm:$0xff] %vm22_vm3, %v2933_v54  ;;  %v452_v11 = vld [vmem:[#allocation2 + $0x548] sm:$0xff]  ;;  %v6922_v9 = vpack.c.bf16 %v4865_v35, %v4865_v35  ;;  %v2932_v4 = vadd.f32 %v9057_v10, %v320_v14  ;;  %v3060_v41 = vadd.f32 %v9059_v30, %v448_v23  ;;  %v457_v36 = vld [vmem:[#allocation2 + $0x570] sm:$0xff]  ;;  %v9406_v23 = vpop.f32.mrf.mxu0 }
 0x157   :  { %6148 = vst.msk [vmem:[%s11239_s4 + $0x288] sm:$0xf] %vm5985_vm4, %v6924_v2  ;;  %v327_v28 = vld [vmem:[#allocation2 + $0x160] sm:$0xff]  ;;  %6018 = vst.msk [vmem:[%s11239_s4 + $0x80] sm:$0xf] %vm5985_vm4, %v6794_v53  ;;  %v2937_v55 = vadd.f32 %v9078_v49, %v325_v57  ;;  %v3065_v0 = vadd.f32 %v9080_v52, %v453_v32  ;;  %v2935_v10 = vadd.f32 %v9106_v17, %v323_v33  ;;  %v330_v6 = vld [vmem:[#allocation2 + $0x178] sm:$0xff] }
 0x158   :  { %3318 = vst.msk [vmem:[#allocation2 + $0x530] sm:$0xff] %vm22_vm3, %v3061_v13  ;;  %3188 = vst.msk [vmem:[#allocation2 + $0x120] sm:$0xff] %vm22_vm3, %v2931_v61  ;;  %v455_v60 = vld [vmem:[#allocation2 + $0x560] sm:$0xff]  ;;  %v3063_v30 = vadd.f32 %v9108_v3, %v451_v15  ;;  %v458_v25 = vld [vmem:[#allocation2 + $0x578] sm:$0xff]  ;;  %v2938_v49 = vadd.f32 %v9129_v48, %v326_v40  ;;  %v3066_v52 = vadd.f32 %v9131_v62, %v454_v19 }
 0x159   :  { %3316 = vst.msk [vmem:[#allocation2 + $0x520] sm:$0xff] %vm22_vm3, %v3059_v34  ;;  %3191 = vst.msk [vmem:[#allocation2 + $0x138] sm:$0xff] %vm22_vm3, %v2934_v16  ;;  %v328_v14 = vld [vmem:[#allocation2 + $0x168] sm:$0xff]  ;;  %v2936_v17 = vadd.f32 %v9142_v24, %v324_v51  ;;  %v3064_v3 = vadd.f32 %v9144_v7, %v452_v11  ;;  %v333_v43 = vld [vmem:[#allocation2 + $0x190] sm:$0xff]  ;;  %v2941_v48 = vadd.f32 %v9151_v37, %v329_v8 }
 0x15a   :  { %6146 = vst.msk [vmem:[%s11239_s4 + $0x280] sm:$0xf] %vm5985_vm4, %v6922_v9  ;;  %v456_v34 = vld [vmem:[#allocation2 + $0x568] sm:$0xff]  ;;  %v461_v54 = vld [vmem:[#allocation2 + $0x590] sm:$0xff]  ;;  %v3446_v57 = vld [vmem:[#allocation2 + $0x118] sm:$0xff]  ;;  %v3069_v62 = vadd.f32 %v9153_v29, %v457_v36  ;;  %v2939_v24 = vadd.f32 %v9161_v44, %v327_v28  ;;  %v3067_v7 = vadd.f32 %v9163_v45, %v455_v60  ;;  %v2942_v37 = vadd.f32 %v9172_v50, %v330_v6  ;;  %v9445_v50 = vpop.f32.mrf.mxu0 }
 0x15b   :  { %3319 = vst.msk [vmem:[#allocation2 + $0x538] sm:$0xff] %vm22_vm3, %v3062_v56  ;;  %3189 = vst.msk [vmem:[#allocation2 + $0x128] sm:$0xff] %vm22_vm3, %v2932_v4  ;;  %v3574_v32 = vld [vmem:[#allocation2 + $0x518] sm:$0xff]  ;;  %v331_v33 = vld [vmem:[#allocation2 + $0x180] sm:$0xff]  ;;  %v3709_v2 = vmul.f32 %v9089_v1, %v3446_v57  ;;  %v3070_v29 = vadd.f32 %v9174_v26, %v458_v25  ;;  %v2940_v61 = vadd.f32 %v9190_v42, %v328_v14  ;;  %v9447_v26 = vpop.f32.mrf.mxu1 }
 0x15c   :  { %3317 = vst.msk [vmem:[#allocation2 + $0x528] sm:$0xff] %vm22_vm3, %v3060_v41  ;;  %3194 = vst.msk [vmem:[#allocation2 + $0x150] sm:$0xff] %vm22_vm3, %v2937_v55  ;;  %v3837_v47 = vmul.f32 %v9089_v1, %v3574_v32  ;;  %v3444_v13 = vld [vmem:[#allocation2 + $0x108] sm:$0xff]  ;;  %v459_v44 = vld [vmem:[#allocation2 + $0x580] sm:$0xff]  ;;  %v3068_v15 = vadd.f32 %v9192_v20, %v456_v34  ;;  %v2945_v40 = vadd.f32 %v9199_v46, %v333_v43  ;;  %v9467_v28 = vpop.f32.mrf.mxu0 }
 0x15d   :  { %3322 = vst.msk [vmem:[#allocation2 + $0x550] sm:$0xff] %vm22_vm3, %v3065_v0  ;;  %3192 = vst.msk [vmem:[#allocation2 + $0x140] sm:$0xff] %vm22_vm3, %v2935_v10  ;;  %v3707_v45 = vmul.f32 %v9089_v1, %v3444_v13  ;;  %v3972_v19 = vadd.f32 %v9113_v39, %v3709_v2  ;;  %v3572_v35 = vld [vmem:[#allocation2 + $0x508] sm:$0xff]  ;;  %v3449_v16 = vld [vmem:[#allocation2 + $0x130] sm:$0xff]  ;;  %v3073_v42 = vadd.f32 %v9201_v21, %v461_v54  ;;  %v9469_v60 = vpop.f32.mrf.mxu1 }
 0x15e   :  { %3320 = vst.msk [vmem:[#allocation2 + $0x540] sm:$0xff] %vm22_vm3, %v3063_v30  ;;  %3195 = vst.msk [vmem:[#allocation2 + $0x158] sm:$0xff] %vm22_vm3, %v2938_v49  ;;  %v4100_v53 = vadd.f32 %v9113_v39, %v3837_v47  ;;  %v2943_v20 = vadd.f32 %v9210_v12, %v331_v33  ;;  %v3835_v51 = vmul.f32 %v9089_v1, %v3572_v35 }
 0x15f   :  { %3323 = vst.msk [vmem:[#allocation2 + $0x558] sm:$0xff] %vm22_vm3, %v3066_v52  ;;  %3193 = vst.msk [vmem:[#allocation2 + $0x148] sm:$0xff] %vm22_vm3, %v2936_v17  ;;  %v3970_v46 = vadd.f32 %v9113_v39, %v3707_v45  ;;  %v3712_v11 = vmul.f32 %v9089_v1, %v3449_v16  ;;  %v3577_v8 = vld [vmem:[#allocation2 + $0x530] sm:$0xff]  ;;  %v3447_v9 = vld [vmem:[#allocation2 + $0x120] sm:$0xff]  ;;  %v3071_v56 = vadd.f32 %v9212_v59, %v459_v44  ;;  %vm4228_vm2 = vcmp.ge.f32.partialorder %v3972_v19, 0.0 }
 0x160   :  { %3321 = vst.msk [vmem:[#allocation2 + $0x548] sm:$0xff] %vm22_vm3, %v3064_v3  ;;  %3198 = vst.msk [vmem:[#allocation2 + $0x170] sm:$0xff] %vm22_vm3, %v2941_v48  ;;  %v4484_v21 = vmul.f32 0.2, %v3972_v19  ;;  %vm4356_vm5 = vcmp.ge.f32.partialorder %v4100_v53, 0.0  ;;  %v4098_v41 = vadd.f32 %v9113_v39, %v3835_v51  ;;  %v3840_v0 = vmul.f32 %v9089_v1, %v3577_v8  ;;  %v3575_v30 = vld [vmem:[#allocation2 + $0x520] sm:$0xff] }
 0x161   :  { %3326 = vst.msk [vmem:[#allocation2 + $0x570] sm:$0xff] %vm22_vm3, %v3069_v62  ;;  %3196 = vst.msk [vmem:[#allocation2 + $0x160] sm:$0xff] %vm22_vm3, %v2939_v24  ;;  %v4612_v12 = vmul.f32 0.2, %v4100_v53  ;;  %vm4226_vm6 = vcmp.ge.f32.partialorder %v3970_v46, 0.0  ;;  %v3975_v36 = vadd.f32 %v9113_v39, %v3712_v11  ;;  %v3710_v10 = vmul.f32 %v9089_v1, %v3447_v9  ;;  %v3450_v6 = vld [vmem:[#allocation2 + $0x138] sm:$0xff]  ;;  %v9485_v62 = vpop.f32.mrf.mxu0  ;;  %v9487_v24 = vpop.f32.mrf.mxu1 }
 0x162   :  { %3324 = vst.msk [vmem:[#allocation2 + $0x560] sm:$0xff] %vm22_vm3, %v3067_v7  ;;  %3199 = vst.msk [vmem:[#allocation2 + $0x178] sm:$0xff] %vm22_vm3, %v2942_v37  ;;  %v4482_v4 = vmul.f32 0.2, %v3970_v46  ;;  %v4740_v59 = vsel %vm4228_vm2, %v3972_v19, %v4484_v21  ;;  %vm4354_vm7 = vcmp.ge.f32.partialorder %v4098_v41, 0.0  ;;  %v3578_v52 = vld [vmem:[#allocation2 + $0x538] sm:$0xff]  ;;  %v4103_v54 = vadd.f32 %v9113_v39, %v3840_v0 }
 0x163   :  { %3327 = vst.msk [vmem:[#allocation2 + $0x578] sm:$0xff] %vm22_vm3, %v3070_v29  ;;  %3197 = vst.msk [vmem:[#allocation2 + $0x168] sm:$0xff] %vm22_vm3, %v2940_v61  ;;  %v4868_v55 = vsel %vm4356_vm5, %v4100_v53, %v4612_v12  ;;  %v6797_v25 = vpack.c.bf16 %v4740_v59, %v4740_v59  ;;  %v3448_v17 = vld [vmem:[#allocation2 + $0x128] sm:$0xff]  ;;  %v4610_v34 = vmul.f32 0.2, %v4098_v41  ;;  %vm4231_vm8 = vcmp.ge.f32.partialorder %v3975_v36, 0.0  ;;  %v9509_v16 = vpop.f32.mrf.mxu0 }
 0x164   :  { %3325 = vst.msk [vmem:[#allocation2 + $0x568] sm:$0xff] %vm22_vm3, %v3068_v15  ;;  %3202 = vst.msk [vmem:[#allocation2 + $0x190] sm:$0xff] %vm22_vm3, %v2945_v40  ;;  %v6925_v14 = vpack.c.bf16 %v4868_v55, %v4868_v55  ;;  %v4738_v49 = vsel %vm4226_vm6, %v3970_v46, %v4482_v4  ;;  %v4487_v43 = vmul.f32 0.2, %v3975_v36  ;;  %v3973_v57 = vadd.f32 %v9113_v39, %v3710_v10  ;;  %v3576_v13 = vld [vmem:[#allocation2 + $0x528] sm:$0xff]  ;;  %v3453_v11 = vld [vmem:[#allocation2 + $0x150] sm:$0xff] }
 0x165   :  { %3330 = vst.msk [vmem:[#allocation2 + $0x590] sm:$0xff] %vm22_vm3, %v3073_v42  ;;  %3200 = vst.msk [vmem:[#allocation2 + $0x180] sm:$0xff] %vm22_vm3, %v2943_v20  ;;  %v6795_v3 = vpack.c.bf16 %v4738_v49, %v4738_v49  ;;  %v3838_v32 = vmul.f32 %v9089_v1, %v3575_v30  ;;  %v3713_v48 = vmul.f32 %v9089_v1, %v3450_v6  ;;  %vm4359_vm9 = vcmp.ge.f32.partialorder %v4103_v54, 0.0  ;;  %v9511_v42 = vpop.f32.mrf.mxu1  ;;  %v3451_v0 = vld [vmem:[#allocation2 + $0x140] sm:$0xff]  ;;  %v9523_v30 = vpop.f32.mrf.mxu0 }
 0x166   :  { %3328 = vst.msk [vmem:[#allocation2 + $0x580] sm:$0xff] %vm22_vm3, %v3071_v56  ;;  %v4866_v7 = vsel %vm4354_vm7, %v4098_v41, %v4610_v34  ;;  %v4743_v33 = vsel %vm4231_vm8, %v3975_v36, %v4487_v43  ;;  %v3841_v2 = vmul.f32 %v9089_v1, %v3578_v52  ;;  %v3711_v47 = vmul.f32 %v9089_v1, %v3448_v17  ;;  %v3581_v56 = vld [vmem:[#allocation2 + $0x550] sm:$0xff]  ;;  %v3579_v10 = vld [vmem:[#allocation2 + $0x540] sm:$0xff]  ;;  %v3454_v17 = vld [vmem:[#allocation2 + $0x158] sm:$0xff] }
 0x167   :  { %6021 = vst.msk [vmem:[%s11239_s4 + $0x8c] sm:$0xf] %vm5985_vm4, %v6797_v25  ;;  %6149 = vst.msk [vmem:[%s11239_s4 + $0x28c] sm:$0xf] %vm5985_vm4, %v6925_v14  ;;  %v6923_v37 = vpack.c.bf16 %v4866_v7, %v4866_v7  ;;  %v6800_v29 = vpack.c.bf16 %v4743_v33, %v4743_v33  ;;  %v4615_v44 = vmul.f32 0.2, %v4103_v54  ;;  %v4101_v61 = vadd.f32 %v9113_v39, %v3838_v32  ;;  %v9525_v6 = vpop.f32.mrf.mxu1 }
 0x168   :  { %6019 = vst.msk [vmem:[%s11239_s4 + $0x84] sm:$0xf] %vm5985_vm4, %v6795_v3  ;;  %vm4229_vm10 = vcmp.ge.f32.partialorder %v3973_v57, 0.0  ;;  %v4485_v45 = vmul.f32 0.2, %v3973_v57  ;;  %v3976_v15 = vadd.f32 %v9113_v39, %v3713_v48  ;;  %v4104_v19 = vadd.f32 %v9113_v39, %v3841_v2  ;;  %v3582_v3 = vld [vmem:[#allocation2 + $0x558] sm:$0xff] }
 0x169   :  { %6147 = vst.msk [vmem:[%s11239_s4 + $0x284] sm:$0xf] %vm5985_vm4, %v6923_v37  ;;  %6024 = vst.msk [vmem:[%s11239_s4 + $0x98] sm:$0xf] %vm5985_vm4, %v6800_v29  ;;  %v4871_v40 = vsel %vm4359_vm9, %v4103_v54, %v4615_v44  ;;  %v3974_v53 = vadd.f32 %v9113_v39, %v3711_v47  ;;  %v3839_v35 = vmul.f32 %v9089_v1, %v3576_v13  ;;  %vm4357_vm11 = vcmp.ge.f32.partialorder %v4101_v61, 0.0  ;;  %v3452_v34 = vld [vmem:[#allocation2 + $0x148] sm:$0xff]  ;;  %v9557_v29 = vpop.f32.mrf.mxu0  ;;  %v9559_v44 = vpop.f32.mrf.mxu1 }
 0x16a   :  { %v6928_v20 = vpack.c.bf16 %v4871_v40, %v4871_v40  ;;  %v4741_v46 = vsel %vm4229_vm10, %v3973_v57, %v4485_v45  ;;  %v4613_v51 = vmul.f32 0.2, %v4101_v61  ;;  %vm4232_vm12 = vcmp.ge.f32.partialorder %v3976_v15, 0.0  ;;  %v9542_v48 = vld [vmem:[%s11237_s2] ss:$0 sm:$0xff]  ;;  %v3580_v37 = vld [vmem:[#allocation2 + $0x548] sm:$0xff] }
 0x16b   :  { %v6798_v8 = vpack.c.bf16 %v4741_v46, %v4741_v46  ;;  %v4488_v9 = vmul.f32 0.2, %v3976_v15  ;;  %vm4360_vm13 = vcmp.ge.f32.partialorder %v4104_v19, 0.0  ;;  %v4616_v12 = vmul.f32 0.2, %v4104_v19 }
 0x16c   :  { %6152 = vst.msk [vmem:[%s11239_s4 + $0x298] sm:$0xf] %vm5985_vm4, %v6928_v20  ;;  %v4869_v21 = vsel %vm4357_vm11, %v4101_v61, %v4613_v51  ;;  %vm4230_vm14 = vcmp.ge.f32.partialorder %v3974_v53, 0.0  ;;  %v4486_v4 = vmul.f32 0.2, %v3974_v53  ;;  %v4102_v59 = vadd.f32 %v9113_v39, %v3839_v35 }
 0x16d   :  { %6022 = vst.msk [vmem:[%s11239_s4 + $0x90] sm:$0xf] %vm5985_vm4, %v6798_v8  ;;  %v6926_v41 = vpack.c.bf16 %v4869_v21, %v4869_v21  ;;  %v4744_v36 = vsel %vm4232_vm12, %v3976_v15, %v4488_v9  ;;  %v3716_v55 = vmul.f32 %v9089_v1, %v3453_v11  ;;  %v4872_v14 = vsel %vm4360_vm13, %v4104_v19, %v4616_v12  ;;  %v9564_v40 = vld [vmem:[%s11238_s3] ss:$0 sm:$0xff]  ;;  %v9576_v21 = vpop.f32.mrf.mxu0  ;;  %v9578_v12 = vpop.f32.mrf.mxu1 }
 0x16e   :  { %v6801_v25 = vpack.c.bf16 %v4744_v36, %v4744_v36  ;;  %v4742_v49 = vsel %vm4230_vm14, %v3974_v53, %v4486_v4  ;;  %v3844_v52 = vmul.f32 %v9089_v1, %v3581_v56  ;;  %v6929_v43 = vpack.c.bf16 %v4872_v14, %v4872_v14 }
 0x16f   :  { %6150 = vst.msk [vmem:[%s11239_s4 + $0x290] sm:$0xf] %vm5985_vm4, %v6926_v41  ;;  %v6799_v54 = vpack.c.bf16 %v4742_v49, %v4742_v49  ;;  %vm4358_vm15 = vcmp.ge.f32.partialorder %v4102_v59, 0.0  ;;  %v4614_v57 = vmul.f32 0.2, %v4102_v59  ;;  %v3979_v32 = vadd.f32 %v9113_v39, %v3716_v55  ;;  %v3585_v49 = vld [vmem:[#allocation2 + $0x570] sm:$0xff] }
 0x170   :  { %6025 = vst.msk [vmem:[%s11239_s4 + $0x9c] sm:$0xf] %vm5985_vm4, %v6801_v25  ;;  %v4107_v1 = vadd.f32 %v9113_v39, %v3844_v52  ;;  %v3714_v7 = vmul.f32 %v9542_v48, %v3451_v0  ;;  %v3842_v33 = vmul.f32 %v9542_v48, %v3579_v10  ;;  %6153 = vst.msk [vmem:[%s11239_s4 + $0x29c] sm:$0xf] %vm5985_vm4, %v6929_v43  ;;  %v3457_v0 = vld [vmem:[#allocation2 + $0x170] sm:$0xff]  ;;  %v3455_v43 = vld [vmem:[#allocation2 + $0x160] sm:$0xff] }
 0x171   :  { %6023 = vst.msk [vmem:[%s11239_s4 + $0x94] sm:$0xf] %vm5985_vm4, %v6799_v54  ;;  %v4870_v39 = vsel %vm4358_vm15, %v4102_v59, %v4614_v57  ;;  %v3717_v2 = vmul.f32 %v9542_v48, %v3454_v17  ;;  %v3845_v47 = vmul.f32 %v9542_v48, %v3582_v3  ;;  %v3715_v13 = vmul.f32 %v9542_v48, %v3452_v34  ;;  %v3583_v54 = vld [vmem:[#allocation2 + $0x560] sm:$0xff]  ;;  %v3458_v57 = vld [vmem:[#allocation2 + $0x178] sm:$0xff] }
 0x172   :  { %v6927_v45 = vpack.c.bf16 %v4870_v39, %v4870_v39  ;;  %vm4235_vm0 = vcmp.ge.f32.partialorder %v3979_v32, 0.0  ;;  %v4491_v61 = vmul.f32 0.2, %v3979_v32  ;;  %vm4363_vm1 = vcmp.ge.f32.partialorder %v4107_v1, 0.0 }
 0x173   :  { %v4619_v15 = vmul.f32 0.2, %v4107_v1  ;;  %v3977_v19 = vadd.f32 %v9564_v40, %v3714_v7  ;;  %v4105_v53 = vadd.f32 %v9564_v40, %v3842_v33  ;;  %v3980_v35 = vadd.f32 %v9564_v40, %v3717_v2 }
 0x174   :  { %6151 = vst.msk [vmem:[%s11239_s4 + $0x294] sm:$0xf] %vm5985_vm4, %v6927_v45  ;;  %v4747_v20 = vsel %vm4235_vm0, %v3979_v32, %v4491_v61  ;;  %v4108_v46 = vadd.f32 %v9564_v40, %v3845_v47  ;;  %v3978_v51 = vadd.f32 %v9564_v40, %v3715_v13  ;;  %v3843_v11 = vmul.f32 %v9542_v48, %v3580_v37  ;;  %v9589_v32 = vpop.f32.mrf.mxu0  ;;  %v3586_v47 = vld [vmem:[#allocation2 + $0x578] sm:$0xff]  ;;  %v3456_v13 = vld [vmem:[#allocation2 + $0x168] sm:$0xff] }
 0x175   :  { %v6804_v8 = vpack.c.bf16 %v4747_v20, %v4747_v20  ;;  %v4875_v9 = vsel %vm4363_vm1, %v4107_v1, %v4619_v15  ;;  %vm4233_vm2 = vcmp.ge.f32.partialorder %v3977_v19, 0.0  ;;  %v4489_v56 = vmul.f32 0.2, %v3977_v19  ;;  %v9591_v1 = vpop.f32.mrf.mxu1 }
 0x176   :  { %v6932_v4 = vpack.c.bf16 %v4875_v9, %v4875_v9  ;;  %vm4361_vm5 = vcmp.ge.f32.partialorder %v4105_v53, 0.0  ;;  %v4617_v41 = vmul.f32 0.2, %v4105_v53  ;;  %vm4236_vm6 = vcmp.ge.f32.partialorder %v3980_v35, 0.0 }
 0x177   :  { %6028 = vst.msk [vmem:[%s11239_s4 + $0xa8] sm:$0xf] %vm5985_vm4, %v6804_v8  ;;  %v4745_v36 = vsel %vm4233_vm2, %v3977_v19, %v4489_v56  ;;  %v4492_v59 = vmul.f32 0.2, %v3980_v35  ;;  %vm4364_vm7 = vcmp.ge.f32.partialorder %v4108_v46, 0.0  ;;  %vm4234_vm8 = vcmp.ge.f32.partialorder %v3978_v51, 0.0  ;;  %v9622_v8 = vpop.f32.mrf.mxu0  ;;  %v9624_v9 = vpop.f32.mrf.mxu1 }
 0x178   :  { %v4620_v55 = vmul.f32 0.2, %v4108_v46  ;;  %6156 = vst.msk [vmem:[%s11239_s4 + $0x2a8] sm:$0xf] %vm5985_vm4, %v6932_v4  ;;  %v6802_v10 = vpack.c.bf16 %v4745_v36, %v4745_v36  ;;  %v4873_v25 = vsel %vm4361_vm5, %v4105_v53, %v4617_v41  ;;  %v4490_v14 = vmul.f32 0.2, %v3978_v51 }
 0x179   :  { %v6930_v52 = vpack.c.bf16 %v4873_v25, %v4873_v25  ;;  %v4748_v17 = vsel %vm4236_vm6, %v3980_v35, %v4492_v59  ;;  %v4106_v34 = vadd.f32 %v9564_v40, %v3843_v11  ;;  %v3720_v2 = vmul.f32 %v9542_v48, %v3457_v0 }
 0x17a   :  { %v4876_v3 = vsel %vm4364_vm7, %v4108_v46, %v4620_v55  ;;  %6026 = vst.msk [vmem:[%s11239_s4 + $0xa0] sm:$0xf] %vm5985_vm4, %v6802_v10  ;;  %v6805_v7 = vpack.c.bf16 %v4748_v17, %v4748_v17  ;;  %v4746_v39 = vsel %vm4234_vm8, %v3978_v51, %v4490_v14  ;;  %v3848_v61 = vmul.f32 %v9542_v48, %v3585_v49  ;;  %v3584_v17 = vld [vmem:[#allocation2 + $0x568] sm:$0xff] }
 0x17b   :  { %v6933_v33 = vpack.c.bf16 %v4876_v3, %v4876_v3  ;;  %6154 = vst.msk [vmem:[%s11239_s4 + $0x2a0] sm:$0xf] %vm5985_vm4, %v6930_v52  ;;  %v6803_v37 = vpack.c.bf16 %v4746_v39, %v4746_v39  ;;  %vm4362_vm9 = vcmp.ge.f32.partialorder %v4106_v34, 0.0  ;;  %v4618_v45 = vmul.f32 0.2, %v4106_v34  ;;  %v9634_v3 = vpop.f32.mrf.mxu0 }
 0x17c   :  { %6029 = vst.msk [vmem:[%s11239_s4 + $0xac] sm:$0xf] %vm5985_vm4, %v6805_v7  ;;  %v3983_v15 = vadd.f32 %v9564_v40, %v3720_v2  ;;  %v3718_v19 = vmul.f32 %v9542_v48, %v3455_v43  ;;  %v3846_v53 = vmul.f32 %v9542_v48, %v3583_v54  ;;  %v3721_v35 = vmul.f32 %v9542_v48, %v3458_v57  ;;  %v3461_v7 = vld [vmem:[#allocation2 + $0x190] sm:$0xff] }
 0x17d   :  { %6157 = vst.msk [vmem:[%s11239_s4 + $0x2ac] sm:$0xf] %vm5985_vm4, %v6933_v33  ;;  %6027 = vst.msk [vmem:[%s11239_s4 + $0xa4] sm:$0xf] %vm5985_vm4, %v6803_v37  ;;  %v4874_v20 = vsel %vm4362_vm9, %v4106_v34, %v4618_v45  ;;  %v4111_v46 = vadd.f32 %v9564_v40, %v3848_v61  ;;  %v3849_v51 = vmul.f32 %v9542_v48, %v3586_v47  ;;  %v9636_v34 = vpop.f32.mrf.mxu1  ;;  %v3589_v33 = vld [vmem:[#allocation2 + $0x590] sm:$0xff] }
 0x17e   :  { %v3719_v11 = vmul.f32 %v9542_v48, %v3456_v13  ;;  %v6931_v56 = vpack.c.bf16 %v4874_v20, %v4874_v20  ;;  %vm4239_vm10 = vcmp.ge.f32.partialorder %v3983_v15, 0.0  ;;  %v4495_v4 = vmul.f32 0.2, %v3983_v15 }
 0x17f   :  { %v3981_v41 = vadd.f32 %v9564_v40, %v3718_v19  ;;  %vm4367_vm11 = vcmp.ge.f32.partialorder %v4111_v46, 0.0  ;;  %v4623_v36 = vmul.f32 0.2, %v4111_v46  ;;  %v4109_v59 = vadd.f32 %v9564_v40, %v3846_v53  ;;  %v3587_v19 = vld [vmem:[#allocation2 + $0x580] sm:$0xff] }
 0x180   :  { %v3984_v55 = vadd.f32 %v9564_v40, %v3721_v35  ;;  %6155 = vst.msk [vmem:[%s11239_s4 + $0x2a4] sm:$0xf] %vm5985_vm4, %v6931_v56  ;;  %v4751_v0 = vsel %vm4239_vm10, %v3983_v15, %v4495_v4  ;;  %v4112_v25 = vadd.f32 %v9564_v40, %v3849_v51  ;;  %v3982_v45 = vadd.f32 %v9564_v40, %v3719_v11  ;;  %v3459_v15 = vld [vmem:[#allocation2 + $0x180] sm:$0xff]  ;;  %v334_v51 = vld [vmem:[#allocation2 + $0x198] sm:$0xff]  ;;  %v9654_v56 = vpop.f32.mrf.mxu0  ;;  %v9656_v4 = vpop.f32.mrf.mxu1 }
 0x181   :  { %vm4237_vm12 = vcmp.ge.f32.partialorder %v3981_v41, 0.0  ;;  %v4493_v10 = vmul.f32 0.2, %v3981_v41  ;;  %v6808_v14 = vpack.c.bf16 %v4751_v0, %v4751_v0  ;;  %v4879_v49 = vsel %vm4367_vm11, %v4111_v46, %v4623_v36 }
 0x182   :  { %vm4365_vm13 = vcmp.ge.f32.partialorder %v4109_v59, 0.0  ;;  %v4621_v52 = vmul.f32 0.2, %v4109_v59  ;;  %v6936_v43 = vpack.c.bf16 %v4879_v49, %v4879_v49  ;;  %vm4240_vm14 = vcmp.ge.f32.partialorder %v3984_v55, 0.0 }
 0x183   :  { %v4749_v54 = vsel %vm4237_vm12, %v3981_v41, %v4493_v10  ;;  %v4496_v57 = vmul.f32 0.2, %v3984_v55  ;;  %6032 = vst.msk [vmem:[%s11239_s4 + $0xb8] sm:$0xf] %vm5985_vm4, %v6808_v14  ;;  %vm4368_vm15 = vcmp.ge.f32.partialorder %v4112_v25, 0.0  ;;  %v3847_v61 = vmul.f32 %v9542_v48, %v3584_v17  ;;  %v332_v17 = vld [vmem:[#allocation2 + $0x188] sm:$0xff] }
 0x184   :  { %v6806_v39 = vpack.c.bf16 %v4749_v54, %v4749_v54  ;;  %v4877_v2 = vsel %vm4365_vm13, %v4109_v59, %v4621_v52  ;;  %v4624_v47 = vmul.f32 0.2, %v4112_v25  ;;  %6160 = vst.msk [vmem:[%s11239_s4 + $0x2b8] sm:$0xf] %vm5985_vm4, %v6936_v43  ;;  %v3724_v20 = vmul.f32 %v9542_v48, %v3461_v7  ;;  %v462_v52 = vld [vmem:[#allocation2 + $0x598] sm:$0xff]  ;;  %v9678_v7 = vpop.f32.mrf.mxu1 }
 0x185   :  { %v6934_v13 = vpack.c.bf16 %v4877_v2, %v4877_v2  ;;  %v4752_v37 = vsel %vm4240_vm14, %v3984_v55, %v4496_v57  ;;  %v3852_v46 = vmul.f32 %v9542_v48, %v3589_v33  ;;  %vm4238_vm0 = vcmp.ge.f32.partialorder %v3982_v45, 0.0  ;;  %v9676_v57 = vpop.f32.mrf.mxu0 }
 0x186   :  { %6030 = vst.msk [vmem:[%s11239_s4 + $0xb0] sm:$0xf] %vm5985_vm4, %v6806_v39  ;;  %v6809_v53 = vpack.c.bf16 %v4752_v37, %v4752_v37  ;;  %v4880_v35 = vsel %vm4368_vm15, %v4112_v25, %v4624_v47  ;;  %v4494_v41 = vmul.f32 0.2, %v3982_v45  ;;  %v4110_v36 = vadd.f32 %v9564_v40, %v3847_v61  ;;  %v465_v37 = vld [vmem:[#allocation2 + $0x5b0] sm:$0xff] }
 0x187   :  { %6158 = vst.msk [vmem:[%s11239_s4 + $0x2b0] sm:$0xf] %vm5985_vm4, %v6934_v13  ;;  %v6937_v11 = vpack.c.bf16 %v4880_v35, %v4880_v35  ;;  %v3987_v59 = vadd.f32 %v9564_v40, %v3724_v20  ;;  %v4115_v55 = vadd.f32 %v9564_v40, %v3852_v46  ;;  %v3722_v0 = vmul.f32 %v9542_v48, %v3459_v15  ;;  %v460_v13 = vld [vmem:[#allocation2 + $0x588] sm:$0xff]  ;;  %v463_v35 = vld [vmem:[#allocation2 + $0x5a0] sm:$0xff]  ;;  %v338_v20 = vld [vmem:[#allocation2 + $0x1b8] sm:$0xff] }
 0x188   :  { %6033 = vst.msk [vmem:[%s11239_s4 + $0xbc] sm:$0xf] %vm5985_vm4, %v6809_v53  ;;  %v3850_v10 = vmul.f32 %v9542_v48, %v3587_v19  ;;  %v4750_v25 = vsel %vm4238_vm0, %v3982_v45, %v4494_v41  ;;  %vm4366_vm1 = vcmp.ge.f32.partialorder %v4110_v36, 0.0  ;;  %v4622_v14 = vmul.f32 0.2, %v4110_v36  ;;  %v335_v53 = vld [vmem:[#allocation2 + $0x1a0] sm:$0xff] }
 0x189   :  { %6161 = vst.msk [vmem:[%s11239_s4 + $0x2bc] sm:$0xf] %vm5985_vm4, %v6937_v11  ;;  %v2946_v49 = vadd.f32 %v9219_v22, %v334_v51  ;;  %v6807_v43 = vpack.c.bf16 %v4750_v25, %v4750_v25  ;;  %vm4243_vm2 = vcmp.ge.f32.partialorder %v3987_v59, 0.0  ;;  %v4499_v54 = vmul.f32 0.2, %v3987_v59  ;;  %v337_v22 = vld [vmem:[#allocation2 + $0x1b0] sm:$0xff] }
 0x18a   :  { %vm4371_vm5 = vcmp.ge.f32.partialorder %v4115_v55, 0.0  ;;  %v4878_v33 = vsel %vm4366_vm1, %v4110_v36, %v4622_v14  ;;  %v4627_v39 = vmul.f32 0.2, %v4115_v55  ;;  %v3985_v2 = vadd.f32 %v9564_v40, %v3722_v0  ;;  %v466_v41 = vld [vmem:[#allocation2 + $0x5b8] sm:$0xff]  ;;  %v336_v36 = vld [vmem:[#allocation2 + $0x1a8] sm:$0xff]  ;;  %v339_v25 = vld [vmem:[#allocation2 + $0x1c0] sm:$0xff]  ;;  %v9697_v14 = vpop.f32.mrf.mxu0 }
 0x18b   :  { %v4113_v47 = vadd.f32 %v9564_v40, %v3850_v10  ;;  %3203 = vst.msk [vmem:[#allocation2 + $0x198] sm:$0xff] %vm22_vm3, %v2946_v49  ;;  %v6935_v45 = vpack.c.bf16 %v4878_v33, %v4878_v33  ;;  %v4755_v61 = vsel %vm4243_vm2, %v3987_v59, %v4499_v54  ;;  %v3074_v15 = vadd.f32 %v9221_v18, %v462_v52  ;;  %v464_v0 = vld [vmem:[#allocation2 + $0x5a8] sm:$0xff]  ;;  %v469_v10 = vld [vmem:[#allocation2 + $0x5d0] sm:$0xff]  ;;  %v9699_v49 = vpop.f32.mrf.mxu1 }
 0x18c   :  { %6031 = vst.msk [vmem:[%s11239_s4 + $0xb4] sm:$0xf] %vm5985_vm4, %v6807_v43  ;;  %v2944_v19 = vadd.f32 %v9245_v38, %v332_v17  ;;  %v6812_v46 = vpack.c.bf16 %v4755_v61, %v4755_v61  ;;  %v4883_v51 = vsel %vm4371_vm5, %v4115_v55, %v4627_v39  ;;  %vm4241_vm6 = vcmp.ge.f32.partialorder %v3985_v2, 0.0  ;;  %v341_v55 = vld [vmem:[#allocation2 + $0x1d0] sm:$0xff]  ;;  %v11249_v43 = vld [vmem:[#allocation3_spill] sm:$0xff]  ;;  %v11250_v33 = vld [vmem:[#allocation4_spill] sm:$0xff] }
 0x18d   :  { %v4497_v11 = vmul.f32 0.2, %v3985_v2  ;;  %6159 = vst.msk [vmem:[%s11239_s4 + $0x2b4] sm:$0xf] %vm5985_vm4, %v6935_v45  ;;  %v6940_v59 = vpack.c.bf16 %v4883_v51, %v4883_v51  ;;  %vm4369_vm7 = vcmp.ge.f32.partialorder %v4113_v47, 0.0  ;;  %v3072_v38 = vadd.f32 %v9247_v5, %v460_v13  ;;  %v467_v39 = vld [vmem:[#allocation2 + $0x5c0] sm:$0xff] }
 0x18e   :  { %v4625_v18 = vmul.f32 0.2, %v4113_v47  ;;  %3331 = vst.msk [vmem:[#allocation2 + $0x598] sm:$0xff] %vm22_vm3, %v3074_v15  ;;  %3201 = vst.msk [vmem:[#allocation2 + $0x188] sm:$0xff] %vm22_vm3, %v2944_v19  ;;  %v2949_v17 = vadd.f32 %v9266_v27, %v337_v22  ;;  %v3077_v54 = vadd.f32 %v11249_v43, %v465_v37  ;;  %v2947_v5 = vadd.f32 %v11250_v33, %v335_v53  ;;  %v342_v13 = vld [vmem:[#allocation2 + $0x1d8] sm:$0xff]  ;;  %v340_v37 = vld [vmem:[#allocation2 + $0x1c8] sm:$0xff] }
 0x18f   :  { %6036 = vst.msk [vmem:[%s11239_s4 + $0xc8] sm:$0xf] %vm5985_vm4, %v6812_v46  ;;  %v4753_v52 = vsel %vm4241_vm6, %v3985_v2, %v4497_v11  ;;  %v470_v45 = vld [vmem:[#allocation2 + $0x5d8] sm:$0xff]  ;;  %6164 = vst.msk [vmem:[%s11239_s4 + $0x2c8] sm:$0xf] %vm5985_vm4, %v6940_v59  ;;  %v11251_v2 = vld [vmem:[#allocation5_spill] sm:$0xff] }
 0x190   :  { %v6810_v61 = vpack.c.bf16 %v4753_v52, %v4753_v52  ;;  %v4881_v15 = vsel %vm4369_vm7, %v4113_v47, %v4625_v18  ;;  %3329 = vst.msk [vmem:[#allocation2 + $0x588] sm:$0xff] %vm22_vm3, %v3072_v38  ;;  %v3075_v19 = vadd.f32 %v11251_v2, %v463_v35  ;;  %v11252_v27 = vld [vmem:[#allocation6_spill] sm:$0xff]  ;;  %v468_v46 = vld [vmem:[#allocation2 + $0x5c8] sm:$0xff]  ;;  %v345_v53 = vld [vmem:[#allocation2 + $0x1f0] sm:$0xff]  ;;  %v2948_v47 = vadd.f32 %v9321_v31, %v336_v36  ;;  %v9733_v2 = vpop.f32.mrf.mxu0 }
 0x191   :  { %v2950_v22 = vadd.f32 %v11252_v27, %v338_v20  ;;  %v6938_v51 = vpack.c.bf16 %v4881_v15, %v4881_v15  ;;  %3206 = vst.msk [vmem:[#allocation2 + $0x1b0] sm:$0xff] %vm22_vm3, %v2949_v17  ;;  %3334 = vst.msk [vmem:[#allocation2 + $0x5b0] sm:$0xff] %vm22_vm3, %v3077_v54  ;;  %v11253_v11 = vld [vmem:[#allocation7_spill] sm:$0xff]  ;;  %v11254_v18 = vld [vmem:[#allocation8_spill] sm:$0xff]  ;;  %v2951_v31 = vadd.f32 %v9371_v63, %v339_v25  ;;  %v9735_v27 = vpop.f32.mrf.mxu1 }
 0x192   :  { %3204 = vst.msk [vmem:[#allocation2 + $0x1a0] sm:$0xff] %vm22_vm3, %v2947_v5  ;;  %v3078_v59 = vadd.f32 %v11253_v11, %v466_v41  ;;  %v3076_v38 = vadd.f32 %v11254_v18, %v464_v0  ;;  %v473_v52 = vld [vmem:[#allocation2 + $0x5f0] sm:$0xff]  ;;  %v343_v35 = vld [vmem:[#allocation2 + $0x1e0] sm:$0xff]  ;;  %v3462_v20 = vld [vmem:[#allocation2 + $0x198] sm:$0xff]  ;;  %v2954_v63 = vadd.f32 %v9406_v23, %v342_v13 }
 0x193   :  { %v471_v43 = vld [vmem:[#allocation2 + $0x5e0] sm:$0xff]  ;;  %6034 = vst.msk [vmem:[%s11239_s4 + $0xc0] sm:$0xf] %vm5985_vm4, %v6810_v61  ;;  %v11255_v17 = vld [vmem:[#allocation9_spill] sm:$0xff]  ;;  %v11256_v41 = vld [vmem:[#allocation10_spill] sm:$0xff]  ;;  %v3725_v61 = vmul.f32 %v9542_v48, %v3462_v20  ;;  %v3085_v23 = vadd.f32 %v9469_v60, %v473_v52 }
 0x194   :  { %3332 = vst.msk [vmem:[#allocation2 + $0x5a0] sm:$0xff] %vm22_vm3, %v3075_v19  ;;  %3207 = vst.msk [vmem:[#allocation2 + $0x1b8] sm:$0xff] %vm22_vm3, %v2950_v22  ;;  %v2953_v54 = vadd.f32 %v11255_v17, %v341_v55  ;;  %v3081_v33 = vadd.f32 %v11256_v41, %v469_v10  ;;  %v11257_v36 = vld [vmem:[#allocation11_spill] sm:$0xff]  ;;  %v346_v5 = vld [vmem:[#allocation2 + $0x1f8] sm:$0xff]  ;;  %v3082_v55 = vadd.f32 %v9408_v58, %v470_v45 }
 0x195   :  { %v3079_v0 = vadd.f32 %v11257_v36, %v467_v39  ;;  %v474_v15 = vld [vmem:[#allocation2 + $0x5f8] sm:$0xff]  ;;  %6162 = vst.msk [vmem:[%s11239_s4 + $0x2c0] sm:$0xf] %vm5985_vm4, %v6938_v51  ;;  %v2952_v10 = vadd.f32 %v9445_v50, %v340_v37  ;;  %v344_v25 = vld [vmem:[#allocation2 + $0x1e8] sm:$0xff]  ;;  %v3080_v19 = vadd.f32 %v9447_v26, %v468_v46  ;;  %v2957_v22 = vadd.f32 %v9467_v28, %v345_v53  ;;  %v349_v13 = vld [vmem:[#allocation2 + $0x210] sm:$0xff] }
 0x196   :  { %3335 = vst.msk [vmem:[#allocation2 + $0x5b8] sm:$0xff] %vm22_vm3, %v3078_v59  ;;  %3205 = vst.msk [vmem:[#allocation2 + $0x1a8] sm:$0xff] %vm22_vm3, %v2948_v47  ;;  %v472_v39 = vld [vmem:[#allocation2 + $0x5e8] sm:$0xff]  ;;  %v2955_v58 = vadd.f32 %v9485_v62, %v343_v35  ;;  %v477_v50 = vld [vmem:[#allocation2 + $0x610] sm:$0xff]  ;;  %v3988_v45 = vadd.f32 %v9564_v40, %v3725_v61  ;;  %v3083_v26 = vadd.f32 %v9487_v24, %v471_v43 }
 0x197   :  { %3333 = vst.msk [vmem:[#allocation2 + $0x5a8] sm:$0xff] %vm22_vm3, %v3076_v38  ;;  %3210 = vst.msk [vmem:[#allocation2 + $0x1d0] sm:$0xff] %vm22_vm3, %v2953_v54  ;;  %v3590_v37 = vld [vmem:[#allocation2 + $0x598] sm:$0xff]  ;;  %v3460_v51 = vld [vmem:[#allocation2 + $0x188] sm:$0xff]  ;;  %v2958_v28 = vadd.f32 %v9509_v16, %v346_v5  ;;  %v3086_v60 = vadd.f32 %v9511_v42, %v474_v15  ;;  %v2956_v11 = vadd.f32 %v9523_v30, %v344_v25  ;;  %v9771_v16 = vpop.f32.mrf.mxu0  ;;  %v9773_v42 = vpop.f32.mrf.mxu1 }
 0x198   :  { %3338 = vst.msk [vmem:[#allocation2 + $0x5d0] sm:$0xff] %vm22_vm3, %v3081_v33  ;;  %3208 = vst.msk [vmem:[#allocation2 + $0x1c0] sm:$0xff] %vm22_vm3, %v2951_v31  ;;  %v347_v46 = vld [vmem:[#allocation2 + $0x200] sm:$0xff]  ;;  %v3853_v62 = vmul.f32 %v9542_v48, %v3590_v37  ;;  %v3723_v53 = vmul.f32 %v9542_v48, %v3460_v51  ;;  %v3084_v24 = vadd.f32 %v9525_v6, %v472_v39  ;;  %vm4244_vm8 = vcmp.ge.f32.partialorder %v3988_v45, 0.0  ;;  %v3588_v47 = vld [vmem:[#allocation2 + $0x588] sm:$0xff] }
 0x199   :  { %3336 = vst.msk [vmem:[#allocation2 + $0x5c0] sm:$0xff] %vm22_vm3, %v3079_v0  ;;  %3211 = vst.msk [vmem:[#allocation2 + $0x1d8] sm:$0xff] %vm22_vm3, %v2954_v63  ;;  %v4500_v59 = vmul.f32 0.2, %v3988_v45  ;;  %v2961_v18 = vadd.f32 %v9557_v29, %v349_v13  ;;  %v3089_v38 = vadd.f32 %v9559_v44, %v477_v50  ;;  %v3851_v52 = vmul.f32 %v9542_v48, %v3588_v47  ;;  %v3465_v35 = vld [vmem:[#allocation2 + $0x1b0] sm:$0xff]  ;;  %v3463_v20 = vld [vmem:[#allocation2 + $0x1a0] sm:$0xff]  ;;  %v9795_v5 = vpop.f32.mrf.mxu1 }
 0x19a   :  { %3339 = vst.msk [vmem:[#allocation2 + $0x5d8] sm:$0xff] %vm22_vm3, %v3082_v55  ;;  %3209 = vst.msk [vmem:[#allocation2 + $0x1c8] sm:$0xff] %vm22_vm3, %v2952_v10  ;;  %v4116_v30 = vadd.f32 %v9564_v40, %v3853_v62  ;;  %v3986_v6 = vadd.f32 %v9564_v40, %v3723_v53  ;;  %v3593_v43 = vld [vmem:[#allocation2 + $0x5b0] sm:$0xff]  ;;  %v2959_v17 = vadd.f32 %v9576_v21, %v347_v46  ;;  %v9793_v21 = vpop.f32.mrf.mxu0 }
 0x19b   :  { %3337 = vst.msk [vmem:[#allocation2 + $0x5c8] sm:$0xff] %vm22_vm3, %v3080_v19  ;;  %3214 = vst.msk [vmem:[#allocation2 + $0x1f0] sm:$0xff] %vm22_vm3, %v2957_v22  ;;  %v4756_v54 = vsel %vm4244_vm8, %v3988_v45, %v4500_v59  ;;  %v3728_v29 = vmul.f32 %v9542_v48, %v3465_v35  ;;  %v3856_v44 = vmul.f32 %v9542_v48, %v3593_v43  ;;  %v3591_v33 = vld [vmem:[#allocation2 + $0x5a0] sm:$0xff]  ;;  %v3466_v31 = vld [vmem:[#allocation2 + $0x1b8] sm:$0xff]  ;;  %v9809_v51 = vpop.f32.mrf.mxu1 }
 0x19c   :  { %3342 = vst.msk [vmem:[#allocation2 + $0x5f0] sm:$0xff] %vm22_vm3, %v3085_v23  ;;  %3212 = vst.msk [vmem:[#allocation2 + $0x1e0] sm:$0xff] %vm22_vm3, %v2955_v58  ;;  %v3726_v41 = vmul.f32 %v9542_v48, %v3463_v20  ;;  %v6813_v36 = vpack.c.bf16 %v4756_v54, %v4756_v54  ;;  %vm4372_vm9 = vcmp.ge.f32.partialorder %v4116_v30, 0.0  ;;  %v4628_v0 = vmul.f32 0.2, %v4116_v30  ;;  %v9807_v37 = vpop.f32.mrf.mxu0 }
 0x19d   :  { %3340 = vst.msk [vmem:[#allocation2 + $0x5e0] sm:$0xff] %vm22_vm3, %v3083_v26  ;;  %3215 = vst.msk [vmem:[#allocation2 + $0x1f8] sm:$0xff] %vm22_vm3, %v2958_v28  ;;  %vm4242_vm10 = vcmp.ge.f32.partialorder %v3986_v6, 0.0  ;;  %v4498_v15 = vmul.f32 0.2, %v3986_v6  ;;  %v4114_v61 = vadd.f32 %v9564_v40, %v3851_v52  ;;  %v3991_v63 = vadd.f32 %v9564_v40, %v3728_v29  ;;  %v3594_v45 = vld [vmem:[#allocation2 + $0x5b8] sm:$0xff]  ;;  %v9829_v54 = vpop.f32.mrf.mxu1 }
 0x19e   :  { %3343 = vst.msk [vmem:[#allocation2 + $0x5f8] sm:$0xff] %vm22_vm3, %v3086_v60  ;;  %3213 = vst.msk [vmem:[#allocation2 + $0x1e8] sm:$0xff] %vm22_vm3, %v2956_v11  ;;  %v4119_v55 = vadd.f32 %v9564_v40, %v3856_v44  ;;  %v4884_v10 = vsel %vm4372_vm9, %v4116_v30, %v4628_v0  ;;  %v3989_v25 = vadd.f32 %v9564_v40, %v3726_v41  ;;  %v3592_v30 = vld [vmem:[#allocation2 + $0x5a8] sm:$0xff] }
 0x19f   :  { %3341 = vst.msk [vmem:[#allocation2 + $0x5e8] sm:$0xff] %vm22_vm3, %v3084_v24  ;;  %3218 = vst.msk [vmem:[#allocation2 + $0x210] sm:$0xff] %vm22_vm3, %v2961_v18  ;;  %v3854_v39 = vmul.f32 %v9542_v48, %v3591_v33  ;;  %v3729_v19 = vmul.f32 %v9542_v48, %v3466_v31  ;;  %v6941_v22 = vpack.c.bf16 %v4884_v10, %v4884_v10  ;;  %vm4370_vm11 = vcmp.ge.f32.partialorder %v4114_v61, 0.0  ;;  %v3464_v24 = vld [vmem:[#allocation2 + $0x1a8] sm:$0xff]  ;;  %v3597_v52 = vld [vmem:[#allocation2 + $0x5d0] sm:$0xff] }
 0x1a0   :  { %3346 = vst.msk [vmem:[#allocation2 + $0x610] sm:$0xff] %vm22_vm3, %v3089_v38  ;;  %3216 = vst.msk [vmem:[#allocation2 + $0x200] sm:$0xff] %vm22_vm3, %v2959_v17  ;;  %v4754_v23 = vsel %vm4242_vm10, %v3986_v6, %v4498_v15  ;;  %v4626_v58 = vmul.f32 0.2, %v4114_v61  ;;  %vm4247_vm12 = vcmp.ge.f32.partialorder %v3991_v63, 0.0  ;;  %vm4375_vm13 = vcmp.ge.f32.partialorder %v4119_v55, 0.0  ;;  %v9827_v17 = vpop.f32.mrf.mxu0 }
 0x1a1   :  { %6037 = vst.msk [vmem:[%s11239_s4 + $0xcc] sm:$0xf] %vm5985_vm4, %v6813_v36  ;;  %v6811_v13 = vpack.c.bf16 %v4754_v23, %v4754_v23  ;;  %v4503_v50 = vmul.f32 0.2, %v3991_v63  ;;  %6165 = vst.msk [vmem:[%s11239_s4 + $0x2cc] sm:$0xf] %vm5985_vm4, %v6941_v22  ;;  %v4117_v53 = vadd.f32 %v9564_v40, %v3854_v39  ;;  %v3992_v11 = vadd.f32 %v9564_v40, %v3729_v19 }
 0x1a2   :  { %v4882_v26 = vsel %vm4370_vm11, %v4114_v61, %v4626_v58  ;;  %v4631_v28 = vmul.f32 0.2, %v4119_v55  ;;  %vm4245_vm14 = vcmp.ge.f32.partialorder %v3989_v25, 0.0  ;;  %v4501_v60 = vmul.f32 0.2, %v3989_v25  ;;  %v3469_v6 = vld [vmem:[#allocation2 + $0x1d0] sm:$0xff]  ;;  %v9851_v23 = vpop.f32.mrf.mxu0  ;;  %v9853_v58 = vpop.f32.mrf.mxu1 }
 0x1a3   :  { %6035 = vst.msk [vmem:[%s11239_s4 + $0xc4] sm:$0xf] %vm5985_vm4, %v6811_v13  ;;  %v6939_v46 = vpack.c.bf16 %v4882_v26, %v4882_v26  ;;  %v4759_v62 = vsel %vm4247_vm12, %v3991_v63, %v4503_v50  ;;  %v3857_v38 = vmul.f32 %v9542_v48, %v3594_v45  ;;  %vm4373_vm15 = vcmp.ge.f32.partialorder %v4117_v53, 0.0  ;;  %v3467_v15 = vld [vmem:[#allocation2 + $0x1c0] sm:$0xff] }
 0x1a4   :  { %v6816_v59 = vpack.c.bf16 %v4759_v62, %v4759_v62  ;;  %v4887_v47 = vsel %vm4375_vm13, %v4119_v55, %v4631_v28  ;;  %v4757_v18 = vsel %vm4245_vm14, %v3989_v25, %v4501_v60  ;;  %v4629_v20 = vmul.f32 0.2, %v4117_v53  ;;  %v3595_v61 = vld [vmem:[#allocation2 + $0x5c0] sm:$0xff] }
 0x1a5   :  { %6163 = vst.msk [vmem:[%s11239_s4 + $0x2c4] sm:$0xf] %vm5985_vm4, %v6939_v46  ;;  %v6944_v35 = vpack.c.bf16 %v4887_v47, %v4887_v47  ;;  %v6814_v43 = vpack.c.bf16 %v4757_v18, %v4757_v18  ;;  %vm4248_vm0 = vcmp.ge.f32.partialorder %v3992_v11, 0.0  ;;  %v4504_v29 = vmul.f32 0.2, %v3992_v11  ;;  %v3470_v46 = vld [vmem:[#allocation2 + $0x1d8] sm:$0xff]  ;;  %v9872_v18 = vpop.f32.mrf.mxu0 }
 0x1a6   :  { %6040 = vst.msk [vmem:[%s11239_s4 + $0xd8] sm:$0xf] %vm5985_vm4, %v6816_v59  ;;  %v4120_v44 = vadd.f32 %v9564_v40, %v3857_v38  ;;  %v3727_v41 = vmul.f32 %v9542_v48, %v3464_v24  ;;  %v4885_v33 = vsel %vm4373_vm15, %v4117_v53, %v4629_v20  ;;  %v3855_v31 = vmul.f32 %v9542_v48, %v3592_v30  ;;  %v9874_v38 = vpop.f32.mrf.mxu1  ;;  %v3468_v20 = vld [vmem:[#allocation2 + $0x1c8] sm:$0xff] }
 0x1a7   :  { %6168 = vst.msk [vmem:[%s11239_s4 + $0x2d8] sm:$0xf] %vm5985_vm4, %v6944_v35  ;;  %6038 = vst.msk [vmem:[%s11239_s4 + $0xd0] sm:$0xf] %vm5985_vm4, %v6814_v43  ;;  %v3732_v36 = vmul.f32 %v9542_v48, %v3469_v6  ;;  %v3860_v0 = vmul.f32 %v9542_v48, %v3597_v52  ;;  %v6942_v63 = vpack.c.bf16 %v4885_v33, %v4885_v33  ;;  %v3598_v43 = vld [vmem:[#allocation2 + $0x5d8] sm:$0xff] }
 0x1a8   :  { %v4760_v55 = vsel %vm4248_vm0, %v3992_v11, %v4504_v29  ;;  %vm4376_vm1 = vcmp.ge.f32.partialorder %v4120_v44, 0.0  ;;  %v4632_v10 = vmul.f32 0.2, %v4120_v44  ;;  %v3990_v39 = vadd.f32 %v9564_v40, %v3727_v41  ;;  %v3596_v29 = vld [vmem:[#allocation2 + $0x5c8] sm:$0xff] }
 0x1a9   :  { %v6817_v25 = vpack.c.bf16 %v4760_v55, %v4760_v55  ;;  %v4118_v19 = vadd.f32 %v9564_v40, %v3855_v31  ;;  %v3995_v22 = vadd.f32 %v9564_v40, %v3732_v36  ;;  %6166 = vst.msk [vmem:[%s11239_s4 + $0x2d0] sm:$0xf] %vm5985_vm4, %v6942_v63  ;;  %v4123_v50 = vadd.f32 %v9564_v40, %v3860_v0  ;;  %v3473_v31 = vld [vmem:[#allocation2 + $0x1f0] sm:$0xff] }
 0x1aa   :  { %v4888_v13 = vsel %vm4376_vm1, %v4120_v44, %v4632_v10  ;;  %v3730_v45 = vmul.f32 %v9542_v48, %v3467_v15  ;;  %v3858_v26 = vmul.f32 %v9542_v48, %v3595_v61  ;;  %vm4246_vm2 = vcmp.ge.f32.partialorder %v3990_v39, 0.0  ;;  %v3601_v36 = vld [vmem:[#allocation2 + $0x5f0] sm:$0xff] }
 0x1ab   :  { %6041 = vst.msk [vmem:[%s11239_s4 + $0xdc] sm:$0xf] %vm5985_vm4, %v6817_v25  ;;  %v6945_v28 = vpack.c.bf16 %v4888_v13, %v4888_v13  ;;  %v4502_v60 = vmul.f32 0.2, %v3990_v39  ;;  %vm4374_vm5 = vcmp.ge.f32.partialorder %v4118_v19, 0.0  ;;  %vm4251_vm6 = vcmp.ge.f32.partialorder %v3995_v22, 0.0 }
 0x1ac   :  { %v4630_v62 = vmul.f32 0.2, %v4118_v19  ;;  %v4507_v53 = vmul.f32 0.2, %v3995_v22  ;;  %vm4379_vm7 = vcmp.ge.f32.partialorder %v4123_v50, 0.0  ;;  %v3993_v59 = vadd.f32 %v9564_v40, %v3730_v45 }
 0x1ad   :  { %6169 = vst.msk [vmem:[%s11239_s4 + $0x2dc] sm:$0xf] %vm5985_vm4, %v6945_v28  ;;  %v4758_v11 = vsel %vm4246_vm2, %v3990_v39, %v4502_v60  ;;  %v4635_v24 = vmul.f32 0.2, %v4123_v50  ;;  %v4121_v47 = vadd.f32 %v9564_v40, %v3858_v26  ;;  %v3733_v35 = vmul.f32 %v9542_v48, %v3470_v46  ;;  %v9894_v39 = vpop.f32.mrf.mxu0  ;;  %v3471_v26 = vld [vmem:[#allocation2 + $0x1e0] sm:$0xff] }
 0x1ae   :  { %v6815_v30 = vpack.c.bf16 %v4758_v11, %v4758_v11  ;;  %v4886_v6 = vsel %vm4374_vm5, %v4118_v19, %v4630_v62  ;;  %v4763_v52 = vsel %vm4251_vm6, %v3995_v22, %v4507_v53  ;;  %vm4249_vm8 = vcmp.ge.f32.partialorder %v3993_v59, 0.0  ;;  %v9896_v19 = vpop.f32.mrf.mxu1  ;;  %v3599_v28 = vld [vmem:[#allocation2 + $0x5e0] sm:$0xff] }
 0x1af   :  { %v6943_v44 = vpack.c.bf16 %v4886_v6, %v4886_v6  ;;  %v6820_v41 = vpack.c.bf16 %v4763_v52, %v4763_v52  ;;  %v4891_v33 = vsel %vm4379_vm7, %v4123_v50, %v4635_v24  ;;  %v4505_v15 = vmul.f32 0.2, %v3993_v59 }
 0x1b0   :  { %6039 = vst.msk [vmem:[%s11239_s4 + $0xd4] sm:$0xf] %vm5985_vm4, %v6815_v30  ;;  %v6948_v0 = vpack.c.bf16 %v4891_v33, %v4891_v33  ;;  %vm4377_vm9 = vcmp.ge.f32.partialorder %v4121_v47, 0.0  ;;  %v4633_v61 = vmul.f32 0.2, %v4121_v47  ;;  %v3996_v63 = vadd.f32 %v9564_v40, %v3733_v35  ;;  %v9920_v35 = vpop.f32.mrf.mxu0 }
 0x1b1   :  { %6167 = vst.msk [vmem:[%s11239_s4 + $0x2d4] sm:$0xf] %vm5985_vm4, %v6943_v44  ;;  %6044 = vst.msk [vmem:[%s11239_s4 + $0xe8] sm:$0xf] %vm5985_vm4, %v6820_v41  ;;  %v3861_v55 = vmul.f32 %v9542_v48, %v3598_v43  ;;  %v3731_v10 = vmul.f32 %v9542_v48, %v3468_v20  ;;  %v3859_v25 = vmul.f32 %v9542_v48, %v3596_v29  ;;  %v9922_v43 = vpop.f32.mrf.mxu1 }
 0x1b2   :  { %6172 = vst.msk [vmem:[%s11239_s4 + $0x2e8] sm:$0xf] %vm5985_vm4, %v6948_v0  ;;  %v4761_v22 = vsel %vm4249_vm8, %v3993_v59, %v4505_v15  ;;  %v4889_v13 = vsel %vm4377_vm9, %v4121_v47, %v4633_v61  ;;  %v3736_v50 = vmul.f32 %v9542_v48, %v3473_v31  ;;  %v3864_v45 = vmul.f32 %v9542_v48, %v3601_v36 }
 0x1b3   :  { %v6818_v60 = vpack.c.bf16 %v4761_v22, %v4761_v22  ;;  %v6946_v46 = vpack.c.bf16 %v4889_v13, %v4889_v13  ;;  %vm4252_vm10 = vcmp.ge.f32.partialorder %v3996_v63, 0.0  ;;  %v4508_v62 = vmul.f32 0.2, %v3996_v63  ;;  %v9929_v22 = vpop.f32.mrf.mxu0  ;;  %v9931_v13 = vpop.f32.mrf.mxu1 }
 0x1b4   :  { %v4124_v53 = vadd.f32 %v9564_v40, %v3861_v55  ;;  %v3994_v11 = vadd.f32 %v9564_v40, %v3731_v10  ;;  %v4122_v24 = vadd.f32 %v9564_v40, %v3859_v25  ;;  %v3999_v30 = vadd.f32 %v9564_v40, %v3736_v50  ;;  %v3474_v55 = vld [vmem:[#allocation2 + $0x1f8] sm:$0xff]  ;;  %v3472_v25 = vld [vmem:[#allocation2 + $0x1e8] sm:$0xff] }
 0x1b5   :  { %6042 = vst.msk [vmem:[%s11239_s4 + $0xe0] sm:$0xf] %vm5985_vm4, %v6818_v60  ;;  %6170 = vst.msk [vmem:[%s11239_s4 + $0x2e0] sm:$0xf] %vm5985_vm4, %v6946_v46  ;;  %v4764_v59 = vsel %vm4252_vm10, %v3996_v63, %v4508_v62  ;;  %v4127_v47 = vadd.f32 %v9564_v40, %v3864_v45  ;;  %v3734_v6 = vmul.f32 %v9542_v48, %v3471_v26  ;;  %v3602_v10 = vld [vmem:[#allocation2 + $0x5f8] sm:$0xff]  ;;  %v3600_v60 = vld [vmem:[#allocation2 + $0x5e8] sm:$0xff] }
 0x1b6   :  { %v3862_v52 = vmul.f32 %v9542_v48, %v3599_v28  ;;  %v6821_v20 = vpack.c.bf16 %v4764_v59, %v4764_v59  ;;  %vm4380_vm11 = vcmp.ge.f32.partialorder %v4124_v53, 0.0  ;;  %v4636_v29 = vmul.f32 0.2, %v4124_v53  ;;  %v3477_v46 = vld [vmem:[#allocation2 + $0x210] sm:$0xff] }
 0x1b7   :  { %vm4250_vm12 = vcmp.ge.f32.partialorder %v3994_v11, 0.0  ;;  %v4506_v44 = vmul.f32 0.2, %v3994_v11  ;;  %vm4378_vm13 = vcmp.ge.f32.partialorder %v4122_v24, 0.0  ;;  %v4634_v41 = vmul.f32 0.2, %v4122_v24 }
 0x1b8   :  { %vm4255_vm14 = vcmp.ge.f32.partialorder %v3999_v30, 0.0  ;;  %6045 = vst.msk [vmem:[%s11239_s4 + $0xec] sm:$0xf] %vm5985_vm4, %v6821_v20  ;;  %v4892_v33 = vsel %vm4380_vm11, %v4124_v53, %v4636_v29  ;;  %v4511_v31 = vmul.f32 0.2, %v3999_v30  ;;  %vm4383_vm15 = vcmp.ge.f32.partialorder %v4127_v47, 0.0 }
 0x1b9   :  { %v4639_v36 = vmul.f32 0.2, %v4127_v47  ;;  %v6949_v0 = vpack.c.bf16 %v4892_v33, %v4892_v33  ;;  %v4762_v15 = vsel %vm4250_vm12, %v3994_v11, %v4506_v44  ;;  %v4890_v61 = vsel %vm4378_vm13, %v4122_v24, %v4634_v41  ;;  %v3605_v62 = vld [vmem:[#allocation2 + $0x610] sm:$0xff]  ;;  %v9961_v41 = vpop.f32.mrf.mxu0  ;;  %v9963_v33 = vpop.f32.mrf.mxu1 }
 0x1ba   :  { %v3997_v63 = vadd.f32 %v9564_v40, %v3734_v6  ;;  %v6819_v50 = vpack.c.bf16 %v4762_v15, %v4762_v15  ;;  %v6947_v45 = vpack.c.bf16 %v4890_v61, %v4890_v61  ;;  %v4767_v26 = vsel %vm4255_vm14, %v3999_v30, %v4511_v31 }
 0x1bb   :  { %v4895_v28 = vsel %vm4383_vm15, %v4127_v47, %v4639_v36  ;;  %6173 = vst.msk [vmem:[%s11239_s4 + $0x2ec] sm:$0xf] %vm5985_vm4, %v6949_v0  ;;  %v6824_v53 = vpack.c.bf16 %v4767_v26, %v4767_v26  ;;  %v4125_v30 = vadd.f32 %v9564_v40, %v3862_v52  ;;  %v3737_v59 = vmul.f32 %v9542_v48, %v3474_v55  ;;  %v475_v26 = vld [vmem:[#allocation2 + $0x600] sm:$0xff] }
 0x1bc   :  { %v6952_v11 = vpack.c.bf16 %v4895_v28, %v4895_v28  ;;  %vm4253_vm0 = vcmp.ge.f32.partialorder %v3997_v63, 0.0  ;;  %v4509_v24 = vmul.f32 0.2, %v3997_v63  ;;  %6043 = vst.msk [vmem:[%s11239_s4 + $0xe4] sm:$0xf] %vm5985_vm4, %v6819_v50  ;;  %v3865_v47 = vmul.f32 %v9542_v48, %v3602_v10  ;;  %v9975_v28 = vpop.f32.mrf.mxu0 }
 0x1bd   :  { %6171 = vst.msk [vmem:[%s11239_s4 + $0x2e4] sm:$0xf] %vm5985_vm4, %v6947_v45  ;;  %v3735_v6 = vmul.f32 %v9542_v48, %v3472_v25  ;;  %6048 = vst.msk [vmem:[%s11239_s4 + $0xf8] sm:$0xf] %vm5985_vm4, %v6824_v53  ;;  %v3863_v29 = vmul.f32 %v9542_v48, %v3600_v60  ;;  %v3740_v52 = vmul.f32 %v9542_v48, %v3477_v46  ;;  %vm4381_vm1 = vcmp.ge.f32.partialorder %v4125_v30, 0.0  ;;  %v9977_v60 = vpop.f32.mrf.mxu1 }
 0x1be   :  { %6176 = vst.msk [vmem:[%s11239_s4 + $0x2f8] sm:$0xf] %vm5985_vm4, %v6952_v11  ;;  %v4765_v20 = vsel %vm4253_vm0, %v3997_v63, %v4509_v24  ;;  %v3868_v44 = vmul.f32 %v9542_v48, %v3605_v62  ;;  %v4637_v36 = vmul.f32 0.2, %v4125_v30  ;;  %v4000_v0 = vadd.f32 %v9564_v40, %v3737_v59  ;;  %v350_v11 = vld [vmem:[#allocation2 + $0x218] sm:$0xff]  ;;  %v3475_v59 = vld [vmem:[#allocation2 + $0x200] sm:$0xff] }
 0x1bf   :  { %v6822_v31 = vpack.c.bf16 %v4765_v20, %v4765_v20  ;;  %v4128_v15 = vadd.f32 %v9564_v40, %v3865_v47  ;;  %v3998_v61 = vadd.f32 %v9564_v40, %v3735_v6  ;;  %v4126_v63 = vadd.f32 %v9564_v40, %v3863_v29  ;;  %v478_v47 = vld [vmem:[#allocation2 + $0x618] sm:$0xff]  ;;  %v348_v6 = vld [vmem:[#allocation2 + $0x208] sm:$0xff] }
 0x1c0   :  { %v4003_v55 = vadd.f32 %v9564_v40, %v3740_v52  ;;  %v4893_v48 = vsel %vm4381_vm1, %v4125_v30, %v4637_v36  ;;  %vm4256_vm2 = vcmp.ge.f32.partialorder %v4000_v0, 0.0  ;;  %v4512_v10 = vmul.f32 0.2, %v4000_v0  ;;  %v481_v36 = vld [vmem:[#allocation2 + $0x630] sm:$0xff] }
 0x1c1   :  { %6046 = vst.msk [vmem:[%s11239_s4 + $0xf0] sm:$0xf] %vm5985_vm4, %v6822_v31  ;;  %v4131_v25 = vadd.f32 %v9564_v40, %v3868_v44  ;;  %v6950_v50 = vpack.c.bf16 %v4893_v48, %v4893_v48  ;;  %vm4384_vm5 = vcmp.ge.f32.partialorder %v4128_v15, 0.0  ;;  %v4640_v45 = vmul.f32 0.2, %v4128_v15  ;;  %v476_v44 = vld [vmem:[#allocation2 + $0x608] sm:$0xff] }
 0x1c2   :  { %vm4254_vm6 = vcmp.ge.f32.partialorder %v3998_v61, 0.0  ;;  %v4768_v46 = vsel %vm4256_vm2, %v4000_v0, %v4512_v10  ;;  %v4510_v62 = vmul.f32 0.2, %v3998_v61  ;;  %vm4382_vm7 = vcmp.ge.f32.partialorder %v4126_v63, 0.0  ;;  %v353_v31 = vld [vmem:[#allocation2 + $0x230] sm:$0xff] }
 0x1c3   :  { %v4638_v53 = vmul.f32 0.2, %v4126_v63  ;;  %6174 = vst.msk [vmem:[%s11239_s4 + $0x2f0] sm:$0xf] %vm5985_vm4, %v6950_v50  ;;  %v6825_v40 = vpack.c.bf16 %v4768_v46, %v4768_v46  ;;  %v4896_v24 = vsel %vm4384_vm5, %v4128_v15, %v4640_v45  ;;  %vm4259_vm8 = vcmp.ge.f32.partialorder %v4003_v55, 0.0  ;;  %v351_v50 = vld [vmem:[#allocation2 + $0x220] sm:$0xff] }
 0x1c4   :  { %v4515_v30 = vmul.f32 0.2, %v4003_v55  ;;  %v6953_v20 = vpack.c.bf16 %v4896_v24, %v4896_v24  ;;  %v4766_v29 = vsel %vm4254_vm6, %v3998_v61, %v4510_v62  ;;  %vm4387_vm9 = vcmp.ge.f32.partialorder %v4131_v25, 0.0  ;;  %v479_v45 = vld [vmem:[#allocation2 + $0x620] sm:$0xff]  ;;  %v354_v46 = vld [vmem:[#allocation2 + $0x238] sm:$0xff]  ;;  %v9988_v24 = vpop.f32.mrf.mxu0  ;;  %v9990_v61 = vpop.f32.mrf.mxu1 }
 0x1c5   :  { %v4894_v52 = vsel %vm4382_vm7, %v4126_v63, %v4638_v53  ;;  %6049 = vst.msk [vmem:[%s11239_s4 + $0xfc] sm:$0xf] %vm5985_vm4, %v6825_v40  ;;  %v6823_v0 = vpack.c.bf16 %v4766_v29, %v4766_v29  ;;  %v4643_v10 = vmul.f32 0.2, %v4131_v25  ;;  %v9999_v62 = vld [vmem:[%s11237_s2] ss:$0 sm:$0xff]  ;;  %v3087_v53 = vadd.f32 %v9578_v12, %v475_v26 }
 0x1c6   :  { %v6951_v15 = vpack.c.bf16 %v4894_v52, %v4894_v52  ;;  %v4771_v48 = vsel %vm4259_vm8, %v4003_v55, %v4515_v30  ;;  %6177 = vst.msk [vmem:[%s11239_s4 + $0x2fc] sm:$0xf] %vm5985_vm4, %v6953_v20  ;;  %v3738_v55 = vmul.f32 %v9999_v62, %v3475_v59  ;;  %v2962_v40 = vadd.f32 %v9589_v32, %v350_v11  ;;  %v482_v30 = vld [vmem:[#allocation2 + $0x638] sm:$0xff]  ;;  %v352_v29 = vld [vmem:[#allocation2 + $0x228] sm:$0xff]  ;;  %v357_v26 = vld [vmem:[#allocation2 + $0x250] sm:$0xff] }
 0x1c7   :  { %v6828_v63 = vpack.c.bf16 %v4771_v48, %v4771_v48  ;;  %v480_v52 = vld [vmem:[#allocation2 + $0x628] sm:$0xff]  ;;  %6047 = vst.msk [vmem:[%s11239_s4 + $0xf4] sm:$0xf] %vm5985_vm4, %v6823_v0  ;;  %v4899_v20 = vsel %vm4387_vm9, %v4131_v25, %v4643_v10  ;;  %v3090_v59 = vadd.f32 %v9591_v1, %v478_v47  ;;  %v2960_v12 = vadd.f32 %v9622_v8, %v348_v6  ;;  %v485_v11 = vld [vmem:[#allocation2 + $0x650] sm:$0xff]  ;;  %v355_v48 = vld [vmem:[#allocation2 + $0x240] sm:$0xff] }
 0x1c8   :  { %6175 = vst.msk [vmem:[%s11239_s4 + $0x2f4] sm:$0xf] %vm5985_vm4, %v6951_v15  ;;  %v3088_v32 = vadd.f32 %v9624_v9, %v476_v44  ;;  %v6956_v0 = vpack.c.bf16 %v4899_v20, %v4899_v20  ;;  %v10023_v15 = vld [vmem:[%s11238_s3] ss:$0 sm:$0xff]  ;;  %v2965_v8 = vadd.f32 %v9634_v3, %v353_v31  ;;  %v3093_v9 = vadd.f32 %v9636_v34, %v481_v36  ;;  %v358_v47 = vld [vmem:[#allocation2 + $0x258] sm:$0xff]  ;;  %v356_v3 = vld [vmem:[#allocation2 + $0x248] sm:$0xff]  ;;  %v10037_v36 = vpop.f32.mrf.mxu0 }
 0x1c9   :  { %6052 = vst.msk [vmem:[%s11239_s4 + $0x108] sm:$0xf] %vm5985_vm4, %v6828_v63  ;;  %v4001_v1 = vadd.f32 %v10023_v15, %v3738_v55  ;;  %v483_v25 = vld [vmem:[#allocation2 + $0x640] sm:$0xff]  ;;  %v486_v6 = vld [vmem:[#allocation2 + $0x658] sm:$0xff]  ;;  %v2963_v44 = vadd.f32 %v9654_v56, %v351_v50  ;;  %v3091_v10 = vadd.f32 %v9656_v4, %v479_v45  ;;  %v2966_v63 = vadd.f32 %v9676_v57, %v354_v46  ;;  %v484_v31 = vld [vmem:[#allocation2 + $0x648] sm:$0xff] }
 0x1ca   :  { %3344 = vst.msk [vmem:[#allocation2 + $0x600] sm:$0xff] %vm22_vm3, %v3087_v53  ;;  %3219 = vst.msk [vmem:[#allocation2 + $0x218] sm:$0xff] %vm22_vm3, %v2962_v40  ;;  %v3094_v55 = vadd.f32 %v9678_v7, %v482_v30  ;;  %v361_v34 = vld [vmem:[#allocation2 + $0x270] sm:$0xff]  ;;  %v10039_v53 = vpop.f32.mrf.mxu1  ;;  %v2964_v4 = vadd.f32 %v9697_v14, %v352_v29  ;;  %v3092_v57 = vadd.f32 %v9699_v49, %v480_v52  ;;  %v359_v50 = vld [vmem:[#allocation2 + $0x260] sm:$0xff] }
 0x1cb   :  { %3347 = vst.msk [vmem:[#allocation2 + $0x618] sm:$0xff] %vm22_vm3, %v3090_v59  ;;  %3217 = vst.msk [vmem:[#allocation2 + $0x208] sm:$0xff] %vm22_vm3, %v2960_v12  ;;  %vm4257_vm10 = vcmp.ge.f32.partialorder %v4001_v1, 0.0  ;;  %v4513_v56 = vmul.f32 0.2, %v4001_v1  ;;  %v489_v7 = vld [vmem:[#allocation2 + $0x670] sm:$0xff]  ;;  %v2969_v46 = vadd.f32 %v9733_v2, %v357_v26  ;;  %v3097_v40 = vadd.f32 %v9735_v27, %v485_v11 }
 0x1cc   :  { %3345 = vst.msk [vmem:[#allocation2 + $0x608] sm:$0xff] %vm22_vm3, %v3088_v32  ;;  %3222 = vst.msk [vmem:[#allocation2 + $0x230] sm:$0xff] %vm22_vm3, %v2965_v8  ;;  %v487_v45 = vld [vmem:[#allocation2 + $0x660] sm:$0xff]  ;;  %v2967_v30 = vadd.f32 %v9771_v16, %v355_v48  ;;  %v3095_v14 = vadd.f32 %v9773_v42, %v483_v25  ;;  %v362_v49 = vld [vmem:[#allocation2 + $0x278] sm:$0xff]  ;;  %v2970_v59 = vadd.f32 %v9793_v21, %v358_v47  ;;  %v10070_v48 = vpop.f32.mrf.mxu0 }
 0x1cd   :  { %6180 = vst.msk [vmem:[%s11239_s4 + $0x308] sm:$0xf] %vm5985_vm4, %v6956_v0  ;;  %v490_v29 = vld [vmem:[#allocation2 + $0x678] sm:$0xff]  ;;  %v360_v52 = vld [vmem:[#allocation2 + $0x268] sm:$0xff]  ;;  %v4769_v20 = vsel %vm4257_vm10, %v4001_v1, %v4513_v56  ;;  %v3098_v12 = vadd.f32 %v9795_v5, %v486_v6  ;;  %v2968_v2 = vadd.f32 %v9807_v37, %v356_v3  ;;  %v365_v32 = vld [vmem:[#allocation2 + $0x290] sm:$0xff]  ;;  %v3096_v42 = vadd.f32 %v9809_v51, %v484_v31  ;;  %v10072_v0 = vpop.f32.mrf.mxu1 }
 0x1ce   :  { %3350 = vst.msk [vmem:[#allocation2 + $0x630] sm:$0xff] %vm22_vm3, %v3093_v9  ;;  %3220 = vst.msk [vmem:[#allocation2 + $0x220] sm:$0xff] %vm22_vm3, %v2963_v44  ;;  %v488_v27 = vld [vmem:[#allocation2 + $0x668] sm:$0xff]  ;;  %v493_v16 = vld [vmem:[#allocation2 + $0x690] sm:$0xff]  ;;  %v6826_v26 = vpack.c.bf16 %v4769_v20, %v4769_v20  ;;  %v2973_v21 = vadd.f32 %v9827_v17, %v361_v34  ;;  %v3101_v5 = vadd.f32 %v9829_v54, %v489_v7  ;;  %v10108_v34 = vpop.f32.mrf.mxu0 }
 0x1cf   :  { %3348 = vst.msk [vmem:[#allocation2 + $0x620] sm:$0xff] %vm22_vm3, %v3091_v10  ;;  %3223 = vst.msk [vmem:[#allocation2 + $0x238] sm:$0xff] %vm22_vm3, %v2966_v63  ;;  %v363_v11 = vld [vmem:[#allocation2 + $0x280] sm:$0xff]  ;;  %v2971_v1 = vadd.f32 %v9851_v23, %v359_v50  ;;  %v3099_v51 = vadd.f32 %v9853_v58, %v487_v45  ;;  %v2974_v17 = vadd.f32 %v9872_v18, %v362_v49  ;;  %v366_v8 = vld [vmem:[#allocation2 + $0x298] sm:$0xff] }
 0x1d0   :  { %3351 = vst.msk [vmem:[#allocation2 + $0x638] sm:$0xff] %vm22_vm3, %v3094_v55  ;;  %3221 = vst.msk [vmem:[#allocation2 + $0x228] sm:$0xff] %vm22_vm3, %v2964_v4  ;;  %v491_v37 = vld [vmem:[#allocation2 + $0x680] sm:$0xff]  ;;  %v3102_v54 = vadd.f32 %v9874_v38, %v490_v29  ;;  %v2972_v23 = vadd.f32 %v9894_v39, %v360_v52  ;;  %v3100_v58 = vadd.f32 %v9896_v19, %v488_v27  ;;  %v10123_v52 = vpop.f32.mrf.mxu0 }
 0x1d1   :  { %3349 = vst.msk [vmem:[#allocation2 + $0x628] sm:$0xff] %vm22_vm3, %v3092_v57  ;;  %3226 = vst.msk [vmem:[#allocation2 + $0x250] sm:$0xff] %vm22_vm3, %v2969_v46  ;;  %v3603_v9 = vld [vmem:[#allocation2 + $0x600] sm:$0xff]  ;;  %v3478_v25 = vld [vmem:[#allocation2 + $0x218] sm:$0xff]  ;;  %v2977_v18 = vadd.f32 %v9920_v35, %v365_v32  ;;  %v3105_v38 = vadd.f32 %v9922_v43, %v493_v16  ;;  %v2975_v39 = vadd.f32 %v9929_v22, %v363_v11 }
 0x1d2   :  { %3354 = vst.msk [vmem:[#allocation2 + $0x650] sm:$0xff] %vm22_vm3, %v3097_v40  ;;  %3224 = vst.msk [vmem:[#allocation2 + $0x240] sm:$0xff] %vm22_vm3, %v2967_v30  ;;  %v3866_v47 = vmul.f32 %v9999_v62, %v3603_v9  ;;  %v3741_v6 = vmul.f32 %v9999_v62, %v3478_v25  ;;  %v3606_v44 = vld [vmem:[#allocation2 + $0x618] sm:$0xff]  ;;  %v3476_v10 = vld [vmem:[#allocation2 + $0x208] sm:$0xff]  ;;  %v3103_v19 = vadd.f32 %v9931_v13, %v491_v37  ;;  %v10110_v13 = vpop.f32.mrf.mxu1  ;;  %v10139_v25 = vpop.f32.mrf.mxu0 }
 0x1d3   :  { %3352 = vst.msk [vmem:[#allocation2 + $0x640] sm:$0xff] %vm22_vm3, %v3095_v14  ;;  %3227 = vst.msk [vmem:[#allocation2 + $0x258] sm:$0xff] %vm22_vm3, %v2970_v59  ;;  %v3604_v63 = vld [vmem:[#allocation2 + $0x608] sm:$0xff]  ;;  %v3869_v35 = vmul.f32 %v9999_v62, %v3606_v44  ;;  %v3739_v43 = vmul.f32 %v9999_v62, %v3476_v10  ;;  %v3481_v3 = vld [vmem:[#allocation2 + $0x230] sm:$0xff]  ;;  %v2978_v22 = vadd.f32 %v9961_v41, %v366_v8 }
 0x1d4   :  { %3355 = vst.msk [vmem:[#allocation2 + $0x658] sm:$0xff] %vm22_vm3, %v3098_v12  ;;  %3225 = vst.msk [vmem:[#allocation2 + $0x248] sm:$0xff] %vm22_vm3, %v2968_v2  ;;  %v3867_v55 = vmul.f32 %v9999_v62, %v3604_v63  ;;  %v4129_v56 = vadd.f32 %v10023_v15, %v3866_v47  ;;  %v4004_v4 = vadd.f32 %v10023_v15, %v3741_v6  ;;  %v10125_v20 = vpop.f32.mrf.mxu1 }
 0x1d5   :  { %6050 = vst.msk [vmem:[%s11239_s4 + $0x100] sm:$0xf] %vm5985_vm4, %v6826_v26  ;;  %v3609_v31 = vld [vmem:[#allocation2 + $0x630] sm:$0xff]  ;;  %v3744_v57 = vmul.f32 %v9999_v62, %v3481_v3  ;;  %v3479_v50 = vld [vmem:[#allocation2 + $0x220] sm:$0xff]  ;;  %v4132_v45 = vadd.f32 %v10023_v15, %v3869_v35  ;;  %v4002_v41 = vadd.f32 %v10023_v15, %v3739_v43 }
 0x1d6   :  { %3353 = vst.msk [vmem:[#allocation2 + $0x648] sm:$0xff] %vm22_vm3, %v3096_v42  ;;  %3230 = vst.msk [vmem:[#allocation2 + $0x270] sm:$0xff] %vm22_vm3, %v2973_v21  ;;  %v3872_v7 = vmul.f32 %v9999_v62, %v3609_v31  ;;  %v4130_v46 = vadd.f32 %v10023_v15, %v3867_v55  ;;  %v3742_v40 = vmul.f32 %v9999_v62, %v3479_v50  ;;  %vm4385_vm11 = vcmp.ge.f32.partialorder %v4129_v56, 0.0  ;;  %v3607_v27 = vld [vmem:[#allocation2 + $0x620] sm:$0xff]  ;;  %v3482_v21 = vld [vmem:[#allocation2 + $0x238] sm:$0xff] }
 0x1d7   :  { %3358 = vst.msk [vmem:[#allocation2 + $0x670] sm:$0xff] %vm22_vm3, %v3101_v5  ;;  %3228 = vst.msk [vmem:[#allocation2 + $0x260] sm:$0xff] %vm22_vm3, %v2971_v1  ;;  %v4641_v30 = vmul.f32 0.2, %v4129_v56  ;;  %vm4260_vm12 = vcmp.ge.f32.partialorder %v4004_v4, 0.0  ;;  %vm4388_vm13 = vcmp.ge.f32.partialorder %v4132_v45, 0.0  ;;  %v3870_v9 = vmul.f32 %v9999_v62, %v3607_v27 }
 0x1d8   :  { %3356 = vst.msk [vmem:[#allocation2 + $0x660] sm:$0xff] %vm22_vm3, %v3099_v51  ;;  %3231 = vst.msk [vmem:[#allocation2 + $0x278] sm:$0xff] %vm22_vm3, %v2974_v17  ;;  %v4516_v14 = vmul.f32 0.2, %v4004_v4  ;;  %v4644_v49 = vmul.f32 0.2, %v4132_v45  ;;  %v4007_v51 = vadd.f32 %v10023_v15, %v3744_v57  ;;  %v4005_v8 = vadd.f32 %v10023_v15, %v3742_v40 }
 0x1d9   :  { %3359 = vst.msk [vmem:[#allocation2 + $0x678] sm:$0xff] %vm22_vm3, %v3102_v54  ;;  %3229 = vst.msk [vmem:[#allocation2 + $0x268] sm:$0xff] %vm22_vm3, %v2972_v23  ;;  %vm4258_vm14 = vcmp.ge.f32.partialorder %v4002_v41, 0.0  ;;  %v4514_v29 = vmul.f32 0.2, %v4002_v41  ;;  %v4897_v59 = vsel %vm4385_vm11, %v4129_v56, %v4641_v30  ;;  %vm4386_vm15 = vcmp.ge.f32.partialorder %v4130_v46, 0.0  ;;  %v10141_v23 = vpop.f32.mrf.mxu1  ;;  %v10161_v56 = vpop.f32.mrf.mxu0 }
 0x1da   :  { %3357 = vst.msk [vmem:[#allocation2 + $0x668] sm:$0xff] %vm22_vm3, %v3100_v58  ;;  %3234 = vst.msk [vmem:[#allocation2 + $0x290] sm:$0xff] %vm22_vm3, %v2977_v18  ;;  %v4772_v12 = vsel %vm4260_vm12, %v4004_v4, %v4516_v14  ;;  %v4642_v2 = vmul.f32 0.2, %v4130_v46  ;;  %v6954_v32 = vpack.c.bf16 %v4897_v59, %v4897_v59  ;;  %v4900_v26 = vsel %vm4388_vm13, %v4132_v45, %v4644_v49  ;;  %v3610_v5 = vld [vmem:[#allocation2 + $0x638] sm:$0xff]  ;;  %v3480_v47 = vld [vmem:[#allocation2 + $0x228] sm:$0xff] }
 0x1db   :  { %3362 = vst.msk [vmem:[#allocation2 + $0x690] sm:$0xff] %vm22_vm3, %v3105_v38  ;;  %3232 = vst.msk [vmem:[#allocation2 + $0x280] sm:$0xff] %vm22_vm3, %v2975_v39  ;;  %v6829_v16 = vpack.c.bf16 %v4772_v12, %v4772_v12  ;;  %v4770_v42 = vsel %vm4258_vm14, %v4002_v41, %v4514_v29  ;;  %v6957_v11 = vpack.c.bf16 %v4900_v26, %v4900_v26  ;;  %vm4263_vm0 = vcmp.ge.f32.partialorder %v4007_v51, 0.0  ;;  %v3608_v31 = vld [vmem:[#allocation2 + $0x628] sm:$0xff]  ;;  %v10163_v4 = vpop.f32.mrf.mxu1  ;;  %v3613_v45 = vld [vmem:[#allocation2 + $0x650] sm:$0xff] }
 0x1dc   :  { %3360 = vst.msk [vmem:[#allocation2 + $0x680] sm:$0xff] %vm22_vm3, %v3103_v19  ;;  %3235 = vst.msk [vmem:[#allocation2 + $0x298] sm:$0xff] %vm22_vm3, %v2978_v22  ;;  %v6827_v37 = vpack.c.bf16 %v4770_v42, %v4770_v42  ;;  %v4898_v1 = vsel %vm4386_vm15, %v4130_v46, %v4642_v2  ;;  %v4135_v54 = vadd.f32 %v10023_v15, %v3872_v7  ;;  %v4519_v58 = vmul.f32 0.2, %v4007_v51  ;;  %v3485_v22 = vld [vmem:[#allocation2 + $0x250] sm:$0xff]  ;;  %v3483_v29 = vld [vmem:[#allocation2 + $0x240] sm:$0xff]  ;;  %v10181_v42 = vpop.f32.mrf.mxu0 }
 0x1dd   :  { %6178 = vst.msk [vmem:[%s11239_s4 + $0x300] sm:$0xf] %vm5985_vm4, %v6954_v32  ;;  %6053 = vst.msk [vmem:[%s11239_s4 + $0x10c] sm:$0xf] %vm5985_vm4, %v6829_v16  ;;  %v6955_v17 = vpack.c.bf16 %v4898_v1, %v4898_v1  ;;  %v3745_v18 = vmul.f32 %v9999_v62, %v3482_v21  ;;  %v3873_v38 = vmul.f32 %v9999_v62, %v3610_v5  ;;  %vm4261_vm2 = vcmp.ge.f32.partialorder %v4005_v8, 0.0  ;;  %v3611_v32 = vld [vmem:[#allocation2 + $0x640] sm:$0xff]  ;;  %v10183_v21 = vpop.f32.mrf.mxu1 }
 0x1de   :  { %6181 = vst.msk [vmem:[%s11239_s4 + $0x30c] sm:$0xf] %vm5985_vm4, %v6957_v11  ;;  %6051 = vst.msk [vmem:[%s11239_s4 + $0x104] sm:$0xf] %vm5985_vm4, %v6827_v37  ;;  %vm4391_vm1 = vcmp.ge.f32.partialorder %v4135_v54, 0.0  ;;  %v4775_v10 = vsel %vm4263_vm0, %v4007_v51, %v4519_v58  ;;  %v4133_v63 = vadd.f32 %v10023_v15, %v3870_v9  ;;  %v3743_v3 = vmul.f32 %v9999_v62, %v3480_v47  ;;  %v3486_v16 = vld [vmem:[#allocation2 + $0x258] sm:$0xff] }
 0x1df   :  { %6179 = vst.msk [vmem:[%s11239_s4 + $0x304] sm:$0xf] %vm5985_vm4, %v6955_v17  ;;  %v4647_v6 = vmul.f32 0.2, %v4135_v54  ;;  %v4517_v44 = vmul.f32 0.2, %v4005_v8  ;;  %v4008_v39 = vadd.f32 %v10023_v15, %v3745_v18  ;;  %v4136_v19 = vadd.f32 %v10023_v15, %v3873_v38 }
 0x1e0   :  { %v6832_v35 = vpack.c.bf16 %v4775_v10, %v4775_v10  ;;  %vm4389_vm5 = vcmp.ge.f32.partialorder %v4133_v63, 0.0  ;;  %v4645_v50 = vmul.f32 0.2, %v4133_v63  ;;  %v4006_v30 = vadd.f32 %v10023_v15, %v3743_v3  ;;  %v3614_v26 = vld [vmem:[#allocation2 + $0x658] sm:$0xff] }
 0x1e1   :  { %v4903_v43 = vsel %vm4391_vm1, %v4135_v54, %v4647_v6  ;;  %v4773_v55 = vsel %vm4261_vm2, %v4005_v8, %v4517_v44  ;;  %vm4264_vm6 = vcmp.ge.f32.partialorder %v4008_v39, 0.0  ;;  %v4520_v41 = vmul.f32 0.2, %v4008_v39  ;;  %v10204_v6 = vpop.f32.mrf.mxu0  ;;  %v10206_v44 = vpop.f32.mrf.mxu1 }
 0x1e2   :  { %v6960_v57 = vpack.c.bf16 %v4903_v43, %v4903_v43  ;;  %v6830_v7 = vpack.c.bf16 %v4773_v55, %v4773_v55  ;;  %6056 = vst.msk [vmem:[%s11239_s4 + $0x118] sm:$0xf] %vm5985_vm4, %v6832_v35  ;;  %vm4392_vm7 = vcmp.ge.f32.partialorder %v4136_v19, 0.0  ;;  %v4648_v46 = vmul.f32 0.2, %v4136_v19 }
 0x1e3   :  { %v4901_v40 = vsel %vm4389_vm5, %v4133_v63, %v4645_v50  ;;  %v3871_v14 = vmul.f32 %v9999_v62, %v3608_v31  ;;  %v3748_v49 = vmul.f32 %v9999_v62, %v3485_v22  ;;  %v4776_v12 = vsel %vm4264_vm6, %v4008_v39, %v4520_v41 }
 0x1e4   :  { %6184 = vst.msk [vmem:[%s11239_s4 + $0x318] sm:$0xf] %vm5985_vm4, %v6960_v57  ;;  %6054 = vst.msk [vmem:[%s11239_s4 + $0x110] sm:$0xf] %vm5985_vm4, %v6830_v7  ;;  %v6958_v59 = vpack.c.bf16 %v4901_v40, %v4901_v40  ;;  %v4904_v2 = vsel %vm4392_vm7, %v4136_v19, %v4648_v46  ;;  %v3876_v27 = vmul.f32 %v9999_v62, %v3613_v45  ;;  %vm4262_vm8 = vcmp.ge.f32.partialorder %v4006_v30, 0.0  ;;  %v3484_v57 = vld [vmem:[#allocation2 + $0x248] sm:$0xff]  ;;  %v10216_v40 = vpop.f32.mrf.mxu0 }
 0x1e5   :  { %v6833_v5 = vpack.c.bf16 %v4776_v12, %v4776_v12  ;;  %v6961_v11 = vpack.c.bf16 %v4904_v2, %v4904_v2  ;;  %v4518_v37 = vmul.f32 0.2, %v4006_v30  ;;  %v4134_v1 = vadd.f32 %v10023_v15, %v3871_v14  ;;  %v3612_v7 = vld [vmem:[#allocation2 + $0x648] sm:$0xff]  ;;  %v3489_v46 = vld [vmem:[#allocation2 + $0x270] sm:$0xff] }
 0x1e6   :  { %6182 = vst.msk [vmem:[%s11239_s4 + $0x310] sm:$0xf] %vm5985_vm4, %v6958_v59  ;;  %v4011_v51 = vadd.f32 %v10023_v15, %v3748_v49  ;;  %v4139_v17 = vadd.f32 %v10023_v15, %v3876_v27  ;;  %v3746_v54 = vmul.f32 %v9999_v62, %v3483_v29  ;;  %v3874_v9 = vmul.f32 %v9999_v62, %v3611_v32  ;;  %v3617_v27 = vld [vmem:[#allocation2 + $0x670] sm:$0xff] }
 0x1e7   :  { %6057 = vst.msk [vmem:[%s11239_s4 + $0x11c] sm:$0xf] %vm5985_vm4, %v6833_v5  ;;  %6185 = vst.msk [vmem:[%s11239_s4 + $0x31c] sm:$0xf] %vm5985_vm4, %v6961_v11  ;;  %v4774_v8 = vsel %vm4262_vm8, %v4006_v30, %v4518_v37  ;;  %v3749_v58 = vmul.f32 %v9999_v62, %v3486_v16  ;;  %v3877_v18 = vmul.f32 %v9999_v62, %v3614_v26  ;;  %vm4390_vm9 = vcmp.ge.f32.partialorder %v4134_v1, 0.0  ;;  %v10218_v30 = vpop.f32.mrf.mxu1  ;;  %v3487_v11 = vld [vmem:[#allocation2 + $0x260] sm:$0xff] }
 0x1e8   :  { %v6831_v38 = vpack.c.bf16 %v4774_v8, %v4774_v8  ;;  %v4646_v47 = vmul.f32 0.2, %v4134_v1  ;;  %vm4267_vm10 = vcmp.ge.f32.partialorder %v4011_v51, 0.0  ;;  %v4523_v10 = vmul.f32 0.2, %v4011_v51  ;;  %v3615_v37 = vld [vmem:[#allocation2 + $0x660] sm:$0xff]  ;;  %v10239_v8 = vpop.f32.mrf.mxu0 }
 0x1e9   :  { %vm4395_vm11 = vcmp.ge.f32.partialorder %v4139_v17, 0.0  ;;  %v4651_v63 = vmul.f32 0.2, %v4139_v17  ;;  %v4009_v39 = vadd.f32 %v10023_v15, %v3746_v54  ;;  %v4137_v35 = vadd.f32 %v10023_v15, %v3874_v9  ;;  %v10241_v9 = vpop.f32.mrf.mxu1 }
 0x1ea   :  { %6055 = vst.msk [vmem:[%s11239_s4 + $0x114] sm:$0xf] %vm5985_vm4, %v6831_v38  ;;  %v4902_v19 = vsel %vm4390_vm9, %v4134_v1, %v4646_v47  ;;  %v4012_v43 = vadd.f32 %v10023_v15, %v3749_v58  ;;  %v4140_v55 = vadd.f32 %v10023_v15, %v3877_v18  ;;  %v4779_v31 = vsel %vm4267_vm10, %v4011_v51, %v4523_v10 }
 0x1eb   :  { %v6959_v3 = vpack.c.bf16 %v4902_v19, %v4902_v19  ;;  %v4907_v22 = vsel %vm4395_vm11, %v4139_v17, %v4651_v63  ;;  %vm4265_vm12 = vcmp.ge.f32.partialorder %v4009_v39, 0.0  ;;  %v6836_v50 = vpack.c.bf16 %v4779_v31, %v4779_v31  ;;  %v3490_v19 = vld [vmem:[#allocation2 + $0x278] sm:$0xff] }
 0x1ec   :  { %v6964_v45 = vpack.c.bf16 %v4907_v22, %v4907_v22  ;;  %v4521_v41 = vmul.f32 0.2, %v4009_v39  ;;  %vm4393_vm13 = vcmp.ge.f32.partialorder %v4137_v35, 0.0  ;;  %v4649_v14 = vmul.f32 0.2, %v4137_v35 }
 0x1ed   :  { %6183 = vst.msk [vmem:[%s11239_s4 + $0x314] sm:$0xf] %vm5985_vm4, %v6959_v3  ;;  %vm4268_vm14 = vcmp.ge.f32.partialorder %v4012_v43, 0.0  ;;  %v4524_v49 = vmul.f32 0.2, %v4012_v43  ;;  %vm4396_vm15 = vcmp.ge.f32.partialorder %v4140_v55, 0.0  ;;  %v3747_v12 = vmul.f32 %v9999_v62, %v3484_v57  ;;  %v10267_v57 = vpop.f32.mrf.mxu0 }
 0x1ee   :  { %6060 = vst.msk [vmem:[%s11239_s4 + $0x128] sm:$0xf] %vm5985_vm4, %v6836_v50  ;;  %6188 = vst.msk [vmem:[%s11239_s4 + $0x328] sm:$0xf] %vm5985_vm4, %v6964_v45  ;;  %v4777_v29 = vsel %vm4265_vm12, %v4009_v39, %v4521_v41  ;;  %v4652_v59 = vmul.f32 0.2, %v4140_v55  ;;  %v3875_v2 = vmul.f32 %v9999_v62, %v3612_v7  ;;  %v4905_v16 = vsel %vm4393_vm13, %v4137_v35, %v4649_v14  ;;  %v10269_v7 = vpop.f32.mrf.mxu1 }
 0x1ef   :  { %v6834_v32 = vpack.c.bf16 %v4777_v29, %v4777_v29  ;;  %v4780_v26 = vsel %vm4268_vm14, %v4012_v43, %v4524_v49  ;;  %v3752_v5 = vmul.f32 %v9999_v62, %v3489_v46  ;;  %v6962_v1 = vpack.c.bf16 %v4905_v16, %v4905_v16  ;;  %v3618_v14 = vld [vmem:[#allocation2 + $0x678] sm:$0xff]  ;;  %v3488_v49 = vld [vmem:[#allocation2 + $0x268] sm:$0xff] }
 0x1f0   :  { %v6837_v51 = vpack.c.bf16 %v4780_v26, %v4780_v26  ;;  %v4908_v17 = vsel %vm4396_vm15, %v4140_v55, %v4652_v59  ;;  %v4010_v54 = vadd.f32 %v10023_v15, %v3747_v12  ;;  %v4138_v18 = vadd.f32 %v10023_v15, %v3875_v2  ;;  %v3616_v2 = vld [vmem:[#allocation2 + $0x668] sm:$0xff] }
 0x1f1   :  { %6058 = vst.msk [vmem:[%s11239_s4 + $0x120] sm:$0xf] %vm5985_vm4, %v6834_v32  ;;  %v6965_v58 = vpack.c.bf16 %v4908_v17, %v4908_v17  ;;  %v4015_v38 = vadd.f32 %v10023_v15, %v3752_v5  ;;  %v3880_v47 = vmul.f32 %v9999_v62, %v3617_v27  ;;  %6186 = vst.msk [vmem:[%s11239_s4 + $0x320] sm:$0xf] %vm5985_vm4, %v6962_v1  ;;  %v10287_v1 = vpop.f32.mrf.mxu0 }
 0x1f2   :  { %6061 = vst.msk [vmem:[%s11239_s4 + $0x12c] sm:$0xf] %vm5985_vm4, %v6837_v51  ;;  %vm4266_vm0 = vcmp.ge.f32.partialorder %v4010_v54, 0.0  ;;  %v4522_v10 = vmul.f32 0.2, %v4010_v54  ;;  %v3750_v63 = vmul.f32 %v9999_v62, %v3487_v11  ;;  %v3878_v39 = vmul.f32 %v9999_v62, %v3615_v37  ;;  %v3493_v37 = vld [vmem:[#allocation2 + $0x290] sm:$0xff]  ;;  %v10289_v51 = vpop.f32.mrf.mxu1 }
 0x1f3   :  { %6189 = vst.msk [vmem:[%s11239_s4 + $0x32c] sm:$0xf] %vm5985_vm4, %v6965_v58  ;;  %vm4394_vm1 = vcmp.ge.f32.partialorder %v4138_v18, 0.0  ;;  %v4650_v35 = vmul.f32 0.2, %v4138_v18  ;;  %vm4271_vm2 = vcmp.ge.f32.partialorder %v4015_v38, 0.0  ;;  %v4143_v3 = vadd.f32 %v10023_v15, %v3880_v47 }
 0x1f4   :  { %v4527_v43 = vmul.f32 0.2, %v4015_v38  ;;  %v4778_v55 = vsel %vm4266_vm0, %v4010_v54, %v4522_v10  ;;  %v4013_v31 = vadd.f32 %v10023_v15, %v3750_v63  ;;  %v4141_v22 = vadd.f32 %v10023_v15, %v3878_v39  ;;  %v3491_v47 = vld [vmem:[#allocation2 + $0x280] sm:$0xff] }
 0x1f5   :  { %v6835_v50 = vpack.c.bf16 %v4778_v55, %v4778_v55  ;;  %v4906_v45 = vsel %vm4394_vm1, %v4138_v18, %v4650_v35  ;;  %v3753_v46 = vmul.f32 %v9999_v62, %v3490_v19  ;;  %vm4399_vm5 = vcmp.ge.f32.partialorder %v4143_v3, 0.0  ;;  %v3619_v10 = vld [vmem:[#allocation2 + $0x680] sm:$0xff] }
 0x1f6   :  { %v4783_v41 = vsel %vm4271_vm2, %v4015_v38, %v4527_v43  ;;  %v6963_v29 = vpack.c.bf16 %v4906_v45, %v4906_v45  ;;  %v4655_v12 = vmul.f32 0.2, %v4143_v3  ;;  %vm4269_vm6 = vcmp.ge.f32.partialorder %v4013_v31, 0.0  ;;  %v3621_v38 = vld [vmem:[#allocation2 + $0x690] sm:$0xff] }
 0x1f7   :  { %v6840_v59 = vpack.c.bf16 %v4783_v41, %v4783_v41  ;;  %6059 = vst.msk [vmem:[%s11239_s4 + $0x124] sm:$0xf] %vm5985_vm4, %v6835_v50  ;;  %v4525_v27 = vmul.f32 0.2, %v4013_v31  ;;  %vm4397_vm7 = vcmp.ge.f32.partialorder %v4141_v22, 0.0  ;;  %v4016_v26 = vadd.f32 %v10023_v15, %v3753_v46  ;;  %v10311_v41 = vpop.f32.mrf.mxu0  ;;  %v10313_v46 = vpop.f32.mrf.mxu1 }
 0x1f8   :  { %v4653_v32 = vmul.f32 0.2, %v4141_v22  ;;  %6187 = vst.msk [vmem:[%s11239_s4 + $0x324] sm:$0xf] %vm5985_vm4, %v6963_v29  ;;  %v4911_v16 = vsel %vm4399_vm5, %v4143_v3, %v4655_v12  ;;  %v3881_v5 = vmul.f32 %v9999_v62, %v3618_v14  ;;  %v3751_v11 = vmul.f32 %v9999_v62, %v3488_v49 }
 0x1f9   :  { %6064 = vst.msk [vmem:[%s11239_s4 + $0x138] sm:$0xf] %vm5985_vm4, %v6840_v59  ;;  %v6968_v17 = vpack.c.bf16 %v4911_v16, %v4911_v16  ;;  %v4781_v54 = vsel %vm4269_vm6, %v4013_v31, %v4525_v27  ;;  %v3879_v18 = vmul.f32 %v9999_v62, %v3616_v2  ;;  %vm4272_vm8 = vcmp.ge.f32.partialorder %v4016_v26, 0.0 }
 0x1fa   :  { %v4909_v58 = vsel %vm4397_vm7, %v4141_v22, %v4653_v32  ;;  %v6838_v63 = vpack.c.bf16 %v4781_v54, %v4781_v54  ;;  %v4528_v19 = vmul.f32 0.2, %v4016_v26  ;;  %v4144_v35 = vadd.f32 %v10023_v15, %v3881_v5  ;;  %v364_v54 = vld [vmem:[#allocation2 + $0x288] sm:$0xff] }
 0x1fb   :  { %v6966_v39 = vpack.c.bf16 %v4909_v58, %v4909_v58  ;;  %6192 = vst.msk [vmem:[%s11239_s4 + $0x338] sm:$0xf] %vm5985_vm4, %v6968_v17  ;;  %v4014_v43 = vadd.f32 %v10023_v15, %v3751_v11  ;;  %v4142_v55 = vadd.f32 %v10023_v15, %v3879_v18  ;;  %v3756_v3 = vmul.f32 %v9999_v62, %v3493_v37  ;;  %v3494_v37 = vld [vmem:[#allocation2 + $0x298] sm:$0xff]  ;;  %v10323_v58 = vpop.f32.mrf.mxu0  ;;  %v10325_v18 = vpop.f32.mrf.mxu1 }
 0x1fc   :  { %6062 = vst.msk [vmem:[%s11239_s4 + $0x130] sm:$0xf] %vm5985_vm4, %v6838_v63  ;;  %v4784_v31 = vsel %vm4272_vm8, %v4016_v26, %v4528_v19  ;;  %v3884_v22 = vmul.f32 %v9999_v62, %v3621_v38  ;;  %v3754_v50 = vmul.f32 %v9999_v62, %v3491_v47  ;;  %v3882_v45 = vmul.f32 %v9999_v62, %v3619_v10  ;;  %v494_v17 = vld [vmem:[#allocation2 + $0x698] sm:$0xff]  ;;  %v492_v63 = vld [vmem:[#allocation2 + $0x688] sm:$0xff]  ;;  %v497_v19 = vld [vmem:[#allocation2 + $0x6b0] sm:$0xff] }
 0x1fd   :  { %6190 = vst.msk [vmem:[%s11239_s4 + $0x330] sm:$0xf] %vm5985_vm4, %v6966_v39  ;;  %v6841_v14 = vpack.c.bf16 %v4784_v31, %v4784_v31  ;;  %vm4400_vm9 = vcmp.ge.f32.partialorder %v4144_v35, 0.0  ;;  %v4656_v49 = vmul.f32 0.2, %v4144_v35  ;;  %vm4270_vm10 = vcmp.ge.f32.partialorder %v4014_v43, 0.0 }
 0x1fe   :  { %v4526_v29 = vmul.f32 0.2, %v4014_v43  ;;  %vm4398_vm11 = vcmp.ge.f32.partialorder %v4142_v55, 0.0  ;;  %v4654_v59 = vmul.f32 0.2, %v4142_v55  ;;  %v4019_v12 = vadd.f32 %v10023_v15, %v3756_v3  ;;  %v369_v39 = vld [vmem:[#allocation2 + $0x2b0] sm:$0xff] }
 0x1ff   :  { %6065 = vst.msk [vmem:[%s11239_s4 + $0x13c] sm:$0xf] %vm5985_vm4, %v6841_v14  ;;  %v4912_v2 = vsel %vm4400_vm9, %v4144_v35, %v4656_v49  ;;  %v4147_v27 = vadd.f32 %v10023_v15, %v3884_v22  ;;  %v4017_v32 = vadd.f32 %v10023_v15, %v3754_v50  ;;  %v4145_v16 = vadd.f32 %v10023_v15, %v3882_v45  ;;  %v367_v50 = vld [vmem:[#allocation2 + $0x2a0] sm:$0xff]  ;;  %v370_v14 = vld [vmem:[#allocation2 + $0x2b8] sm:$0xff] }
 0x200   :  { %v6969_v26 = vpack.c.bf16 %v4912_v2, %v4912_v2  ;;  %v4782_v5 = vsel %vm4270_vm10, %v4014_v43, %v4526_v29  ;;  %v4910_v11 = vsel %vm4398_vm11, %v4142_v55, %v4654_v59  ;;  %vm4275_vm12 = vcmp.ge.f32.partialorder %v4019_v12, 0.0  ;;  %v495_v45 = vld [vmem:[#allocation2 + $0x6a0] sm:$0xff] }
 0x201   :  { %v6839_v38 = vpack.c.bf16 %v4782_v5, %v4782_v5  ;;  %v6967_v47 = vpack.c.bf16 %v4910_v11, %v4910_v11  ;;  %v4531_v10 = vmul.f32 0.2, %v4019_v12  ;;  %vm4403_vm13 = vcmp.ge.f32.partialorder %v4147_v27, 0.0  ;;  %v368_v5 = vld [vmem:[#allocation2 + $0x2a8] sm:$0xff] }
 0x202   :  { %6193 = vst.msk [vmem:[%s11239_s4 + $0x33c] sm:$0xf] %vm5985_vm4, %v6969_v26  ;;  %v4659_v35 = vmul.f32 0.2, %v4147_v27  ;;  %vm4273_vm14 = vcmp.ge.f32.partialorder %v4017_v32, 0.0  ;;  %vm4401_vm15 = vcmp.ge.f32.partialorder %v4145_v16, 0.0  ;;  %v3757_v31 = vmul.f32 %v9999_v62, %v3494_v37 }
 0x203   :  { %v4529_v43 = vmul.f32 0.2, %v4017_v32  ;;  %6063 = vst.msk [vmem:[%s11239_s4 + $0x134] sm:$0xf] %vm5985_vm4, %v6839_v38  ;;  %6191 = vst.msk [vmem:[%s11239_s4 + $0x334] sm:$0xf] %vm5985_vm4, %v6967_v47  ;;  %v4787_v55 = vsel %vm4275_vm12, %v4019_v12, %v4531_v10  ;;  %v3106_v22 = vadd.f32 %v9963_v33, %v494_v17  ;;  %v2976_v2 = vadd.f32 %v9975_v28, %v364_v54  ;;  %v10344_v38 = vpop.f32.mrf.mxu0  ;;  %v10346_v12 = vpop.f32.mrf.mxu1 }
 0x204   :  { %v4657_v3 = vmul.f32 0.2, %v4145_v16  ;;  %v6844_v49 = vpack.c.bf16 %v4787_v55, %v4787_v55  ;;  %v4915_v29 = vsel %vm4403_vm13, %v4147_v27, %v4659_v35  ;;  %v498_v26 = vld [vmem:[#allocation2 + $0x6b8] sm:$0xff]  ;;  %v496_v11 = vld [vmem:[#allocation2 + $0x6a8] sm:$0xff]  ;;  %v4020_v17 = vadd.f32 %v10023_v15, %v3757_v31  ;;  %v373_v10 = vld [vmem:[#allocation2 + $0x2d0] sm:$0xff] }
 0x205   :  { %v4785_v59 = vsel %vm4273_vm14, %v4017_v32, %v4529_v43  ;;  %v6972_v47 = vpack.c.bf16 %v4915_v29, %v4915_v29  ;;  %3363 = vst.msk [vmem:[#allocation2 + $0x698] sm:$0xff] %vm22_vm3, %v3106_v22  ;;  %v501_v27 = vld [vmem:[#allocation2 + $0x6d0] sm:$0xff]  ;;  %v371_v32 = vld [vmem:[#allocation2 + $0x2c0] sm:$0xff]  ;;  %3233 = vst.msk [vmem:[#allocation2 + $0x288] sm:$0xff] %vm22_vm3, %v2976_v2  ;;  %v3104_v54 = vadd.f32 %v9977_v60, %v492_v63  ;;  %v10380_v29 = vpop.f32.mrf.mxu0 }
 0x206   :  { %v6842_v37 = vpack.c.bf16 %v4785_v59, %v4785_v59  ;;  %v4913_v33 = vsel %vm4401_vm15, %v4145_v16, %v4657_v3  ;;  %6068 = vst.msk [vmem:[%s11239_s4 + $0x148] sm:$0xf] %vm5985_vm4, %v6844_v49  ;;  %v2981_v35 = vadd.f32 %v9988_v24, %v369_v39  ;;  %v3109_v16 = vadd.f32 %v9990_v61, %v497_v19  ;;  %v499_v43 = vld [vmem:[#allocation2 + $0x6c0] sm:$0xff]  ;;  %v374_v55 = vld [vmem:[#allocation2 + $0x2d8] sm:$0xff]  ;;  %v372_v61 = vld [vmem:[#allocation2 + $0x2c8] sm:$0xff]  ;;  %v10382_v59 = vpop.f32.mrf.mxu1 }
 0x207   :  { %v6970_v28 = vpack.c.bf16 %v4913_v33, %v4913_v33  ;;  %v502_v3 = vld [vmem:[#allocation2 + $0x6d8] sm:$0xff]  ;;  %6196 = vst.msk [vmem:[%s11239_s4 + $0x348] sm:$0xf] %vm5985_vm4, %v6972_v47  ;;  %vm4276_vm0 = vcmp.ge.f32.partialorder %v4020_v17, 0.0  ;;  %v4532_v31 = vmul.f32 0.2, %v4020_v17  ;;  %v2979_v60 = vadd.f32 %v10037_v36, %v367_v50 }
 0x208   :  { %6066 = vst.msk [vmem:[%s11239_s4 + $0x140] sm:$0xf] %vm5985_vm4, %v6842_v37  ;;  %v3107_v24 = vadd.f32 %v10039_v53, %v495_v45  ;;  %v500_v63 = vld [vmem:[#allocation2 + $0x6c8] sm:$0xff]  ;;  %v377_v39 = vld [vmem:[#allocation2 + $0x2f0] sm:$0xff]  ;;  %v2982_v19 = vadd.f32 %v10070_v48, %v370_v14  ;;  %v3110_v36 = vadd.f32 %v10072_v0, %v498_v26  ;;  %v2980_v53 = vadd.f32 %v10108_v34, %v368_v5  ;;  %v375_v45 = vld [vmem:[#allocation2 + $0x2e0] sm:$0xff] }
 0x209   :  { %6194 = vst.msk [vmem:[%s11239_s4 + $0x340] sm:$0xf] %vm5985_vm4, %v6970_v28  ;;  %v3108_v22 = vadd.f32 %v10110_v13, %v496_v11  ;;  %v505_v50 = vld [vmem:[#allocation2 + $0x6f0] sm:$0xff]  ;;  %v503_v49 = vld [vmem:[#allocation2 + $0x6e0] sm:$0xff]  ;;  %v4788_v2 = vsel %vm4276_vm0, %v4020_v17, %v4532_v31  ;;  %v2985_v48 = vadd.f32 %v10123_v52, %v373_v10  ;;  %v3113_v0 = vadd.f32 %v10125_v20, %v501_v27  ;;  %v378_v13 = vld [vmem:[#allocation2 + $0x2f8] sm:$0xff] }
 0x20a   :  { %3361 = vst.msk [vmem:[#allocation2 + $0x688] sm:$0xff] %vm22_vm3, %v3104_v54  ;;  %3238 = vst.msk [vmem:[#allocation2 + $0x2b0] sm:$0xff] %vm22_vm3, %v2981_v35  ;;  %v2983_v34 = vadd.f32 %v10139_v25, %v371_v32  ;;  %v506_v14 = vld [vmem:[#allocation2 + $0x6f8] sm:$0xff]  ;;  %v376_v26 = vld [vmem:[#allocation2 + $0x2e8] sm:$0xff]  ;;  %v6845_v5 = vpack.c.bf16 %v4788_v2, %v4788_v2  ;;  %v3111_v11 = vadd.f32 %v10141_v23, %v499_v43  ;;  %v10415_v35 = vpop.f32.mrf.mxu0 }
 0x20b   :  { %3366 = vst.msk [vmem:[#allocation2 + $0x6b0] sm:$0xff] %vm22_vm3, %v3109_v16  ;;  %3236 = vst.msk [vmem:[#allocation2 + $0x2a0] sm:$0xff] %vm22_vm3, %v2979_v60  ;;  %v2986_v52 = vadd.f32 %v10161_v56, %v374_v55  ;;  %v3114_v20 = vadd.f32 %v10163_v4, %v502_v3  ;;  %v504_v47 = vld [vmem:[#allocation2 + $0x6e8] sm:$0xff]  ;;  %v381_v25 = vld [vmem:[#allocation2 + $0x310] sm:$0xff]  ;;  %v2984_v33 = vadd.f32 %v10181_v42, %v372_v61  ;;  %v10417_v16 = vpop.f32.mrf.mxu1 }
 0x20c   :  { %3364 = vst.msk [vmem:[#allocation2 + $0x6a0] sm:$0xff] %vm22_vm3, %v3107_v24  ;;  %3239 = vst.msk [vmem:[#allocation2 + $0x2b8] sm:$0xff] %vm22_vm3, %v2982_v19  ;;  %v509_v37 = vld [vmem:[#allocation2 + $0x710] sm:$0xff]  ;;  %v3112_v17 = vadd.f32 %v10183_v21, %v500_v63  ;;  %v2989_v10 = vadd.f32 %v10204_v6, %v377_v39  ;;  %v3117_v23 = vadd.f32 %v10206_v44, %v505_v50  ;;  %v379_v56 = vld [vmem:[#allocation2 + $0x300] sm:$0xff] }
 0x20d   :  { %3367 = vst.msk [vmem:[#allocation2 + $0x6b8] sm:$0xff] %vm22_vm3, %v3110_v36  ;;  %3237 = vst.msk [vmem:[#allocation2 + $0x2a8] sm:$0xff] %vm22_vm3, %v2980_v53  ;;  %v507_v27 = vld [vmem:[#allocation2 + $0x700] sm:$0xff]  ;;  %v382_v4 = vld [vmem:[#allocation2 + $0x318] sm:$0xff]  ;;  %v2987_v42 = vadd.f32 %v10216_v40, %v375_v45  ;;  %v3115_v21 = vadd.f32 %v10218_v30, %v503_v49  ;;  %v2990_v6 = vadd.f32 %v10239_v8, %v378_v13 }
 0x20e   :  { %3365 = vst.msk [vmem:[#allocation2 + $0x6a8] sm:$0xff] %vm22_vm3, %v3108_v22  ;;  %3242 = vst.msk [vmem:[#allocation2 + $0x2d0] sm:$0xff] %vm22_vm3, %v2985_v48  ;;  %v3622_v32 = vld [vmem:[#allocation2 + $0x698] sm:$0xff]  ;;  %v3118_v44 = vadd.f32 %v10241_v9, %v506_v14  ;;  %v380_v54 = vld [vmem:[#allocation2 + $0x308] sm:$0xff]  ;;  %v2988_v40 = vadd.f32 %v10267_v57, %v376_v26  ;;  %v3116_v30 = vadd.f32 %v10269_v7, %v504_v47 }
 0x20f   :  { %3370 = vst.msk [vmem:[#allocation2 + $0x6d0] sm:$0xff] %vm22_vm3, %v3113_v0  ;;  %3240 = vst.msk [vmem:[#allocation2 + $0x2c0] sm:$0xff] %vm22_vm3, %v2983_v34  ;;  %v510_v28 = vld [vmem:[#allocation2 + $0x718] sm:$0xff]  ;;  %v3885_v43 = vmul.f32 %v9999_v62, %v3622_v32  ;;  %v3492_v55 = vld [vmem:[#allocation2 + $0x288] sm:$0xff]  ;;  %v2993_v8 = vadd.f32 %v10287_v1, %v381_v25  ;;  %v3121_v3 = vadd.f32 %v10289_v51, %v509_v37 }
 0x210   :  { %6069 = vst.msk [vmem:[%s11239_s4 + $0x14c] sm:$0xf] %vm5985_vm4, %v6845_v5  ;;  %v3755_v9 = vmul.f32 %v9999_v62, %v3492_v55  ;;  %v2991_v31 = vadd.f32 %v10311_v41, %v379_v56  ;;  %v3119_v57 = vadd.f32 %v10313_v46, %v507_v27  ;;  %v2994_v62 = vadd.f32 %v10323_v58, %v382_v4  ;;  %v10446_v46 = vld [vmem:[%s11237_s2] ss:$0 sm:$0xff]  ;;  %v10456_v58 = vpop.f32.mrf.mxu1 }
 0x211   :  { %3368 = vst.msk [vmem:[#allocation2 + $0x6c0] sm:$0xff] %vm22_vm3, %v3111_v11  ;;  %3243 = vst.msk [vmem:[#allocation2 + $0x2d8] sm:$0xff] %vm22_vm3, %v2986_v52  ;;  %v4148_v7 = vadd.f32 %v10023_v15, %v3885_v43  ;;  %v3620_v60 = vld [vmem:[#allocation2 + $0x688] sm:$0xff]  ;;  %v3497_v1 = vld [vmem:[#allocation2 + $0x2b0] sm:$0xff]  ;;  %v3122_v61 = vadd.f32 %v10325_v18, %v510_v28  ;;  %v2992_v51 = vadd.f32 %v10344_v38, %v380_v54 }
 0x212   :  { %3371 = vst.msk [vmem:[#allocation2 + $0x6d8] sm:$0xff] %vm22_vm3, %v3114_v20  ;;  %3241 = vst.msk [vmem:[#allocation2 + $0x2c8] sm:$0xff] %vm22_vm3, %v2984_v33  ;;  %v3625_v24 = vld [vmem:[#allocation2 + $0x6b0] sm:$0xff]  ;;  %v4018_v41 = vadd.f32 %v10023_v15, %v3755_v9  ;;  %v3883_v63 = vmul.f32 %v10446_v46, %v3620_v60  ;;  %v3760_v39 = vmul.f32 %v10446_v46, %v3497_v1  ;;  %v3495_v36 = vld [vmem:[#allocation2 + $0x2a0] sm:$0xff]  ;;  %v10454_v15 = vpop.f32.mrf.mxu0  ;;  %v10475_v52 = vpop.f32.mrf.mxu1 }
 0x213   :  { %3369 = vst.msk [vmem:[#allocation2 + $0x6c8] sm:$0xff] %vm22_vm3, %v3112_v17  ;;  %3246 = vst.msk [vmem:[#allocation2 + $0x2f0] sm:$0xff] %vm22_vm3, %v2989_v10  ;;  %v3888_v19 = vmul.f32 %v10446_v46, %v3625_v24  ;;  %v3623_v53 = vld [vmem:[#allocation2 + $0x6a0] sm:$0xff]  ;;  %vm4404_vm1 = vcmp.ge.f32.partialorder %v4148_v7, 0.0  ;;  %v4660_v18 = vmul.f32 0.2, %v4148_v7  ;;  %v3758_v38 = vmul.f32 %v10446_v46, %v3495_v36 }
 0x214   :  { %3374 = vst.msk [vmem:[#allocation2 + $0x6f0] sm:$0xff] %vm22_vm3, %v3117_v23  ;;  %3244 = vst.msk [vmem:[#allocation2 + $0x2e0] sm:$0xff] %vm22_vm3, %v2987_v42  ;;  %v3886_v22 = vmul.f32 %v10446_v46, %v3623_v53  ;;  %vm4274_vm2 = vcmp.ge.f32.partialorder %v4018_v41, 0.0  ;;  %v4530_v50 = vmul.f32 0.2, %v4018_v41  ;;  %v10473_v11 = vpop.f32.mrf.mxu0  ;;  %v3498_v25 = vld [vmem:[#allocation2 + $0x2b8] sm:$0xff] }
 0x215   :  { %3372 = vst.msk [vmem:[#allocation2 + $0x6e0] sm:$0xff] %vm22_vm3, %v3115_v21  ;;  %3247 = vst.msk [vmem:[#allocation2 + $0x2f8] sm:$0xff] %vm22_vm3, %v2990_v6  ;;  %v10466_v45 = vld [vmem:[%s11238_s3] ss:$0 sm:$0xff]  ;;  %v4916_v48 = vsel %vm4404_vm1, %v4148_v7, %v4660_v18  ;;  %v3626_v10 = vld [vmem:[#allocation2 + $0x6b8] sm:$0xff] }
 0x216   :  { %3375 = vst.msk [vmem:[#allocation2 + $0x6f8] sm:$0xff] %vm22_vm3, %v3118_v44  ;;  %3245 = vst.msk [vmem:[#allocation2 + $0x2e8] sm:$0xff] %vm22_vm3, %v2988_v40  ;;  %v4146_v49 = vadd.f32 %v10466_v45, %v3883_v63  ;;  %v4023_v2 = vadd.f32 %v10466_v45, %v3760_v39  ;;  %v4151_v0 = vadd.f32 %v10466_v45, %v3888_v19  ;;  %v3496_v4 = vld [vmem:[#allocation2 + $0x2a8] sm:$0xff]  ;;  %v3501_v28 = vld [vmem:[#allocation2 + $0x2d0] sm:$0xff]  ;;  %v10487_v55 = vpop.f32.mrf.mxu0  ;;  %v10489_v40 = vpop.f32.mrf.mxu1 }
 0x217   :  { %3373 = vst.msk [vmem:[#allocation2 + $0x6e8] sm:$0xff] %vm22_vm3, %v3116_v30  ;;  %3250 = vst.msk [vmem:[#allocation2 + $0x310] sm:$0xff] %vm22_vm3, %v2993_v8  ;;  %v4021_v34 = vadd.f32 %v10466_v45, %v3758_v38  ;;  %v4149_v13 = vadd.f32 %v10466_v45, %v3886_v22  ;;  %v6973_v14 = vpack.c.bf16 %v4916_v48, %v4916_v48  ;;  %v3624_v32 = vld [vmem:[#allocation2 + $0x6a8] sm:$0xff]  ;;  %v3629_v54 = vld [vmem:[#allocation2 + $0x6d0] sm:$0xff] }
 0x218   :  { %3378 = vst.msk [vmem:[#allocation2 + $0x710] sm:$0xff] %vm22_vm3, %v3121_v3  ;;  %3248 = vst.msk [vmem:[#allocation2 + $0x300] sm:$0xff] %vm22_vm3, %v2991_v31  ;;  %v4786_v26 = vsel %vm4274_vm2, %v4018_v41, %v4530_v50  ;;  %vm4402_vm5 = vcmp.ge.f32.partialorder %v4146_v49, 0.0  ;;  %v4658_v5 = vmul.f32 0.2, %v4146_v49  ;;  %vm4279_vm6 = vcmp.ge.f32.partialorder %v4023_v2, 0.0  ;;  %v10522_v39 = vpop.f32.mrf.mxu0  ;;  %v10524_v19 = vpop.f32.mrf.mxu1 }
 0x219   :  { %3376 = vst.msk [vmem:[#allocation2 + $0x700] sm:$0xff] %vm22_vm3, %v3119_v57  ;;  %3251 = vst.msk [vmem:[#allocation2 + $0x318] sm:$0xff] %vm22_vm3, %v2994_v62  ;;  %v6843_v20 = vpack.c.bf16 %v4786_v26, %v4786_v26  ;;  %v4535_v47 = vmul.f32 0.2, %v4023_v2  ;;  %vm4407_vm7 = vcmp.ge.f32.partialorder %v4151_v0, 0.0  ;;  %vm4277_vm8 = vcmp.ge.f32.partialorder %v4021_v34, 0.0 }
 0x21a   :  { %3379 = vst.msk [vmem:[#allocation2 + $0x718] sm:$0xff] %vm22_vm3, %v3122_v61  ;;  %3249 = vst.msk [vmem:[#allocation2 + $0x308] sm:$0xff] %vm22_vm3, %v2992_v51  ;;  %v4914_v37 = vsel %vm4402_vm5, %v4146_v49, %v4658_v5  ;;  %v4663_v33 = vmul.f32 0.2, %v4151_v0  ;;  %v4533_v17 = vmul.f32 0.2, %v4021_v34  ;;  %v3761_v44 = vmul.f32 %v10446_v46, %v3498_v25  ;;  %v10528_v26 = vpop.f32.mrf.mxu0  ;;  %v10530_v5 = vpop.f32.mrf.mxu1 }
 0x21b   :  { %6197 = vst.msk [vmem:[%s11239_s4 + $0x34c] sm:$0xf] %vm5985_vm4, %v6973_v14  ;;  %6067 = vst.msk [vmem:[%s11239_s4 + $0x144] sm:$0xf] %vm5985_vm4, %v6843_v20  ;;  %v6971_v23 = vpack.c.bf16 %v4914_v37, %v4914_v37  ;;  %v4791_v56 = vsel %vm4279_vm6, %v4023_v2, %v4535_v47  ;;  %vm4405_vm9 = vcmp.ge.f32.partialorder %v4149_v13, 0.0  ;;  %v3499_v43 = vld [vmem:[#allocation2 + $0x2c0] sm:$0xff]  ;;  %v3889_v3 = vmul.f32 %v10446_v46, %v3626_v10 }
 0x21c   :  { %v4661_v27 = vmul.f32 0.2, %v4149_v13  ;;  %v6848_v42 = vpack.c.bf16 %v4791_v56, %v4791_v56  ;;  %v4919_v21 = vsel %vm4407_vm7, %v4151_v0, %v4663_v33  ;;  %v4789_v6 = vsel %vm4277_vm8, %v4021_v34, %v4533_v17  ;;  %v3627_v48 = vld [vmem:[#allocation2 + $0x6c0] sm:$0xff]  ;;  %v3502_v0 = vld [vmem:[#allocation2 + $0x2d8] sm:$0xff] }
 0x21d   :  { %6195 = vst.msk [vmem:[%s11239_s4 + $0x344] sm:$0xf] %vm5985_vm4, %v6971_v23  ;;  %v6976_v30 = vpack.c.bf16 %v4919_v21, %v4919_v21  ;;  %v6846_v8 = vpack.c.bf16 %v4789_v6, %v4789_v6  ;;  %v4024_v57 = vadd.f32 %v10466_v45, %v3761_v44  ;;  %v3759_v7 = vmul.f32 %v10446_v46, %v3496_v4  ;;  %v3630_v33 = vld [vmem:[#allocation2 + $0x6d8] sm:$0xff]  ;;  %v3628_v4 = vld [vmem:[#allocation2 + $0x6c8] sm:$0xff] }
 0x21e   :  { %v4917_v9 = vsel %vm4405_vm9, %v4149_v13, %v4661_v27  ;;  %6072 = vst.msk [vmem:[%s11239_s4 + $0x158] sm:$0xf] %vm5985_vm4, %v6848_v42  ;;  %v3887_v60 = vmul.f32 %v10446_v46, %v3624_v32  ;;  %v4152_v1 = vadd.f32 %v10466_v45, %v3889_v3  ;;  %v3764_v24 = vmul.f32 %v10446_v46, %v3501_v28  ;;  %v3500_v27 = vld [vmem:[#allocation2 + $0x2c8] sm:$0xff]  ;;  %v3505_v32 = vld [vmem:[#allocation2 + $0x2f0] sm:$0xff] }
 0x21f   :  { %v6974_v31 = vpack.c.bf16 %v4917_v9, %v4917_v9  ;;  %6200 = vst.msk [vmem:[%s11239_s4 + $0x358] sm:$0xf] %vm5985_vm4, %v6976_v30  ;;  %6070 = vst.msk [vmem:[%s11239_s4 + $0x150] sm:$0xf] %vm5985_vm4, %v6846_v8  ;;  %v3892_v62 = vmul.f32 %v10446_v46, %v3629_v54  ;;  %v3762_v61 = vmul.f32 %v10446_v46, %v3499_v43  ;;  %vm4280_vm10 = vcmp.ge.f32.partialorder %v4024_v57, 0.0  ;;  %v10556_v30 = vpop.f32.mrf.mxu0  ;;  %v10558_v8 = vpop.f32.mrf.mxu1 }
 0x220   :  { %v4536_v51 = vmul.f32 0.2, %v4024_v57  ;;  %v4022_v41 = vadd.f32 %v10466_v45, %v3759_v7  ;;  %v4150_v63 = vadd.f32 %v10466_v45, %v3887_v60  ;;  %vm4408_vm11 = vcmp.ge.f32.partialorder %v4152_v1, 0.0  ;;  %v3633_v7 = vld [vmem:[#allocation2 + $0x6f0] sm:$0xff]  ;;  %v3503_v60 = vld [vmem:[#allocation2 + $0x2e0] sm:$0xff] }
 0x221   :  { %6198 = vst.msk [vmem:[%s11239_s4 + $0x350] sm:$0xf] %vm5985_vm4, %v6974_v31  ;;  %v4664_v36 = vmul.f32 0.2, %v4152_v1  ;;  %v4027_v53 = vadd.f32 %v10466_v45, %v3764_v24  ;;  %v4155_v18 = vadd.f32 %v10466_v45, %v3892_v62  ;;  %v4025_v37 = vadd.f32 %v10466_v45, %v3762_v61 }
 0x222   :  { %v4792_v38 = vsel %vm4280_vm10, %v4024_v57, %v4536_v51  ;;  %vm4278_vm12 = vcmp.ge.f32.partialorder %v4022_v41, 0.0  ;;  %v4534_v22 = vmul.f32 0.2, %v4022_v41  ;;  %vm4406_vm13 = vcmp.ge.f32.partialorder %v4150_v63, 0.0 }
 0x223   :  { %v6849_v50 = vpack.c.bf16 %v4792_v38, %v4792_v38  ;;  %v4920_v49 = vsel %vm4408_vm11, %v4152_v1, %v4664_v36  ;;  %v4662_v2 = vmul.f32 0.2, %v4150_v63  ;;  %vm4283_vm14 = vcmp.ge.f32.partialorder %v4027_v53, 0.0  ;;  %v10581_v38 = vpop.f32.mrf.mxu0 }
 0x224   :  { %v6977_v34 = vpack.c.bf16 %v4920_v49, %v4920_v49  ;;  %v4790_v13 = vsel %vm4278_vm12, %v4022_v41, %v4534_v22  ;;  %v4539_v14 = vmul.f32 0.2, %v4027_v53  ;;  %vm4411_vm15 = vcmp.ge.f32.partialorder %v4155_v18, 0.0  ;;  %v10583_v22 = vpop.f32.mrf.mxu1 }
 0x225   :  { %6073 = vst.msk [vmem:[%s11239_s4 + $0x15c] sm:$0xf] %vm5985_vm4, %v6849_v50  ;;  %v6847_v20 = vpack.c.bf16 %v4790_v13, %v4790_v13  ;;  %v4918_v47 = vsel %vm4406_vm13, %v4150_v63, %v4662_v2  ;;  %v4667_v25 = vmul.f32 0.2, %v4155_v18  ;;  %v3890_v23 = vmul.f32 %v10446_v46, %v3627_v48 }
 0x226   :  { %6201 = vst.msk [vmem:[%s11239_s4 + $0x35c] sm:$0xf] %vm5985_vm4, %v6977_v34  ;;  %v6975_v17 = vpack.c.bf16 %v4918_v47, %v4918_v47  ;;  %v4795_v10 = vsel %vm4283_vm14, %v4027_v53, %v4539_v14  ;;  %v3765_v56 = vmul.f32 %v10446_v46, %v3502_v0  ;;  %vm4281_vm0 = vcmp.ge.f32.partialorder %v4025_v37, 0.0  ;;  %v3631_v34 = vld [vmem:[#allocation2 + $0x6e0] sm:$0xff] }
 0x227   :  { %6071 = vst.msk [vmem:[%s11239_s4 + $0x154] sm:$0xf] %vm5985_vm4, %v6847_v20  ;;  %v6852_v42 = vpack.c.bf16 %v4795_v10, %v4795_v10  ;;  %v4923_v21 = vsel %vm4411_vm15, %v4155_v18, %v4667_v25  ;;  %v4537_v6 = vmul.f32 0.2, %v4025_v37  ;;  %v4153_v28 = vadd.f32 %v10466_v45, %v3890_v23  ;;  %v10595_v10 = vpop.f32.mrf.mxu0  ;;  %v10597_v23 = vpop.f32.mrf.mxu1 }
 0x228   :  { %6199 = vst.msk [vmem:[%s11239_s4 + $0x354] sm:$0xf] %vm5985_vm4, %v6975_v17  ;;  %v6980_v44 = vpack.c.bf16 %v4923_v21, %v4923_v21  ;;  %v4028_v54 = vadd.f32 %v10466_v45, %v3765_v56  ;;  %v3893_v43 = vmul.f32 %v10446_v46, %v3630_v33  ;;  %v3763_v3 = vmul.f32 %v10446_v46, %v3500_v27  ;;  %v3506_v17 = vld [vmem:[#allocation2 + $0x2f8] sm:$0xff]  ;;  %v3504_v21 = vld [vmem:[#allocation2 + $0x2e8] sm:$0xff] }
 0x229   :  { %6076 = vst.msk [vmem:[%s11239_s4 + $0x168] sm:$0xf] %vm5985_vm4, %v6852_v42  ;;  %v4793_v9 = vsel %vm4281_vm0, %v4025_v37, %v4537_v6  ;;  %v3891_v31 = vmul.f32 %v10446_v46, %v3628_v4  ;;  %v3768_v57 = vmul.f32 %v10446_v46, %v3505_v32  ;;  %vm4409_vm1 = vcmp.ge.f32.partialorder %v4153_v28, 0.0  ;;  %v3634_v42 = vld [vmem:[#allocation2 + $0x6f8] sm:$0xff]  ;;  %v3632_v6 = vld [vmem:[#allocation2 + $0x6e8] sm:$0xff] }
 0x22a   :  { %6204 = vst.msk [vmem:[%s11239_s4 + $0x368] sm:$0xf] %vm5985_vm4, %v6980_v44  ;;  %v6850_v1 = vpack.c.bf16 %v4793_v9, %v4793_v9  ;;  %v4665_v24 = vmul.f32 0.2, %v4153_v28  ;;  %vm4284_vm2 = vcmp.ge.f32.partialorder %v4028_v54, 0.0  ;;  %v4156_v61 = vadd.f32 %v10466_v45, %v3893_v43 }
 0x22b   :  { %v4540_v62 = vmul.f32 0.2, %v4028_v54  ;;  %v4026_v51 = vadd.f32 %v10466_v45, %v3763_v3  ;;  %v4154_v41 = vadd.f32 %v10466_v45, %v3891_v31  ;;  %v4031_v36 = vadd.f32 %v10466_v45, %v3768_v57 }
 0x22c   :  { %6074 = vst.msk [vmem:[%s11239_s4 + $0x160] sm:$0xf] %vm5985_vm4, %v6850_v1  ;;  %v4921_v63 = vsel %vm4409_vm1, %v4153_v28, %v4665_v24  ;;  %v3896_v53 = vmul.f32 %v10446_v46, %v3633_v7  ;;  %v3766_v18 = vmul.f32 %v10446_v46, %v3503_v60  ;;  %vm4412_vm5 = vcmp.ge.f32.partialorder %v4156_v61, 0.0  ;;  %v3509_v1 = vld [vmem:[#allocation2 + $0x310] sm:$0xff] }
 0x22d   :  { %v6978_v50 = vpack.c.bf16 %v4921_v63, %v4921_v63  ;;  %v4796_v49 = vsel %vm4284_vm2, %v4028_v54, %v4540_v62  ;;  %v4668_v2 = vmul.f32 0.2, %v4156_v61  ;;  %vm4282_vm6 = vcmp.ge.f32.partialorder %v4026_v51, 0.0  ;;  %v3637_v24 = vld [vmem:[#allocation2 + $0x710] sm:$0xff]  ;;  %v10622_v62 = vpop.f32.mrf.mxu0 }
 0x22e   :  { %v6853_v48 = vpack.c.bf16 %v4796_v49, %v4796_v49  ;;  %v4538_v0 = vmul.f32 0.2, %v4026_v51  ;;  %vm4410_vm7 = vcmp.ge.f32.partialorder %v4154_v41, 0.0  ;;  %v4666_v14 = vmul.f32 0.2, %v4154_v41 }
 0x22f   :  { %6202 = vst.msk [vmem:[%s11239_s4 + $0x360] sm:$0xf] %vm5985_vm4, %v6978_v50  ;;  %v4924_v13 = vsel %vm4412_vm5, %v4156_v61, %v4668_v2  ;;  %vm4287_vm8 = vcmp.ge.f32.partialorder %v4031_v36, 0.0  ;;  %v4543_v20 = vmul.f32 0.2, %v4031_v36  ;;  %v4159_v37 = vadd.f32 %v10466_v45, %v3896_v53  ;;  %v10624_v61 = vpop.f32.mrf.mxu1 }
 0x230   :  { %6077 = vst.msk [vmem:[%s11239_s4 + $0x16c] sm:$0xf] %vm5985_vm4, %v6853_v48  ;;  %v6981_v47 = vpack.c.bf16 %v4924_v13, %v4924_v13  ;;  %v4794_v25 = vsel %vm4282_vm6, %v4026_v51, %v4538_v0  ;;  %v4029_v33 = vadd.f32 %v10466_v45, %v3766_v18  ;;  %v4922_v27 = vsel %vm4410_vm7, %v4154_v41, %v4666_v14  ;;  %v3507_v14 = vld [vmem:[#allocation2 + $0x300] sm:$0xff] }
 0x231   :  { %v6851_v56 = vpack.c.bf16 %v4794_v25, %v4794_v25  ;;  %v4799_v4 = vsel %vm4287_vm8, %v4031_v36, %v4543_v20  ;;  %v3894_v32 = vmul.f32 %v10446_v46, %v3631_v34  ;;  %v6979_v44 = vpack.c.bf16 %v4922_v27, %v4922_v27  ;;  %v10640_v20 = vpop.f32.mrf.mxu0 }
 0x232   :  { %6205 = vst.msk [vmem:[%s11239_s4 + $0x36c] sm:$0xf] %vm5985_vm4, %v6981_v47  ;;  %v6856_v28 = vpack.c.bf16 %v4799_v4, %v4799_v4  ;;  %vm4415_vm9 = vcmp.ge.f32.partialorder %v4159_v37, 0.0  ;;  %v4671_v54 = vmul.f32 0.2, %v4159_v37  ;;  %vm4285_vm10 = vcmp.ge.f32.partialorder %v4029_v33, 0.0  ;;  %v10642_v47 = vpop.f32.mrf.mxu1 }
 0x233   :  { %6075 = vst.msk [vmem:[%s11239_s4 + $0x164] sm:$0xf] %vm5985_vm4, %v6851_v56  ;;  %v4541_v43 = vmul.f32 0.2, %v4029_v33  ;;  %v4157_v9 = vadd.f32 %v10466_v45, %v3894_v32  ;;  %v3769_v3 = vmul.f32 %v10446_v46, %v3506_v17  ;;  %6203 = vst.msk [vmem:[%s11239_s4 + $0x364] sm:$0xf] %vm5985_vm4, %v6979_v44  ;;  %v3897_v57 = vmul.f32 %v10446_v46, %v3634_v42 }
 0x234   :  { %6080 = vst.msk [vmem:[%s11239_s4 + $0x178] sm:$0xf] %vm5985_vm4, %v6856_v28  ;;  %v4927_v31 = vsel %vm4415_vm9, %v4159_v37, %v4671_v54  ;;  %v3767_v7 = vmul.f32 %v10446_v46, %v3504_v21  ;;  %v3895_v60 = vmul.f32 %v10446_v46, %v3632_v6  ;;  %v3772_v48 = vmul.f32 %v10446_v46, %v3509_v1  ;;  %v3635_v6 = vld [vmem:[#allocation2 + $0x700] sm:$0xff]  ;;  %v3510_v44 = vld [vmem:[#allocation2 + $0x318] sm:$0xff] }
 0x235   :  { %v6984_v51 = vpack.c.bf16 %v4927_v31, %v4927_v31  ;;  %v4797_v41 = vsel %vm4285_vm10, %v4029_v33, %v4541_v43  ;;  %vm4413_vm11 = vcmp.ge.f32.partialorder %v4157_v9, 0.0  ;;  %v4669_v63 = vmul.f32 0.2, %v4157_v9  ;;  %v3638_v28 = vld [vmem:[#allocation2 + $0x718] sm:$0xff]  ;;  %v508_v31 = vld [vmem:[#allocation2 + $0x708] sm:$0xff] }
 0x236   :  { %v6854_v36 = vpack.c.bf16 %v4797_v41, %v4797_v41  ;;  %v4032_v53 = vadd.f32 %v10466_v45, %v3769_v3  ;;  %v4160_v18 = vadd.f32 %v10466_v45, %v3897_v57  ;;  %v4030_v50 = vadd.f32 %v10466_v45, %v3767_v7  ;;  %v3508_v3 = vld [vmem:[#allocation2 + $0x308] sm:$0xff]  ;;  %v10651_v57 = vpop.f32.mrf.mxu0  ;;  %v10653_v7 = vpop.f32.mrf.mxu1 }
 0x237   :  { %6208 = vst.msk [vmem:[%s11239_s4 + $0x378] sm:$0xf] %vm5985_vm4, %v6984_v51  ;;  %v4925_v49 = vsel %vm4413_vm11, %v4157_v9, %v4669_v63  ;;  %v4158_v2 = vadd.f32 %v10466_v45, %v3895_v60  ;;  %v3900_v0 = vmul.f32 %v10446_v46, %v3637_v24  ;;  %v4035_v56 = vadd.f32 %v10466_v45, %v3772_v48  ;;  %v513_v48 = vld [vmem:[#allocation2 + $0x730] sm:$0xff] }
 0x238   :  { %6078 = vst.msk [vmem:[%s11239_s4 + $0x170] sm:$0xf] %vm5985_vm4, %v6854_v36  ;;  %v6982_v34 = vpack.c.bf16 %v4925_v49, %v4925_v49  ;;  %vm4288_vm12 = vcmp.ge.f32.partialorder %v4032_v53, 0.0  ;;  %v4544_v13 = vmul.f32 0.2, %v4032_v53  ;;  %vm4416_vm13 = vcmp.ge.f32.partialorder %v4160_v18, 0.0 }
 0x239   :  { %v4672_v25 = vmul.f32 0.2, %v4160_v18  ;;  %vm4286_vm14 = vcmp.ge.f32.partialorder %v4030_v50, 0.0  ;;  %v4542_v37 = vmul.f32 0.2, %v4030_v50  ;;  %vm4414_vm15 = vcmp.ge.f32.partialorder %v4158_v2, 0.0 }
 0x23a   :  { %6206 = vst.msk [vmem:[%s11239_s4 + $0x370] sm:$0xf] %vm5985_vm4, %v6982_v34  ;;  %v4800_v33 = vsel %vm4288_vm12, %v4032_v53, %v4544_v13  ;;  %v4670_v17 = vmul.f32 0.2, %v4158_v2  ;;  %v4163_v27 = vadd.f32 %v10466_v45, %v3900_v0  ;;  %v3770_v21 = vmul.f32 %v10446_v46, %v3507_v14  ;;  %v383_v0 = vld [vmem:[#allocation2 + $0x320] sm:$0xff] }
 0x23b   :  { %v6857_v4 = vpack.c.bf16 %v4800_v33, %v4800_v33  ;;  %v4928_v32 = vsel %vm4416_vm13, %v4160_v18, %v4672_v25  ;;  %v4798_v42 = vsel %vm4286_vm14, %v4030_v50, %v4542_v37  ;;  %vm4291_vm0 = vcmp.ge.f32.partialorder %v4035_v56, 0.0  ;;  %v10678_v25 = vpop.f32.mrf.mxu0  ;;  %v10680_v37 = vpop.f32.mrf.mxu1 }
 0x23c   :  { %v6985_v54 = vpack.c.bf16 %v4928_v32, %v4928_v32  ;;  %v6855_v43 = vpack.c.bf16 %v4798_v42, %v4798_v42  ;;  %v4926_v9 = vsel %vm4414_vm15, %v4158_v2, %v4670_v17  ;;  %v4547_v1 = vmul.f32 0.2, %v4035_v56  ;;  %v385_v2 = vld [vmem:[#allocation2 + $0x330] sm:$0xff] }
 0x23d   :  { %6081 = vst.msk [vmem:[%s11239_s4 + $0x17c] sm:$0xf] %vm5985_vm4, %v6857_v4  ;;  %v6983_v60 = vpack.c.bf16 %v4926_v9, %v4926_v9  ;;  %vm4419_vm1 = vcmp.ge.f32.partialorder %v4163_v27, 0.0  ;;  %v4675_v24 = vmul.f32 0.2, %v4163_v27  ;;  %v4033_v51 = vadd.f32 %v10466_v45, %v3770_v21  ;;  %v512_v9 = vld [vmem:[#allocation2 + $0x728] sm:$0xff] }
 0x23e   :  { %6209 = vst.msk [vmem:[%s11239_s4 + $0x37c] sm:$0xf] %vm5985_vm4, %v6985_v54  ;;  %6079 = vst.msk [vmem:[%s11239_s4 + $0x174] sm:$0xf] %vm5985_vm4, %v6855_v43  ;;  %v3898_v41 = vmul.f32 %v10446_v46, %v3635_v6  ;;  %v3773_v63 = vmul.f32 %v10446_v46, %v3510_v44  ;;  %v3901_v36 = vmul.f32 %v10446_v46, %v3638_v28  ;;  %v386_v6 = vld [vmem:[#allocation2 + $0x338] sm:$0xff]  ;;  %v384_v28 = vld [vmem:[#allocation2 + $0x328] sm:$0xff] }
 0x23f   :  { %6207 = vst.msk [vmem:[%s11239_s4 + $0x374] sm:$0xf] %vm5985_vm4, %v6983_v60  ;;  %v4803_v53 = vsel %vm4291_vm0, %v4035_v56, %v4547_v1  ;;  %v4931_v18 = vsel %vm4419_vm1, %v4163_v27, %v4675_v24  ;;  %v3771_v50 = vmul.f32 %v10446_v46, %v3508_v3  ;;  %v3120_v49 = vadd.f32 %v10346_v12, %v508_v31  ;;  %v511_v12 = vld [vmem:[#allocation2 + $0x720] sm:$0xff]  ;;  %v514_v44 = vld [vmem:[#allocation2 + $0x738] sm:$0xff]  ;;  %v389_v3 = vld [vmem:[#allocation2 + $0x350] sm:$0xff] }
 0x240   :  { %v6860_v34 = vpack.c.bf16 %v4803_v53, %v4803_v53  ;;  %v6988_v13 = vpack.c.bf16 %v4931_v18, %v4931_v18  ;;  %vm4289_vm2 = vcmp.ge.f32.partialorder %v4033_v51, 0.0  ;;  %v4545_v14 = vmul.f32 0.2, %v4033_v51 }
 0x241   :  { %v4161_v33 = vadd.f32 %v10466_v45, %v3898_v41  ;;  %v4036_v17 = vadd.f32 %v10466_v45, %v3773_v63  ;;  %v4164_v56 = vadd.f32 %v10466_v45, %v3901_v36  ;;  %v4034_v27 = vadd.f32 %v10466_v45, %v3771_v50  ;;  %3377 = vst.msk [vmem:[#allocation2 + $0x708] sm:$0xff] %vm22_vm3, %v3120_v49  ;;  %v517_v41 = vld [vmem:[#allocation2 + $0x750] sm:$0xff]  ;;  %v387_v63 = vld [vmem:[#allocation2 + $0x340] sm:$0xff] }
 0x242   :  { %6084 = vst.msk [vmem:[%s11239_s4 + $0x188] sm:$0xf] %vm5985_vm4, %v6860_v34  ;;  %6212 = vst.msk [vmem:[%s11239_s4 + $0x388] sm:$0xf] %vm5985_vm4, %v6988_v13  ;;  %v4801_v4 = vsel %vm4289_vm2, %v4033_v51, %v4545_v14  ;;  %v2997_v32 = vadd.f32 %v10380_v29, %v385_v2  ;;  %v3125_v42 = vadd.f32 %v10382_v59, %v513_v48  ;;  %v10701_v29 = vpop.f32.mrf.mxu0  ;;  %v10703_v59 = vpop.f32.mrf.mxu1  ;;  %v515_v36 = vld [vmem:[#allocation2 + $0x740] sm:$0xff]  ;;  %v390_v2 = vld [vmem:[#allocation2 + $0x358] sm:$0xff] }
 0x243   :  { %v2995_v21 = vadd.f32 %v10415_v35, %v383_v0  ;;  %v6858_v54 = vpack.c.bf16 %v4801_v4, %v4801_v4  ;;  %vm4417_vm5 = vcmp.ge.f32.partialorder %v4161_v33, 0.0  ;;  %v4673_v43 = vmul.f32 0.2, %v4161_v33  ;;  %v518_v48 = vld [vmem:[#allocation2 + $0x758] sm:$0xff]  ;;  %v388_v0 = vld [vmem:[#allocation2 + $0x348] sm:$0xff] }
 0x244   :  { %vm4292_vm6 = vcmp.ge.f32.partialorder %v4036_v17, 0.0  ;;  %v4548_v31 = vmul.f32 0.2, %v4036_v17  ;;  %vm4420_vm7 = vcmp.ge.f32.partialorder %v4164_v56, 0.0  ;;  %v4676_v60 = vmul.f32 0.2, %v4164_v56 }
 0x245   :  { %vm4290_vm8 = vcmp.ge.f32.partialorder %v4034_v27, 0.0  ;;  %3254 = vst.msk [vmem:[#allocation2 + $0x330] sm:$0xff] %vm22_vm3, %v2997_v32  ;;  %3382 = vst.msk [vmem:[#allocation2 + $0x730] sm:$0xff] %vm22_vm3, %v3125_v42  ;;  %v4929_v35 = vsel %vm4417_vm5, %v4161_v33, %v4673_v43  ;;  %v4546_v1 = vmul.f32 0.2, %v4034_v27  ;;  %v3123_v24 = vadd.f32 %v10417_v16, %v511_v12  ;;  %v393_v33 = vld [vmem:[#allocation2 + $0x370] sm:$0xff]  ;;  %v10726_v42 = vpop.f32.mrf.mxu0 }
 0x246   :  { %3252 = vst.msk [vmem:[#allocation2 + $0x320] sm:$0xff] %vm22_vm3, %v2995_v21  ;;  %v2998_v51 = vadd.f32 %v10454_v15, %v386_v6  ;;  %v6986_v53 = vpack.c.bf16 %v4929_v35, %v4929_v35  ;;  %v4804_v18 = vsel %vm4292_vm6, %v4036_v17, %v4548_v31  ;;  %v4932_v50 = vsel %vm4420_vm7, %v4164_v56, %v4676_v60  ;;  %v516_v15 = vld [vmem:[#allocation2 + $0x748] sm:$0xff]  ;;  %v521_v17 = vld [vmem:[#allocation2 + $0x770] sm:$0xff]  ;;  %v391_v32 = vld [vmem:[#allocation2 + $0x360] sm:$0xff]  ;;  %v10728_v21 = vpop.f32.mrf.mxu1 }
 0x247   :  { %6082 = vst.msk [vmem:[%s11239_s4 + $0x180] sm:$0xf] %vm5985_vm4, %v6858_v54  ;;  %v3126_v49 = vadd.f32 %v10456_v58, %v514_v44  ;;  %v6861_v34 = vpack.c.bf16 %v4804_v18, %v4804_v18  ;;  %v6989_v13 = vpack.c.bf16 %v4932_v50, %v4932_v50  ;;  %v4802_v14 = vsel %vm4290_vm8, %v4034_v27, %v4546_v1  ;;  %v394_v44 = vld [vmem:[#allocation2 + $0x378] sm:$0xff]  ;;  %v392_v43 = vld [vmem:[#allocation2 + $0x368] sm:$0xff] }
 0x248   :  { %3380 = vst.msk [vmem:[#allocation2 + $0x720] sm:$0xff] %vm22_vm3, %v3123_v24  ;;  %3255 = vst.msk [vmem:[#allocation2 + $0x338] sm:$0xff] %vm22_vm3, %v2998_v51  ;;  %v2996_v16 = vadd.f32 %v10473_v11, %v384_v28  ;;  %v6859_v58 = vpack.c.bf16 %v4802_v14, %v4802_v14  ;;  %v3636_v56 = vld [vmem:[#allocation2 + $0x708] sm:$0xff]  ;;  %v3124_v27 = vadd.f32 %v10475_v52, %v512_v9  ;;  %v519_v11 = vld [vmem:[#allocation2 + $0x760] sm:$0xff] }
 0x249   :  { %6210 = vst.msk [vmem:[%s11239_s4 + $0x380] sm:$0xf] %vm5985_vm4, %v6986_v53  ;;  %v3001_v12 = vadd.f32 %v10487_v55, %v389_v3  ;;  %v3129_v4 = vadd.f32 %v10489_v40, %v517_v41  ;;  %6085 = vst.msk [vmem:[%s11239_s4 + $0x18c] sm:$0xf] %vm5985_vm4, %v6861_v34  ;;  %v3899_v52 = vmul.f32 %v10446_v46, %v3636_v56  ;;  %v522_v54 = vld [vmem:[#allocation2 + $0x778] sm:$0xff]  ;;  %v520_v9 = vld [vmem:[#allocation2 + $0x768] sm:$0xff] }
 0x24a   :  { %3383 = vst.msk [vmem:[#allocation2 + $0x738] sm:$0xff] %vm22_vm3, %v3126_v49  ;;  %3253 = vst.msk [vmem:[#allocation2 + $0x328] sm:$0xff] %vm22_vm3, %v2996_v16  ;;  %v2999_v55 = vadd.f32 %v10522_v39, %v387_v63  ;;  %v3127_v40 = vadd.f32 %v10524_v19, %v515_v36  ;;  %v3002_v6 = vadd.f32 %v10528_v26, %v390_v2  ;;  %v397_v51 = vld [vmem:[#allocation2 + $0x390] sm:$0xff] }
 0x24b   :  { %6213 = vst.msk [vmem:[%s11239_s4 + $0x38c] sm:$0xf] %vm5985_vm4, %v6989_v13  ;;  %6083 = vst.msk [vmem:[%s11239_s4 + $0x184] sm:$0xf] %vm5985_vm4, %v6859_v58  ;;  %v3130_v28 = vadd.f32 %v10530_v5, %v518_v48  ;;  %v3000_v39 = vadd.f32 %v10556_v30, %v388_v0  ;;  %v3128_v19 = vadd.f32 %v10558_v8, %v516_v15 }
 0x24c   :  { %3381 = vst.msk [vmem:[#allocation2 + $0x728] sm:$0xff] %vm22_vm3, %v3124_v27  ;;  %3258 = vst.msk [vmem:[#allocation2 + $0x350] sm:$0xff] %vm22_vm3, %v3001_v12  ;;  %v3005_v26 = vadd.f32 %v10581_v38, %v393_v33  ;;  %v4162_v3 = vadd.f32 %v10466_v45, %v3899_v52  ;;  %v3513_v31 = vld [vmem:[#allocation2 + $0x330] sm:$0xff]  ;;  %v3133_v5 = vadd.f32 %v10583_v22, %v521_v17 }
 0x24d   :  { %3386 = vst.msk [vmem:[#allocation2 + $0x750] sm:$0xff] %vm22_vm3, %v3129_v4  ;;  %v3641_v60 = vld [vmem:[#allocation2 + $0x730] sm:$0xff]  ;;  %v3511_v35 = vld [vmem:[#allocation2 + $0x320] sm:$0xff]  ;;  %3256 = vst.msk [vmem:[#allocation2 + $0x340] sm:$0xff] %vm22_vm3, %v2999_v55  ;;  %v3003_v30 = vadd.f32 %v10595_v10, %v391_v32  ;;  %v3131_v8 = vadd.f32 %v10597_v23, %v519_v11  ;;  %v3776_v38 = vmul.f32 %v10446_v46, %v3513_v31  ;;  %v10769_v10 = vpop.f32.mrf.mxu0  ;;  %v10771_v23 = vpop.f32.mrf.mxu1 }
 0x24e   :  { %3384 = vst.msk [vmem:[#allocation2 + $0x740] sm:$0xff] %vm22_vm3, %v3127_v40  ;;  %3259 = vst.msk [vmem:[#allocation2 + $0x358] sm:$0xff] %vm22_vm3, %v3002_v6  ;;  %v3904_v1 = vmul.f32 %v10446_v46, %v3641_v60  ;;  %v3774_v24 = vmul.f32 %v10446_v46, %v3511_v35  ;;  %v3006_v22 = vadd.f32 %v10622_v62, %v394_v44  ;;  %vm4418_vm9 = vcmp.ge.f32.partialorder %v4162_v3, 0.0 }
 0x24f   :  { %3387 = vst.msk [vmem:[#allocation2 + $0x758] sm:$0xff] %vm22_vm3, %v3130_v28  ;;  %3257 = vst.msk [vmem:[#allocation2 + $0x348] sm:$0xff] %vm22_vm3, %v3000_v39  ;;  %v4674_v41 = vmul.f32 0.2, %v4162_v3  ;;  %v3134_v63 = vadd.f32 %v10624_v61, %v522_v54  ;;  %v3004_v36 = vadd.f32 %v10640_v20, %v392_v43  ;;  %v4039_v53 = vadd.f32 %v10466_v45, %v3776_v38  ;;  %v3639_v50 = vld [vmem:[#allocation2 + $0x720] sm:$0xff]  ;;  %v3514_v49 = vld [vmem:[#allocation2 + $0x338] sm:$0xff]  ;;  %v10791_v15 = vpop.f32.mrf.mxu1 }
 0x250   :  { %3385 = vst.msk [vmem:[#allocation2 + $0x748] sm:$0xff] %vm22_vm3, %v3128_v19  ;;  %3262 = vst.msk [vmem:[#allocation2 + $0x370] sm:$0xff] %vm22_vm3, %v3005_v26  ;;  %v4167_v62 = vadd.f32 %v10466_v45, %v3904_v1  ;;  %v4037_v18 = vadd.f32 %v10466_v45, %v3774_v24  ;;  %v3132_v2 = vadd.f32 %v10642_v47, %v520_v9  ;;  %v10789_v47 = vpop.f32.mrf.mxu0 }
 0x251   :  { %3390 = vst.msk [vmem:[#allocation2 + $0x770] sm:$0xff] %vm22_vm3, %v3133_v5  ;;  %3260 = vst.msk [vmem:[#allocation2 + $0x360] sm:$0xff] %vm22_vm3, %v3003_v30  ;;  %v4930_v48 = vsel %vm4418_vm9, %v4162_v3, %v4674_v41  ;;  %v3902_v0 = vmul.f32 %v10446_v46, %v3639_v50  ;;  %v3777_v34 = vmul.f32 %v10446_v46, %v3514_v49  ;;  %v3642_v61 = vld [vmem:[#allocation2 + $0x738] sm:$0xff]  ;;  %vm4295_vm10 = vcmp.ge.f32.partialorder %v4039_v53, 0.0  ;;  %v3512_v16 = vld [vmem:[#allocation2 + $0x328] sm:$0xff]  ;;  %v10805_v26 = vpop.f32.mrf.mxu1 }
 0x252   :  { %3388 = vst.msk [vmem:[#allocation2 + $0x760] sm:$0xff] %vm22_vm3, %v3131_v8  ;;  %3263 = vst.msk [vmem:[#allocation2 + $0x378] sm:$0xff] %vm22_vm3, %v3006_v22  ;;  %v3009_v20 = vadd.f32 %v10651_v57, %v397_v51  ;;  %v6987_v13 = vpack.c.bf16 %v4930_v48, %v4930_v48  ;;  %v4551_v14 = vmul.f32 0.2, %v4039_v53  ;;  %vm4423_vm11 = vcmp.ge.f32.partialorder %v4167_v62, 0.0  ;;  %v10803_v19 = vpop.f32.mrf.mxu0 }
 0x253   :  { %3391 = vst.msk [vmem:[#allocation2 + $0x778] sm:$0xff] %vm22_vm3, %v3134_v63  ;;  %3261 = vst.msk [vmem:[#allocation2 + $0x368] sm:$0xff] %vm22_vm3, %v3004_v36  ;;  %v4679_v33 = vmul.f32 0.2, %v4167_v62  ;;  %vm4293_vm12 = vcmp.ge.f32.partialorder %v4037_v18, 0.0  ;;  %v4165_v58 = vadd.f32 %v10466_v45, %v3902_v0  ;;  %v4040_v56 = vadd.f32 %v10466_v45, %v3777_v34  ;;  %v3640_v4 = vld [vmem:[#allocation2 + $0x728] sm:$0xff]  ;;  %v10829_v41 = vpop.f32.mrf.mxu1 }
 0x254   :  { %3389 = vst.msk [vmem:[#allocation2 + $0x768] sm:$0xff] %vm22_vm3, %v3132_v2  ;;  %v4549_v17 = vmul.f32 0.2, %v4037_v18  ;;  %3266 = vst.msk [vmem:[#allocation2 + $0x390] sm:$0xff] %vm22_vm3, %v3009_v20  ;;  %v4807_v57 = vsel %vm4295_vm10, %v4039_v53, %v4551_v14  ;;  %v3905_v27 = vmul.f32 %v10446_v46, %v3642_v61  ;;  %v3775_v12 = vmul.f32 %v10446_v46, %v3512_v16  ;;  %v3517_v55 = vld [vmem:[#allocation2 + $0x350] sm:$0xff]  ;;  %v3515_v6 = vld [vmem:[#allocation2 + $0x340] sm:$0xff]  ;;  %v10827_v51 = vpop.f32.mrf.mxu0 }
 0x255   :  { %6211 = vst.msk [vmem:[%s11239_s4 + $0x384] sm:$0xf] %vm5985_vm4, %v6987_v13  ;;  %v6864_v32 = vpack.c.bf16 %v4807_v57, %v4807_v57  ;;  %v4935_v11 = vsel %vm4423_vm11, %v4167_v62, %v4679_v33  ;;  %vm4421_vm13 = vcmp.ge.f32.partialorder %v4165_v58, 0.0  ;;  %v3645_v40 = vld [vmem:[#allocation2 + $0x750] sm:$0xff]  ;;  %v4677_v39 = vmul.f32 0.2, %v4165_v58  ;;  %v10848_v33 = vpop.f32.mrf.mxu1 }
 0x256   :  { %v4805_v52 = vsel %vm4293_vm12, %v4037_v18, %v4549_v17  ;;  %v6992_v44 = vpack.c.bf16 %v4935_v11, %v4935_v11  ;;  %vm4296_vm14 = vcmp.ge.f32.partialorder %v4040_v56, 0.0  ;;  %v4552_v54 = vmul.f32 0.2, %v4040_v56  ;;  %v3643_v2 = vld [vmem:[#allocation2 + $0x740] sm:$0xff]  ;;  %v3518_v48 = vld [vmem:[#allocation2 + $0x358] sm:$0xff]  ;;  %v10846_v16 = vpop.f32.mrf.mxu0 }
 0x257   :  { %v6862_v28 = vpack.c.bf16 %v4805_v52, %v4805_v52  ;;  %6088 = vst.msk [vmem:[%s11239_s4 + $0x198] sm:$0xf] %vm5985_vm4, %v6864_v32  ;;  %v4168_v43 = vadd.f32 %v10466_v45, %v3905_v27  ;;  %v4038_v9 = vadd.f32 %v10466_v45, %v3775_v12  ;;  %v3903_v3 = vmul.f32 %v10446_v46, %v3640_v4  ;;  %v3646_v61 = vld [vmem:[#allocation2 + $0x758] sm:$0xff]  ;;  %v3516_v27 = vld [vmem:[#allocation2 + $0x348] sm:$0xff]  ;;  %v3521_v4 = vld [vmem:[#allocation2 + $0x370] sm:$0xff] }
 0x258   :  { %6216 = vst.msk [vmem:[%s11239_s4 + $0x398] sm:$0xf] %vm5985_vm4, %v6992_v44  ;;  %v4933_v31 = vsel %vm4421_vm13, %v4165_v58, %v4677_v39  ;;  %v3780_v60 = vmul.f32 %v10446_v46, %v3517_v55  ;;  %v3908_v35 = vmul.f32 %v10446_v46, %v3645_v40  ;;  %v3778_v5 = vmul.f32 %v10446_v46, %v3515_v6  ;;  %v3644_v12 = vld [vmem:[#allocation2 + $0x748] sm:$0xff] }
 0x259   :  { %6086 = vst.msk [vmem:[%s11239_s4 + $0x190] sm:$0xf] %vm5985_vm4, %v6862_v28  ;;  %v6990_v30 = vpack.c.bf16 %v4933_v31, %v4933_v31  ;;  %v4808_v8 = vsel %vm4296_vm14, %v4040_v56, %v4552_v54  ;;  %vm4424_vm15 = vcmp.ge.f32.partialorder %v4168_v43, 0.0  ;;  %v4680_v38 = vmul.f32 0.2, %v4168_v43  ;;  %v10872_v31 = vpop.f32.mrf.mxu0 }
 0x25a   :  { %v6865_v1 = vpack.c.bf16 %v4808_v8, %v4808_v8  ;;  %vm4294_vm0 = vcmp.ge.f32.partialorder %v4038_v9, 0.0  ;;  %v4550_v24 = vmul.f32 0.2, %v4038_v9  ;;  %v4166_v22 = vadd.f32 %v10466_v45, %v3903_v3  ;;  %v3649_v3 = vld [vmem:[#allocation2 + $0x770] sm:$0xff] }
 0x25b   :  { %6214 = vst.msk [vmem:[%s11239_s4 + $0x390] sm:$0xf] %vm5985_vm4, %v6990_v30  ;;  %v4936_v63 = vsel %vm4424_vm15, %v4168_v43, %v4680_v38  ;;  %v4043_v36 = vadd.f32 %v10466_v45, %v3780_v60  ;;  %v4171_v53 = vadd.f32 %v10466_v45, %v3908_v35  ;;  %v4041_v62 = vadd.f32 %v10466_v45, %v3778_v5  ;;  %v10874_v60 = vpop.f32.mrf.mxu1 }
 0x25c   :  { %6089 = vst.msk [vmem:[%s11239_s4 + $0x19c] sm:$0xf] %vm5985_vm4, %v6865_v1  ;;  %v6993_v18 = vpack.c.bf16 %v4936_v63, %v4936_v63  ;;  %v4806_v50 = vsel %vm4294_vm0, %v4038_v9, %v4550_v24  ;;  %vm4422_vm1 = vcmp.ge.f32.partialorder %v4166_v22, 0.0  ;;  %v4678_v49 = vmul.f32 0.2, %v4166_v22 }
 0x25d   :  { %v6863_v0 = vpack.c.bf16 %v4806_v50, %v4806_v50  ;;  %vm4299_vm2 = vcmp.ge.f32.partialorder %v4043_v36, 0.0  ;;  %v4555_v34 = vmul.f32 0.2, %v4043_v36  ;;  %vm4427_vm5 = vcmp.ge.f32.partialorder %v4171_v53, 0.0  ;;  %v3647_v50 = vld [vmem:[#allocation2 + $0x760] sm:$0xff] }
 0x25e   :  { %6217 = vst.msk [vmem:[%s11239_s4 + $0x39c] sm:$0xf] %vm5985_vm4, %v6993_v18  ;;  %v4934_v20 = vsel %vm4422_vm1, %v4166_v22, %v4678_v49  ;;  %v4683_v13 = vmul.f32 0.2, %v4171_v53  ;;  %vm4297_vm6 = vcmp.ge.f32.partialorder %v4041_v62, 0.0  ;;  %v3906_v57 = vmul.f32 %v10446_v46, %v3643_v2  ;;  %v3522_v49 = vld [vmem:[#allocation2 + $0x378] sm:$0xff]  ;;  %v10888_v2 = vpop.f32.mrf.mxu0 }
 0x25f   :  { %v4553_v14 = vmul.f32 0.2, %v4041_v62  ;;  %6087 = vst.msk [vmem:[%s11239_s4 + $0x194] sm:$0xf] %vm5985_vm4, %v6863_v0  ;;  %v6991_v17 = vpack.c.bf16 %v4934_v20, %v4934_v20  ;;  %v4811_v58 = vsel %vm4299_vm2, %v4043_v36, %v4555_v34  ;;  %v3781_v56 = vmul.f32 %v10446_v46, %v3518_v48  ;;  %v3519_v36 = vld [vmem:[#allocation2 + $0x360] sm:$0xff]  ;;  %v10890_v48 = vpop.f32.mrf.mxu1 }
 0x260   :  { %v6868_v32 = vpack.c.bf16 %v4811_v58, %v4811_v58  ;;  %v4939_v11 = vsel %vm4427_vm5, %v4171_v53, %v4683_v13  ;;  %v3909_v55 = vmul.f32 %v10446_v46, %v3646_v61  ;;  %v4169_v44 = vadd.f32 %v10466_v45, %v3906_v57  ;;  %v10904_v13 = vld [vmem:[%s11237_s2] ss:$0 sm:$0xff] }
 0x261   :  { %v4809_v52 = vsel %vm4297_vm6, %v4041_v62, %v4553_v14  ;;  %6215 = vst.msk [vmem:[%s11239_s4 + $0x394] sm:$0xf] %vm5985_vm4, %v6991_v17  ;;  %v6996_v40 = vpack.c.bf16 %v4939_v11, %v4939_v11  ;;  %v4044_v28 = vadd.f32 %v10466_v45, %v3781_v56  ;;  %v3779_v54 = vmul.f32 %v10446_v46, %v3516_v27  ;;  %v3520_v27 = vld [vmem:[#allocation2 + $0x368] sm:$0xff] }
 0x262   :  { %v6866_v6 = vpack.c.bf16 %v4809_v52, %v4809_v52  ;;  %6092 = vst.msk [vmem:[%s11239_s4 + $0x1a8] sm:$0xf] %vm5985_vm4, %v6868_v32  ;;  %v4172_v39 = vadd.f32 %v10466_v45, %v3909_v55  ;;  %v3907_v43 = vmul.f32 %v10446_v46, %v3644_v12  ;;  %v3784_v9 = vmul.f32 %v10446_v46, %v3521_v4  ;;  %v3648_v12 = vld [vmem:[#allocation2 + $0x768] sm:$0xff]  ;;  %v10914_v52 = vpop.f32.mrf.mxu0  ;;  %v10916_v55 = vpop.f32.mrf.mxu1 }
 0x263   :  { %6220 = vst.msk [vmem:[%s11239_s4 + $0x3a8] sm:$0xf] %vm5985_vm4, %v6996_v40  ;;  %vm4425_vm7 = vcmp.ge.f32.partialorder %v4169_v44, 0.0  ;;  %v4681_v35 = vmul.f32 0.2, %v4169_v44  ;;  %vm4300_vm8 = vcmp.ge.f32.partialorder %v4044_v28, 0.0  ;;  %v4042_v8 = vadd.f32 %v10466_v45, %v3779_v54 }
 0x264   :  { %6090 = vst.msk [vmem:[%s11239_s4 + $0x1a0] sm:$0xf] %vm5985_vm4, %v6866_v6  ;;  %v4556_v5 = vmul.f32 0.2, %v4044_v28  ;;  %vm4428_vm9 = vcmp.ge.f32.partialorder %v4172_v39, 0.0  ;;  %v4170_v38 = vadd.f32 %v10466_v45, %v3907_v43  ;;  %v4047_v22 = vadd.f32 %v10466_v45, %v3784_v9 }
 0x265   :  { %v4684_v30 = vmul.f32 0.2, %v4172_v39  ;;  %v4937_v1 = vsel %vm4425_vm7, %v4169_v44, %v4681_v35  ;;  %v3912_v63 = vmul.f32 %v10446_v46, %v3649_v3  ;;  %vm4298_vm10 = vcmp.ge.f32.partialorder %v4042_v8, 0.0  ;;  %v10921_v44 = vld [vmem:[%s11238_s3] ss:$0 sm:$0xff] }
 0x266   :  { %v4812_v24 = vsel %vm4300_vm8, %v4044_v28, %v4556_v5  ;;  %v6994_v53 = vpack.c.bf16 %v4937_v1, %v4937_v1  ;;  %v4554_v34 = vmul.f32 0.2, %v4042_v8  ;;  %vm4426_vm11 = vcmp.ge.f32.partialorder %v4170_v38, 0.0 }
 0x267   :  { %v6869_v62 = vpack.c.bf16 %v4812_v24, %v4812_v24  ;;  %v4940_v18 = vsel %vm4428_vm9, %v4172_v39, %v4684_v30  ;;  %v4682_v61 = vmul.f32 0.2, %v4170_v38  ;;  %vm4303_vm12 = vcmp.ge.f32.partialorder %v4047_v22, 0.0  ;;  %v3525_v30 = vld [vmem:[#allocation2 + $0x390] sm:$0xff]  ;;  %v10941_v24 = vpop.f32.mrf.mxu0 }
 0x268   :  { %v6997_v0 = vpack.c.bf16 %v4940_v18, %v4940_v18  ;;  %6218 = vst.msk [vmem:[%s11239_s4 + $0x3a0] sm:$0xf] %vm5985_vm4, %v6994_v53  ;;  %v4559_v46 = vmul.f32 0.2, %v4047_v22  ;;  %v4175_v20 = vadd.f32 %v10466_v45, %v3912_v63  ;;  %v3782_v14 = vmul.f32 %v10904_v13, %v3519_v36  ;;  %v3650_v45 = vld [vmem:[#allocation2 + $0x778] sm:$0xff] }
 0x269   :  { %6093 = vst.msk [vmem:[%s11239_s4 + $0x1ac] sm:$0xf] %vm5985_vm4, %v6869_v62  ;;  %v4810_v17 = vsel %vm4298_vm10, %v4042_v8, %v4554_v34  ;;  %v4938_v58 = vsel %vm4426_vm11, %v4170_v38, %v4682_v61  ;;  %v3910_v57 = vmul.f32 %v10904_v13, %v3647_v50  ;;  %v3785_v56 = vmul.f32 %v10904_v13, %v3522_v49  ;;  %v525_v34 = vld [vmem:[#allocation2 + $0x790] sm:$0xff]  ;;  %v395_v61 = vld [vmem:[#allocation2 + $0x380] sm:$0xff] }
 0x26a   :  { %6221 = vst.msk [vmem:[%s11239_s4 + $0x3ac] sm:$0xf] %vm5985_vm4, %v6997_v0  ;;  %v6867_v4 = vpack.c.bf16 %v4810_v17, %v4810_v17  ;;  %v6995_v32 = vpack.c.bf16 %v4938_v58, %v4938_v58  ;;  %v4815_v11 = vsel %vm4303_vm12, %v4047_v22, %v4559_v46  ;;  %vm4431_vm13 = vcmp.ge.f32.partialorder %v4175_v20, 0.0  ;;  %v10943_v22 = vpop.f32.mrf.mxu1  ;;  %v523_v46 = vld [vmem:[#allocation2 + $0x780] sm:$0xff]  ;;  %v398_v58 = vld [vmem:[#allocation2 + $0x398] sm:$0xff] }
 0x26b   :  { %v6872_v40 = vpack.c.bf16 %v4815_v11, %v4815_v11  ;;  %v4687_v6 = vmul.f32 0.2, %v4175_v20  ;;  %v4045_v28 = vadd.f32 %v10921_v44, %v3782_v14  ;;  %v4173_v39 = vadd.f32 %v10921_v44, %v3910_v57  ;;  %v526_v57 = vld [vmem:[#allocation2 + $0x798] sm:$0xff] }
 0x26c   :  { %6091 = vst.msk [vmem:[%s11239_s4 + $0x1a4] sm:$0xf] %vm5985_vm4, %v6867_v4  ;;  %6219 = vst.msk [vmem:[%s11239_s4 + $0x3a4] sm:$0xf] %vm5985_vm4, %v6995_v32  ;;  %v4048_v54 = vadd.f32 %v10921_v44, %v3785_v56  ;;  %v3913_v43 = vmul.f32 %v10904_v13, %v3650_v45  ;;  %v3783_v9 = vmul.f32 %v10904_v13, %v3520_v27  ;;  %v396_v56 = vld [vmem:[#allocation2 + $0x388] sm:$0xff]  ;;  %v401_v4 = vld [vmem:[#allocation2 + $0x3b0] sm:$0xff]  ;;  %v10957_v32 = vpop.f32.mrf.mxu0  ;;  %v10959_v11 = vpop.f32.mrf.mxu1 }
 0x26d   :  { %v3911_v3 = vmul.f32 %v10904_v13, %v3648_v12  ;;  %6096 = vst.msk [vmem:[%s11239_s4 + $0x1b8] sm:$0xf] %vm5985_vm4, %v6872_v40  ;;  %v4943_v35 = vsel %vm4431_vm13, %v4175_v20, %v4687_v6  ;;  %vm4301_vm14 = vcmp.ge.f32.partialorder %v4045_v28, 0.0  ;;  %v4557_v5 = vmul.f32 0.2, %v4045_v28  ;;  %v524_v45 = vld [vmem:[#allocation2 + $0x788] sm:$0xff] }
 0x26e   :  { %vm4429_vm15 = vcmp.ge.f32.partialorder %v4173_v39, 0.0  ;;  %v7000_v8 = vpack.c.bf16 %v4943_v35, %v4943_v35  ;;  %v4685_v38 = vmul.f32 0.2, %v4173_v39  ;;  %vm4304_vm0 = vcmp.ge.f32.partialorder %v4048_v54, 0.0 }
 0x26f   :  { %v4560_v1 = vmul.f32 0.2, %v4048_v54  ;;  %v4813_v63 = vsel %vm4301_vm14, %v4045_v28, %v4557_v5  ;;  %v4176_v36 = vadd.f32 %v10921_v44, %v3913_v43  ;;  %v4046_v53 = vadd.f32 %v10921_v44, %v3783_v9  ;;  %v399_v43 = vld [vmem:[#allocation2 + $0x3a0] sm:$0xff] }
 0x270   :  { %v4174_v62 = vadd.f32 %v10921_v44, %v3911_v3  ;;  %6224 = vst.msk [vmem:[%s11239_s4 + $0x3b8] sm:$0xf] %vm5985_vm4, %v7000_v8  ;;  %v6870_v18 = vpack.c.bf16 %v4813_v63, %v4813_v63  ;;  %v4941_v50 = vsel %vm4429_vm15, %v4173_v39, %v4685_v38  ;;  %v3788_v0 = vmul.f32 %v10904_v13, %v3525_v30  ;;  %v527_v9 = vld [vmem:[#allocation2 + $0x7a0] sm:$0xff]  ;;  %v402_v8 = vld [vmem:[#allocation2 + $0x3b8] sm:$0xff] }
 0x271   :  { %v4816_v49 = vsel %vm4304_vm0, %v4048_v54, %v4560_v1  ;;  %v6998_v20 = vpack.c.bf16 %v4941_v50, %v4941_v50  ;;  %vm4432_vm1 = vcmp.ge.f32.partialorder %v4176_v36, 0.0  ;;  %v4688_v17 = vmul.f32 0.2, %v4176_v36  ;;  %v529_v54 = vld [vmem:[#allocation2 + $0x7b0] sm:$0xff]  ;;  %v530_v38 = vld [vmem:[#allocation2 + $0x7b8] sm:$0xff]  ;;  %v400_v1 = vld [vmem:[#allocation2 + $0x3a8] sm:$0xff] }
 0x272   :  { %v6873_v14 = vpack.c.bf16 %v4816_v49, %v4816_v49  ;;  %6094 = vst.msk [vmem:[%s11239_s4 + $0x1b0] sm:$0xf] %vm5985_vm4, %v6870_v18  ;;  %vm4302_vm2 = vcmp.ge.f32.partialorder %v4046_v53, 0.0  ;;  %v4558_v27 = vmul.f32 0.2, %v4046_v53  ;;  %vm4430_vm5 = vcmp.ge.f32.partialorder %v4174_v62, 0.0 }
 0x273   :  { %v4686_v12 = vmul.f32 0.2, %v4174_v62  ;;  %6222 = vst.msk [vmem:[%s11239_s4 + $0x3b0] sm:$0xf] %vm5985_vm4, %v6998_v20  ;;  %v4944_v40 = vsel %vm4432_vm1, %v4176_v36, %v4688_v17  ;;  %v4051_v6 = vadd.f32 %v10921_v44, %v3788_v0  ;;  %v3137_v28 = vadd.f32 %v10653_v7, %v525_v34  ;;  %v528_v7 = vld [vmem:[#allocation2 + $0x7a8] sm:$0xff]  ;;  %v533_v50 = vld [vmem:[#allocation2 + $0x7d0] sm:$0xff]  ;;  %v7407_v20 = vpop.f32.mrf.mxu1 }
 0x274   :  { %6097 = vst.msk [vmem:[%s11239_s4 + $0x1bc] sm:$0xf] %vm5985_vm4, %v6873_v14  ;;  %v3007_v39 = vadd.f32 %v10678_v25, %v395_v61  ;;  %v7001_v3 = vpack.c.bf16 %v4944_v40, %v4944_v40  ;;  %v4814_v35 = vsel %vm4302_vm2, %v4046_v53, %v4558_v27  ;;  %v3135_v30 = vadd.f32 %v10680_v37, %v523_v46  ;;  %v405_v25 = vld [vmem:[#allocation2 + $0x3d0] sm:$0xff]  ;;  %v403_v0 = vld [vmem:[#allocation2 + $0x3c0] sm:$0xff]  ;;  %v406_v61 = vld [vmem:[#allocation2 + $0x3d8] sm:$0xff]  ;;  %v7279_v46 = vpop.f32.mrf.mxu0 }
 0x275   :  { %v4942_v5 = vsel %vm4430_vm5, %v4174_v62, %v4686_v12  ;;  %v6871_v63 = vpack.c.bf16 %v4814_v35, %v4814_v35  ;;  %vm4307_vm6 = vcmp.ge.f32.partialorder %v4051_v6, 0.0  ;;  %v4563_v18 = vmul.f32 0.2, %v4051_v6  ;;  %3394 = vst.msk [vmem:[#allocation2 + $0x790] sm:$0xff] %vm22_vm3, %v3137_v28  ;;  %v531_v34 = vld [vmem:[#allocation2 + $0x7c0] sm:$0xff]  ;;  %v534_v14 = vld [vmem:[#allocation2 + $0x7d8] sm:$0xff] }
 0x276   :  { %v6999_v36 = vpack.c.bf16 %v4942_v5, %v4942_v5  ;;  %3264 = vst.msk [vmem:[#allocation2 + $0x380] sm:$0xff] %vm22_vm3, %v3007_v39  ;;  %3392 = vst.msk [vmem:[#allocation2 + $0x780] sm:$0xff] %vm22_vm3, %v3135_v30  ;;  %v3010_v37 = vadd.f32 %v10701_v29, %v398_v58  ;;  %v3138_v53 = vadd.f32 %v10703_v59, %v526_v57  ;;  %v404_v17 = vld [vmem:[#allocation2 + $0x3c8] sm:$0xff]  ;;  %v407_v27 = vld [vmem:[#allocation2 + $0x3e0] sm:$0xff]  ;;  %v2371_v39 = vpop.f32.mrf.mxu0 }
 0x277   :  { %6225 = vst.msk [vmem:[%s11239_s4 + $0x3bc] sm:$0xf] %vm5985_vm4, %v7001_v3  ;;  %v3008_v62 = vadd.f32 %v10726_v42, %v396_v56  ;;  %v3136_v49 = vadd.f32 %v10728_v21, %v524_v45  ;;  %6095 = vst.msk [vmem:[%s11239_s4 + $0x1b4] sm:$0xf] %vm5985_vm4, %v6871_v63  ;;  %v4819_v29 = vsel %vm4307_vm6, %v4051_v6, %v4563_v18  ;;  %v532_v58 = vld [vmem:[#allocation2 + $0x7c8] sm:$0xff]  ;;  %v409_v45 = vld [vmem:[#allocation2 + $0x3f0] sm:$0xff] }
 0x278   :  { %6223 = vst.msk [vmem:[%s11239_s4 + $0x3b4] sm:$0xf] %vm5985_vm4, %v6999_v36  ;;  %v3013_v59 = vadd.f32 %v10769_v10, %v401_v4  ;;  %v3141_v42 = vadd.f32 %v10771_v23, %v529_v54  ;;  %v3011_v21 = vadd.f32 %v10789_v47, %v399_v43  ;;  %v6876_v57 = vpack.c.bf16 %v4819_v29, %v4819_v29  ;;  %v537_v47 = vld [vmem:[#allocation2 + $0x7f0] sm:$0xff]  ;;  %v410_v6 = vld [vmem:[#allocation2 + $0x3f8] sm:$0xff]  ;;  %v408_v28 = vld [vmem:[#allocation2 + $0x3e8] sm:$0xff]  ;;  %v2883_v43 = vpop.f32.mrf.mxu1 }
 0x279   :  { %3267 = vst.msk [vmem:[#allocation2 + $0x398] sm:$0xff] %vm22_vm3, %v3010_v37  ;;  %3395 = vst.msk [vmem:[#allocation2 + $0x798] sm:$0xff] %vm22_vm3, %v3138_v53  ;;  %v3139_v56 = vadd.f32 %v10791_v15, %v527_v9  ;;  %v3014_v10 = vadd.f32 %v10803_v19, %v402_v8  ;;  %v3142_v23 = vadd.f32 %v10805_v26, %v530_v38  ;;  %v535_v19 = vld [vmem:[#allocation2 + $0x7e0] sm:$0xff]  ;;  %v538_v26 = vld [vmem:[#allocation2 + $0x7f8] sm:$0xff] }
 0x27a   :  { %3265 = vst.msk [vmem:[#allocation2 + $0x388] sm:$0xff] %vm22_vm3, %v3008_v62  ;;  %3393 = vst.msk [vmem:[#allocation2 + $0x788] sm:$0xff] %vm22_vm3, %v3136_v49  ;;  %v3012_v12 = vadd.f32 %v10827_v51, %v400_v1  ;;  %v3140_v4 = vadd.f32 %v10829_v41, %v528_v7  ;;  %v3017_v40 = vadd.f32 %v10846_v16, %v405_v25  ;;  %v536_v54 = vld [vmem:[#allocation2 + $0x7e8] sm:$0xff] }
 0x27b   :  { %3270 = vst.msk [vmem:[#allocation2 + $0x3b0] sm:$0xff] %vm22_vm3, %v3013_v59  ;;  %3398 = vst.msk [vmem:[#allocation2 + $0x7b0] sm:$0xff] %vm22_vm3, %v3141_v42  ;;  %v3145_v15 = vadd.f32 %v10848_v33, %v533_v50  ;;  %v3015_v51 = vadd.f32 %v10872_v31, %v403_v0  ;;  %v3143_v41 = vadd.f32 %v10874_v60, %v531_v34 }
 0x27c   :  { %3268 = vst.msk [vmem:[#allocation2 + $0x3a0] sm:$0xff] %vm22_vm3, %v3011_v21  ;;  %3396 = vst.msk [vmem:[#allocation2 + $0x7a0] sm:$0xff] %vm22_vm3, %v3139_v56  ;;  %v3018_v16 = vadd.f32 %v10888_v2, %v406_v61  ;;  %v3146_v33 = vadd.f32 %v10890_v48, %v534_v14  ;;  %v3016_v31 = vadd.f32 %v10914_v52, %v404_v17  ;;  %v3653_v9 = vld [vmem:[#allocation2 + $0x790] sm:$0xff] }
 0x27d   :  { %6100 = vst.msk [vmem:[%s11239_s4 + $0x1c8] sm:$0xf] %vm5985_vm4, %v6876_v57  ;;  %v3144_v60 = vadd.f32 %v10916_v55, %v532_v58  ;;  %v3021_v2 = vadd.f32 %v10941_v24, %v409_v45  ;;  %v3149_v48 = vadd.f32 %v10943_v22, %v537_v47  ;;  %v3523_v3 = vld [vmem:[#allocation2 + $0x380] sm:$0xff]  ;;  %v3019_v35 = vadd.f32 %v10957_v32, %v407_v27 }
 0x27e   :  { %3271 = vst.msk [vmem:[#allocation2 + $0x3b8] sm:$0xff] %vm22_vm3, %v3014_v10  ;;  %3399 = vst.msk [vmem:[#allocation2 + $0x7b8] sm:$0xff] %vm22_vm3, %v3142_v23  ;;  %v3147_v52 = vadd.f32 %v10959_v11, %v535_v19  ;;  %v3022_v5 = vadd.f32 %v7279_v46, %v410_v6  ;;  %v3150_v55 = vadd.f32 %v7407_v20, %v538_v26  ;;  %v3651_v30 = vld [vmem:[#allocation2 + $0x780] sm:$0xff] }
 0x27f   :  { %3269 = vst.msk [vmem:[#allocation2 + $0x3a8] sm:$0xff] %vm22_vm3, %v3012_v12  ;;  %3397 = vst.msk [vmem:[#allocation2 + $0x7a8] sm:$0xff] %vm22_vm3, %v3140_v4  ;;  %v3916_v24 = vmul.f32 %v10904_v13, %v3653_v9  ;;  %v3786_v22 = vmul.f32 %v10904_v13, %v3523_v3  ;;  %v3020_v8 = vadd.f32 %v2371_v39, %v408_v28 }
 0x280   :  { %3274 = vst.msk [vmem:[#allocation2 + $0x3d0] sm:$0xff] %vm22_vm3, %v3017_v40  ;;  %3402 = vst.msk [vmem:[#allocation2 + $0x7d0] sm:$0xff] %vm22_vm3, %v3145_v15  ;;  %v3148_v38 = vadd.f32 %v2883_v43, %v536_v54  ;;  %v3914_v32 = vmul.f32 %v10904_v13, %v3651_v30  ;;  %v3526_v63 = vld [vmem:[#allocation2 + $0x398] sm:$0xff] }
 0x281   :  { %3272 = vst.msk [vmem:[#allocation2 + $0x3c0] sm:$0xff] %vm22_vm3, %v3015_v51  ;;  %3400 = vst.msk [vmem:[#allocation2 + $0x7c0] sm:$0xff] %vm22_vm3, %v3143_v41  ;;  %v4179_v11 = vadd.f32 %v10921_v44, %v3916_v24  ;;  %v4049_v1 = vadd.f32 %v10921_v44, %v3786_v22  ;;  %v3654_v36 = vld [vmem:[#allocation2 + $0x798] sm:$0xff]  ;;  %v3524_v18 = vld [vmem:[#allocation2 + $0x388] sm:$0xff]  ;;  %v3789_v25 = vmul.f32 %v10904_v13, %v3526_v63 }
 0x282   :  { %3275 = vst.msk [vmem:[#allocation2 + $0x3d8] sm:$0xff] %vm22_vm3, %v3018_v16  ;;  %3403 = vst.msk [vmem:[#allocation2 + $0x7d8] sm:$0xff] %vm22_vm3, %v3146_v33  ;;  %v4177_v7 = vadd.f32 %v10921_v44, %v3914_v32  ;;  %v3917_v50 = vmul.f32 %v10904_v13, %v3654_v36  ;;  %v3787_v37 = vmul.f32 %v10904_v13, %v3524_v18  ;;  %v3652_v53 = vld [vmem:[#allocation2 + $0x788] sm:$0xff]  ;;  %v3529_v42 = vld [vmem:[#allocation2 + $0x3b0] sm:$0xff] }
 0x283   :  { %3273 = vst.msk [vmem:[#allocation2 + $0x3c8] sm:$0xff] %vm22_vm3, %v3016_v31  ;;  %3401 = vst.msk [vmem:[#allocation2 + $0x7c8] sm:$0xff] %vm22_vm3, %v3144_v60  ;;  %vm4435_vm7 = vcmp.ge.f32.partialorder %v4179_v11, 0.0  ;;  %v4691_v62 = vmul.f32 0.2, %v4179_v11  ;;  %vm4305_vm8 = vcmp.ge.f32.partialorder %v4049_v1, 0.0  ;;  %v4052_v34 = vadd.f32 %v10921_v44, %v3789_v25 }
 0x284   :  { %3278 = vst.msk [vmem:[#allocation2 + $0x3f0] sm:$0xff] %vm22_vm3, %v3021_v2  ;;  %3406 = vst.msk [vmem:[#allocation2 + $0x7f0] sm:$0xff] %vm22_vm3, %v3149_v48  ;;  %v4561_v49 = vmul.f32 0.2, %v4049_v1  ;;  %vm4433_vm9 = vcmp.ge.f32.partialorder %v4177_v7, 0.0  ;;  %v4180_v61 = vadd.f32 %v10921_v44, %v3917_v50  ;;  %v4050_v29 = vadd.f32 %v10921_v44, %v3787_v37  ;;  %v3657_v58 = vld [vmem:[#allocation2 + $0x7b0] sm:$0xff] }
 0x285   :  { %3276 = vst.msk [vmem:[#allocation2 + $0x3e0] sm:$0xff] %vm22_vm3, %v3019_v35  ;;  %3404 = vst.msk [vmem:[#allocation2 + $0x7e0] sm:$0xff] %vm22_vm3, %v3147_v52  ;;  %v4689_v0 = vmul.f32 0.2, %v4177_v7  ;;  %v4947_v46 = vsel %vm4435_vm7, %v4179_v11, %v4691_v62  ;;  %v3915_v59 = vmul.f32 %v10904_v13, %v3652_v53  ;;  %v3527_v57 = vld [vmem:[#allocation2 + $0x3a0] sm:$0xff]  ;;  %v3792_v27 = vmul.f32 %v10904_v13, %v3529_v42  ;;  %v3530_v6 = vld [vmem:[#allocation2 + $0x3b8] sm:$0xff] }
 0x286   :  { %3279 = vst.msk [vmem:[#allocation2 + $0x3f8] sm:$0xff] %vm22_vm3, %v3022_v5  ;;  %3407 = vst.msk [vmem:[#allocation2 + $0x7f8] sm:$0xff] %vm22_vm3, %v3150_v55  ;;  %v4817_v20 = vsel %vm4305_vm8, %v4049_v1, %v4561_v49  ;;  %v7004_v21 = vpack.c.bf16 %v4947_v46, %v4947_v46  ;;  %v4564_v10 = vmul.f32 0.2, %v4052_v34  ;;  %vm4436_vm10 = vcmp.ge.f32.partialorder %v4180_v61, 0.0  ;;  %v3655_v19 = vld [vmem:[#allocation2 + $0x7a0] sm:$0xff] }
 0x287   :  { %3277 = vst.msk [vmem:[#allocation2 + $0x3e8] sm:$0xff] %vm22_vm3, %v3020_v8  ;;  %3405 = vst.msk [vmem:[#allocation2 + $0x7e8] sm:$0xff] %vm22_vm3, %v3148_v38  ;;  %v6874_v14 = vpack.c.bf16 %v4817_v20, %v4817_v20  ;;  %v4945_v17 = vsel %vm4433_vm9, %v4177_v7, %v4689_v0  ;;  %vm4308_vm3 = vcmp.ge.f32.partialorder %v4052_v34, 0.0  ;;  %v4692_v23 = vmul.f32 0.2, %v4180_v61  ;;  %v3658_v26 = vld [vmem:[#allocation2 + $0x7b8] sm:$0xff] }
 0x288   :  { %v7002_v56 = vpack.c.bf16 %v4945_v17, %v4945_v17  ;;  %6228 = vst.msk [vmem:[%s11239_s4 + $0x3c8] sm:$0xf] %vm5985_vm4, %v7004_v21  ;;  %vm4306_vm11 = vcmp.ge.f32.partialorder %v4050_v29, 0.0  ;;  %v4562_v45 = vmul.f32 0.2, %v4050_v29  ;;  %v4178_v47 = vadd.f32 %v10921_v44, %v3915_v59  ;;  %v3528_v3 = vld [vmem:[#allocation2 + $0x3a8] sm:$0xff] }
 0x289   :  { %6098 = vst.msk [vmem:[%s11239_s4 + $0x1c0] sm:$0xf] %vm5985_vm4, %v6874_v14  ;;  %v4820_v12 = vsel %vm4308_vm3, %v4052_v34, %v4564_v10  ;;  %v4948_v4 = vsel %vm4436_vm10, %v4180_v61, %v4692_v23  ;;  %v3920_v40 = vmul.f32 %v10904_v13, %v3657_v58  ;;  %v3790_v15 = vmul.f32 %v10904_v13, %v3527_v57  ;;  %v3656_v1 = vld [vmem:[#allocation2 + $0x7a8] sm:$0xff]  ;;  %v3533_v63 = vld [vmem:[#allocation2 + $0x3d0] sm:$0xff]  ;;  %v3531_v34 = vld [vmem:[#allocation2 + $0x3c0] sm:$0xff] }
 0x28a   :  { %6226 = vst.msk [vmem:[%s11239_s4 + $0x3c0] sm:$0xf] %vm5985_vm4, %v7002_v56  ;;  %v6877_v51 = vpack.c.bf16 %v4820_v12, %v4820_v12  ;;  %v7005_v41 = vpack.c.bf16 %v4948_v4, %v4948_v4  ;;  %v4818_v16 = vsel %vm4306_vm11, %v4050_v29, %v4562_v45  ;;  %vm4434_vm12 = vcmp.ge.f32.partialorder %v4178_v47, 0.0  ;;  %v3661_v25 = vld [vmem:[#allocation2 + $0x7d0] sm:$0xff]  ;;  %v3659_v59 = vld [vmem:[#allocation2 + $0x7c0] sm:$0xff]  ;;  %v3534_v42 = vld [vmem:[#allocation2 + $0x3d8] sm:$0xff] }
 0x28b   :  { %v6875_v33 = vpack.c.bf16 %v4818_v16, %v4818_v16  ;;  %v4690_v28 = vmul.f32 0.2, %v4178_v47  ;;  %v4055_v39 = vadd.f32 %v10921_v44, %v3792_v27  ;;  %v4183_v54 = vadd.f32 %v10921_v44, %v3920_v40  ;;  %v3662_v21 = vld [vmem:[#allocation2 + $0x7d8] sm:$0xff] }
 0x28c   :  { %6101 = vst.msk [vmem:[%s11239_s4 + $0x1cc] sm:$0xf] %vm5985_vm4, %v6877_v51  ;;  %6229 = vst.msk [vmem:[%s11239_s4 + $0x3cc] sm:$0xf] %vm5985_vm4, %v7005_v41  ;;  %v4053_v43 = vadd.f32 %v10921_v44, %v3790_v15  ;;  %v3918_v31 = vmul.f32 %v10904_v13, %v3655_v19  ;;  %v3793_v60 = vmul.f32 %v10904_v13, %v3530_v6 }
 0x28d   :  { %v3921_v2 = vmul.f32 %v10904_v13, %v3658_v26  ;;  %6099 = vst.msk [vmem:[%s11239_s4 + $0x1c4] sm:$0xf] %vm5985_vm4, %v6875_v33  ;;  %v4946_v48 = vsel %vm4434_vm12, %v4178_v47, %v4690_v28  ;;  %vm4311_vm13 = vcmp.ge.f32.partialorder %v4055_v39, 0.0  ;;  %v4567_v9 = vmul.f32 0.2, %v4055_v39 }
 0x28e   :  { %vm4439_vm14 = vcmp.ge.f32.partialorder %v4183_v54, 0.0  ;;  %v7003_v35 = vpack.c.bf16 %v4946_v48, %v4946_v48  ;;  %v4695_v52 = vmul.f32 0.2, %v4183_v54  ;;  %vm4309_vm15 = vcmp.ge.f32.partialorder %v4053_v43, 0.0  ;;  %v3537_v48 = vld [vmem:[#allocation2 + $0x3f0] sm:$0xff] }
 0x28f   :  { %v4565_v5 = vmul.f32 0.2, %v4053_v43  ;;  %v4823_v55 = vsel %vm4311_vm13, %v4055_v39, %v4567_v9  ;;  %v4181_v24 = vadd.f32 %v10921_v44, %v3918_v31  ;;  %v4056_v22 = vadd.f32 %v10921_v44, %v3793_v60 }
 0x290   :  { %v4184_v30 = vadd.f32 %v10921_v44, %v3921_v2  ;;  %6227 = vst.msk [vmem:[%s11239_s4 + $0x3c4] sm:$0xf] %vm5985_vm4, %v7003_v35  ;;  %v6880_v8 = vpack.c.bf16 %v4823_v55, %v4823_v55  ;;  %v4951_v38 = vsel %vm4439_vm14, %v4183_v54, %v4695_v52  ;;  %v3791_v11 = vmul.f32 %v10904_v13, %v3528_v3  ;;  %v3532_v54 = vld [vmem:[#allocation2 + $0x3c8] sm:$0xff] }
 0x291   :  { %v4821_v32 = vsel %vm4309_vm15, %v4053_v43, %v4565_v5  ;;  %v7008_v36 = vpack.c.bf16 %v4951_v38, %v4951_v38  ;;  %vm4437_vm0 = vcmp.ge.f32.partialorder %v4181_v24, 0.0  ;;  %v4693_v7 = vmul.f32 0.2, %v4181_v24  ;;  %v3660_v43 = vld [vmem:[#allocation2 + $0x7c8] sm:$0xff] }
 0x292   :  { %v6878_v18 = vpack.c.bf16 %v4821_v32, %v4821_v32  ;;  %6104 = vst.msk [vmem:[%s11239_s4 + $0x1d8] sm:$0xf] %vm5985_vm4, %v6880_v8  ;;  %vm4312_vm1 = vcmp.ge.f32.partialorder %v4056_v22, 0.0  ;;  %v4568_v50 = vmul.f32 0.2, %v4056_v22  ;;  %vm4440_vm2 = vcmp.ge.f32.partialorder %v4184_v30, 0.0 }
 0x293   :  { %v4696_v37 = vmul.f32 0.2, %v4184_v30  ;;  %6232 = vst.msk [vmem:[%s11239_s4 + $0x3d8] sm:$0xf] %vm5985_vm4, %v7008_v36  ;;  %v4949_v53 = vsel %vm4437_vm0, %v4181_v24, %v4693_v7  ;;  %v4054_v62 = vadd.f32 %v10921_v44, %v3791_v11  ;;  %v3919_v49 = vmul.f32 %v10904_v13, %v3656_v1  ;;  %v3665_v24 = vld [vmem:[#allocation2 + $0x7f0] sm:$0xff]  ;;  %v3535_v32 = vld [vmem:[#allocation2 + $0x3e0] sm:$0xff] }
 0x294   :  { %6102 = vst.msk [vmem:[%s11239_s4 + $0x1d0] sm:$0xf] %vm5985_vm4, %v6878_v18  ;;  %v3796_v0 = vmul.f32 %v10904_v13, %v3533_v63  ;;  %v7006_v61 = vpack.c.bf16 %v4949_v53, %v4949_v53  ;;  %v4824_v46 = vsel %vm4312_vm1, %v4056_v22, %v4568_v50  ;;  %v3924_v29 = vmul.f32 %v10904_v13, %v3661_v25  ;;  %v3663_v11 = vld [vmem:[#allocation2 + $0x7e0] sm:$0xff] }
 0x295   :  { %v4952_v20 = vsel %vm4440_vm2, %v4184_v30, %v4696_v37  ;;  %v6881_v14 = vpack.c.bf16 %v4824_v46, %v4824_v46  ;;  %vm4310_vm5 = vcmp.ge.f32.partialorder %v4054_v62, 0.0  ;;  %v4566_v58 = vmul.f32 0.2, %v4054_v62 }
 0x296   :  { %v7009_v17 = vpack.c.bf16 %v4952_v20, %v4952_v20  ;;  %6230 = vst.msk [vmem:[%s11239_s4 + $0x3d0] sm:$0xf] %vm5985_vm4, %v7006_v61  ;;  %v4182_v57 = vadd.f32 %v10921_v44, %v3919_v49  ;;  %v4059_v56 = vadd.f32 %v10921_v44, %v3796_v0  ;;  %v4187_v10 = vadd.f32 %v10921_v44, %v3924_v29  ;;  %v3538_v0 = vld [vmem:[#allocation2 + $0x3f8] sm:$0xff] }
 0x297   :  { %v3794_v23 = vmul.f32 %v10904_v13, %v3531_v34  ;;  %6105 = vst.msk [vmem:[%s11239_s4 + $0x1dc] sm:$0xf] %vm5985_vm4, %v6881_v14  ;;  %v4822_v45 = vsel %vm4310_vm5, %v4054_v62, %v4566_v58  ;;  %v3922_v47 = vmul.f32 %v10904_v13, %v3659_v59  ;;  %v3797_v27 = vmul.f32 %v10904_v13, %v3534_v42  ;;  %v3666_v58 = vld [vmem:[#allocation2 + $0x7f8] sm:$0xff] }
 0x298   :  { %6233 = vst.msk [vmem:[%s11239_s4 + $0x3dc] sm:$0xf] %vm5985_vm4, %v7009_v17  ;;  %v3925_v12 = vmul.f32 %v10904_v13, %v3662_v21  ;;  %v6879_v4 = vpack.c.bf16 %v4822_v45, %v4822_v45  ;;  %vm4438_vm6 = vcmp.ge.f32.partialorder %v4182_v57, 0.0  ;;  %v4694_v40 = vmul.f32 0.2, %v4182_v57  ;;  %v3664_v45 = vld [vmem:[#allocation2 + $0x7e8] sm:$0xff] }
 0x299   :  { %vm4315_vm7 = vcmp.ge.f32.partialorder %v4059_v56, 0.0  ;;  %v4571_v15 = vmul.f32 0.2, %v4059_v56  ;;  %vm4443_vm8 = vcmp.ge.f32.partialorder %v4187_v10, 0.0  ;;  %v4699_v19 = vmul.f32 0.2, %v4187_v10 }
 0x29a   :  { %v4057_v6 = vadd.f32 %v10921_v44, %v3794_v23  ;;  %6103 = vst.msk [vmem:[%s11239_s4 + $0x1d4] sm:$0xf] %vm5985_vm4, %v6879_v4  ;;  %v4950_v26 = vsel %vm4438_vm6, %v4182_v57, %v4694_v40  ;;  %v4185_v51 = vadd.f32 %v10921_v44, %v3922_v47  ;;  %v4060_v41 = vadd.f32 %v10921_v44, %v3797_v27  ;;  %v3536_v57 = vld [vmem:[#allocation2 + $0x3e8] sm:$0xff] }
 0x29b   :  { %v4188_v16 = vadd.f32 %v10921_v44, %v3925_v12  ;;  %v7007_v33 = vpack.c.bf16 %v4950_v26, %v4950_v26  ;;  %v4827_v28 = vsel %vm4315_vm7, %v4059_v56, %v4571_v15  ;;  %v4955_v39 = vsel %vm4443_vm8, %v4187_v10, %v4699_v19 }
 0x29c   :  { %vm4313_vm9 = vcmp.ge.f32.partialorder %v4057_v6, 0.0  ;;  %v6884_v31 = vpack.c.bf16 %v4827_v28, %v4827_v28  ;;  %v7012_v60 = vpack.c.bf16 %v4955_v39, %v4955_v39  ;;  %v4569_v2 = vmul.f32 0.2, %v4057_v6 }
 0x29d   :  { %vm4441_vm3 = vcmp.ge.f32.partialorder %v4185_v51, 0.0  ;;  %6231 = vst.msk [vmem:[%s11239_s4 + $0x3d4] sm:$0xf] %vm5985_vm4, %v7007_v33  ;;  %v4697_v9 = vmul.f32 0.2, %v4185_v51  ;;  %vm4316_vm10 = vcmp.ge.f32.partialorder %v4060_v41, 0.0  ;;  %v3795_v5 = vmul.f32 %v10904_v13, %v3532_v54 }
 0x29e   :  { %v4572_v3 = vmul.f32 0.2, %v4060_v41  ;;  %vm4444_vm11 = vcmp.ge.f32.partialorder %v4188_v16, 0.0  ;;  %6108 = vst.msk [vmem:[%s11239_s4 + $0x1e8] sm:$0xf] %vm5985_vm4, %v6884_v31  ;;  %v4825_v35 = vsel %vm4313_vm9, %v4057_v6, %v4569_v2  ;;  %v3923_v55 = vmul.f32 %v10904_v13, %v3660_v43 }
 0x29f   :  { %6236 = vst.msk [vmem:[%s11239_s4 + $0x3e8] sm:$0xf] %vm5985_vm4, %v7012_v60  ;;  %v4700_v52 = vmul.f32 0.2, %v4188_v16  ;;  %v6882_v22 = vpack.c.bf16 %v4825_v35, %v4825_v35  ;;  %v4953_v30 = vsel %vm4441_vm3, %v4185_v51, %v4697_v9  ;;  %v3800_v38 = vmul.f32 %v10904_v13, %v3537_v48 }
 0x2a0   :  { %v4828_v8 = vsel %vm4316_vm10, %v4060_v41, %v4572_v3  ;;  %v7010_v1 = vpack.c.bf16 %v4953_v30, %v4953_v30  ;;  %v4058_v18 = vadd.f32 %v10921_v44, %v3795_v5  ;;  %v4186_v25 = vadd.f32 %v10921_v44, %v3923_v55 }
 0x2a1   :  { %v6885_v63 = vpack.c.bf16 %v4828_v8, %v4828_v8  ;;  %v4956_v36 = vsel %vm4444_vm11, %v4188_v16, %v4700_v52  ;;  %6106 = vst.msk [vmem:[%s11239_s4 + $0x1e0] sm:$0xf] %vm5985_vm4, %v6882_v22  ;;  %v4063_v50 = vadd.f32 %v10921_v44, %v3800_v38  ;;  %v3928_v37 = vmul.f32 %v10904_v13, %v3665_v24 }
 0x2a2   :  { %v7013_v7 = vpack.c.bf16 %v4956_v36, %v4956_v36  ;;  %6234 = vst.msk [vmem:[%s11239_s4 + $0x3e0] sm:$0xf] %vm5985_vm4, %v7010_v1  ;;  %vm4314_vm12 = vcmp.ge.f32.partialorder %v4058_v18, 0.0  ;;  %v4570_v53 = vmul.f32 0.2, %v4058_v18  ;;  %v3798_v62 = vmul.f32 %v10904_v13, %v3535_v32 }
 0x2a3   :  { %6109 = vst.msk [vmem:[%s11239_s4 + $0x1ec] sm:$0xf] %vm5985_vm4, %v6885_v63  ;;  %v3926_v49 = vmul.f32 %v10904_v13, %v3663_v11  ;;  %vm4442_vm13 = vcmp.ge.f32.partialorder %v4186_v25, 0.0  ;;  %v4698_v34 = vmul.f32 0.2, %v4186_v25  ;;  %vm4319_vm14 = vcmp.ge.f32.partialorder %v4063_v50, 0.0 }
 0x2a4   :  { %6237 = vst.msk [vmem:[%s11239_s4 + $0x3ec] sm:$0xf] %vm5985_vm4, %v7013_v7  ;;  %v4575_v61 = vmul.f32 0.2, %v4063_v50  ;;  %v4826_v46 = vsel %vm4314_vm12, %v4058_v18, %v4570_v53  ;;  %v4191_v20 = vadd.f32 %v10921_v44, %v3928_v37  ;;  %v4061_v29 = vadd.f32 %v10921_v44, %v3798_v62 }
 0x2a5   :  { %v4189_v59 = vadd.f32 %v10921_v44, %v3926_v49  ;;  %v6883_v42 = vpack.c.bf16 %v4826_v46, %v4826_v46  ;;  %v4954_v21 = vsel %vm4442_vm13, %v4186_v25, %v4698_v34  ;;  %v3801_v17 = vmul.f32 %v10904_v13, %v3538_v0 }
 0x2a6   :  { %v4831_v14 = vsel %vm4319_vm14, %v4063_v50, %v4575_v61  ;;  %v7011_v56 = vpack.c.bf16 %v4954_v21, %v4954_v21  ;;  %vm4447_vm15 = vcmp.ge.f32.partialorder %v4191_v20, 0.0  ;;  %v4703_v23 = vmul.f32 0.2, %v4191_v20 }
 0x2a7   :  { %v6888_v10 = vpack.c.bf16 %v4831_v14, %v4831_v14  ;;  %6107 = vst.msk [vmem:[%s11239_s4 + $0x1e4] sm:$0xf] %vm5985_vm4, %v6883_v42  ;;  %vm4317_vm0 = vcmp.ge.f32.partialorder %v4061_v29, 0.0  ;;  %v4573_v47 = vmul.f32 0.2, %v4061_v29  ;;  %vm4445_vm1 = vcmp.ge.f32.partialorder %v4189_v59, 0.0 }
 0x2a8   :  { %v4701_v27 = vmul.f32 0.2, %v4189_v59  ;;  %6235 = vst.msk [vmem:[%s11239_s4 + $0x3e4] sm:$0xf] %vm5985_vm4, %v7011_v56  ;;  %v4959_v12 = vsel %vm4447_vm15, %v4191_v20, %v4703_v23  ;;  %v4064_v4 = vadd.f32 %v10921_v44, %v3801_v17  ;;  %v3929_v40 = vmul.f32 %v10904_v13, %v3666_v58 }
 0x2a9   :  { %6112 = vst.msk [vmem:[%s11239_s4 + $0x1f8] sm:$0xf] %vm5985_vm4, %v6888_v10  ;;  %v3799_v15 = vmul.f32 %v10904_v13, %v3536_v57  ;;  %v7016_v19 = vpack.c.bf16 %v4959_v12, %v4959_v12  ;;  %v4829_v6 = vsel %vm4317_vm0, %v4061_v29, %v4573_v47  ;;  %v3927_v51 = vmul.f32 %v10904_v13, %v3664_v45 }
 0x2aa   :  { %v4957_v26 = vsel %vm4445_vm1, %v4189_v59, %v4701_v27  ;;  %v6886_v41 = vpack.c.bf16 %v4829_v6, %v4829_v6  ;;  %vm4320_vm2 = vcmp.ge.f32.partialorder %v4064_v4, 0.0  ;;  %v4576_v33 = vmul.f32 0.2, %v4064_v4 }
 0x2ab   :  { %v7014_v16 = vpack.c.bf16 %v4957_v26, %v4957_v26  ;;  %6240 = vst.msk [vmem:[%s11239_s4 + $0x3f8] sm:$0xf] %vm5985_vm4, %v7016_v19  ;;  %v4192_v28 = vadd.f32 %v10921_v44, %v3929_v40  ;;  %v4062_v39 = vadd.f32 %v10921_v44, %v3799_v15  ;;  %v4190_v54 = vadd.f32 %v10921_v44, %v3927_v51 }
 0x2ac   :  { %6110 = vst.msk [vmem:[%s11239_s4 + $0x1f0] sm:$0xf] %vm5985_vm4, %v6886_v41  ;;  %v4832_v13 = vsel %vm4320_vm2, %v4064_v4, %v4576_v33 }
 0x2ad   :  { %6238 = vst.msk [vmem:[%s11239_s4 + $0x3f0] sm:$0xf] %vm5985_vm4, %v7014_v16  ;;  %v6889_v43 = vpack.c.bf16 %v4832_v13, %v4832_v13  ;;  %vm4448_vm5 = vcmp.ge.f32.partialorder %v4192_v28, 0.0  ;;  %v4704_v31 = vmul.f32 0.2, %v4192_v28  ;;  %vm4318_vm6 = vcmp.ge.f32.partialorder %v4062_v39, 0.0 }
 0x2ae   :  { %v4574_v60 = vmul.f32 0.2, %v4062_v39  ;;  %vm4446_vm7 = vcmp.ge.f32.partialorder %v4190_v54, 0.0  ;;  %v4702_v2 = vmul.f32 0.2, %v4190_v54 }
 0x2af   :  { %6113 = vst.msk [vmem:[%s11239_s4 + $0x1fc] sm:$0xf] %vm5985_vm4, %v6889_v43  ;;  %v4960_v44 = vsel %vm4448_vm5, %v4192_v28, %v4704_v31 }
 0x2b0   :  { %v7017_v48 = vpack.c.bf16 %v4960_v44, %v4960_v44  ;;  %v4830_v9 = vsel %vm4318_vm6, %v4062_v39, %v4574_v60  ;;  %v4958_v3 = vsel %vm4446_vm7, %v4190_v54, %v4702_v2 }
 0x2b1   :  { %v6887_v35 = vpack.c.bf16 %v4830_v9, %v4830_v9  ;;  %v7015_v52 = vpack.c.bf16 %v4958_v3, %v4958_v3 }
 0x2b2   :  { %6241 = vst.msk [vmem:[%s11239_s4 + $0x3fc] sm:$0xf] %vm5985_vm4, %v7017_v48 }
 0x2b3   :  { %6111 = vst.msk [vmem:[%s11239_s4 + $0x1f4] sm:$0xf] %vm5985_vm4, %v6887_v35  ;;  %6239 = vst.msk [vmem:[%s11239_s4 + $0x3f4] sm:$0xf] %vm5985_vm4, %v7015_v52 }

</bundles_post_ra>
